<compile_context>
chip_gen: v6e
topology: v6e:2x2x1
jax: 0.10.0
libtpu: 0.0.40
codegen_flags: <defaults>
</compile_context>

<pallas_src>
import jax
import jax.numpy as jnp
from jax.experimental import pallas as pl
from jax.experimental.pallas import tpu as pltpu

# ---- small, module-consistent sizes -----------------------------------------
B = 8          # batch
E = 128        # embed_size (module default 128) -> lane-dense
H = 128        # hidden_size (scaled down from 512; fixlinear stays H -> E)
V = 64         # voc.size (logical)
V_PAD = 128    # vocab padded to a full lane tile for the output store
N_RNN = 3      # num_layers (outer ModuleList of LSTMs)
N_STACK = 3    # internal num_layers of each nn.LSTM
T = 8          # decode steps processed per pallas_call (weights stay resident)

assert E == H, "fused [W_ih;W_hh] packing below assumes E == H (2H-wide K)"


def atten_kernel(x_ref, h0_ref, c0_ref,
                 w_ref, b_ref, fixw_ref, fixb_ref, linw_ref, linb_ref,
                 logits_ref, hout_ref, cout_ref):
    """One decode step per grid iteration; 9 LSTM cells + fixlinear + linear.

    x_ref     : (1, B, E) f32        embedded token for this step
    h0_ref    : (3, B, H) f32        initial hidden state   (used at t == 0)
    c0_ref    : (3, B, H) f32        initial cell state     (used at t == 0)
    w_ref     : (N_RNN, N_STACK, 2H, 4H) bf16   fused [W_ih ; W_hh], gate order
                                                 (i, f, o, g), pre-transposed
    b_ref     : (N_RNN, N_STACK, 1, 4H) f32     b_ih + b_hh (summed in glue)
    fixw_ref  : (H, E)  bf16   fixb_ref: (1, E)  f32
    linw_ref  : (H, V_PAD) bf16  linb_ref: (1, V_PAD) f32
    outputs   : logits (1, B, V_PAD) per step;
                hout/cout (3, B, H) resident accumulators = carried (h, c) state
    """
    t = pl.program_id(0)

    @pl.when(t == 0)
    def _():                                       # seed the carried state
        hout_ref[...] = h0_ref[...]
        cout_ref[...] = c0_ref[...]

    h_prev = [hout_ref[l] for l in range(N_STACK)]
    c_prev = [cout_ref[l] for l in range(N_STACK)]
    x = x_ref[0]                                   # (B, E) input to rnn[0]
    layer_out = x

    for r in range(N_RNN):                         # rnn ModuleList (unrolled)
        inp = x
        new_h, new_c = [], []
        for l in range(N_STACK):                   # stacked LSTM layers
            # Fused input+recurrent matmul: K = E + H = 2H = 256.
            xh = jnp.concatenate([inp, h_prev[l]], axis=-1).astype(jnp.bfloat16)
            gates = (jnp.dot(xh, w_ref[r, l],
                             preferred_element_type=jnp.float32)
                     + b_ref[r, l])                # (B, 4H), gate order i,f,o,g
            sig = jax.nn.sigmoid(gates[:, :3 * H])          # one EUP slab
            i_g = sig[:, 0 * H:1 * H]
            f_g = sig[:, 1 * H:2 * H]
            o_g = sig[:, 2 * H:3 * H]
            g_g = jnp.tanh(gates[:, 3 * H:4 * H])
            c_new = f_g * c_prev[l] + i_g * g_g
            h_new = o_g * jnp.tanh(c_new)
            new_h.append(h_new)
            new_c.append(c_new)
            inp = h_new                            # feed next stacked layer
        h_prev, c_prev = new_h, new_c
        layer_out = inp                            # (B, H) top-layer output

        if r < N_RNN - 1:                          # fixlinear feeding next rnn
            tt = layer_out if r == 0 else jnp.maximum(layer_out, 0.0)  # ReLU r>=1
            x = (jnp.dot(tt.astype(jnp.bfloat16), fixw_ref[...],
                         preferred_element_type=jnp.float32)
                 + fixb_ref[...])

    logits_ref[0] = (jnp.dot(layer_out.astype(jnp.bfloat16), linw_ref[...],
                             preferred_element_type=jnp.float32)
                     + linb_ref[...])
    for l in range(N_STACK):                       # carry state to next step
        hout_ref[l] = h_prev[l]
        cout_ref[l] = c_prev[l]


def atten_forward(tokens, h0, c0, params):
    """tokens: (T, B) int32.  Runs T decode steps with weights VMEM-resident.

    Returns (logits (T, B, V), h_out (3, B, H), c_out (3, B, H)).
    With T == 1 this is exactly Atten.forward(x, (h, c))."""
    steps = tokens.shape[0]
    x_emb = params["embed"][tokens]                # (T, B, E) gather in JAX

    def const(shape):                              # resident across the grid
        return pl.BlockSpec(shape, lambda t: (0,) * len(shape))

    grid_spec = pltpu.PrefetchScalarGridSpec(
        num_scalar_prefetch=0,
        grid=(steps,),
        in_specs=[
            pl.BlockSpec((1, B, E), lambda t: (t, 0, 0)),     # per-step input
            const((N_STACK, B, H)),                           # h0
            const((N_STACK, B, H)),                           # c0
            const((N_RNN, N_STACK, 2 * H, 4 * H)),            # fused weights
            const((N_RNN, N_STACK, 1, 4 * H)),                # biases
            const((H, E)),                                    # fix_wt
            const((1, E)),                                    # fix_b
            const((H, V_PAD)),                                # lin_wt
            const((1, V_PAD)),                                # lin_b
        ],
        out_specs=(
            pl.BlockSpec((1, B, V_PAD), lambda t: (t, 0, 0)), # per-step logits
            const((N_STACK, B, H)),                           # carried h state
            const((N_STACK, B, H)),                           # carried c state
        ),
    )
    logits_pad, h_out, c_out = pl.pallas_call(
        atten_kernel,
        grid_spec=grid_spec,
        out_shape=(jax.ShapeDtypeStruct((steps, B, V_PAD), jnp.float32),
                   jax.ShapeDtypeStruct((N_STACK, B, H), jnp.float32),
                   jax.ShapeDtypeStruct((N_STACK, B, H), jnp.float32)),
        compiler_params=pltpu.CompilerParams(
            dimension_semantics=("arbitrary",)),   # sequential recurrence
    )(x_emb, h0, c0,
      params["w_fused"], params["b"],
      params["fix_wt"], params["fix_b"], params["lin_wt"], params["lin_b"])
    return logits_pad[..., :V], h_out, c_out


def ref_forward(tokens, h0, c0, p):
    """Pure-JAX reference with the same math (bf16 matmul operands, f32 acc)."""
    steps = tokens.shape[0]
    h_prev = [h0[l] for l in range(N_STACK)]
    c_prev = [c0[l] for l in range(N_STACK)]
    logits_all = []
    for t in range(steps):
        x = p["embed"][tokens[t]]
        layer_out = x
        for r in range(N_RNN):
            inp = x
            nh, nc = [], []
            for l in range(N_STACK):
                xh = jnp.concatenate([inp, h_prev[l]], -1).astype(jnp.bfloat16)
                gates = (jnp.dot(xh, p["w_fused"][r, l],
                                 preferred_element_type=jnp.float32)
                         + p["b"][r, l])
                sig = jax.nn.sigmoid(gates[:, :3 * H])
                i_g, f_g, o_g = sig[:, :H], sig[:, H:2 * H], sig[:, 2 * H:3 * H]
                g_g = jnp.tanh(gates[:, 3 * H:])
                c_new = f_g * c_prev[l] + i_g * g_g
                h_new = o_g * jnp.tanh(c_new)
                nh.append(h_new); nc.append(c_new); inp = h_new
            h_prev, c_prev = nh, nc
            layer_out = inp
            if r < N_RNN - 1:
                tt = layer_out if r == 0 else jnp.maximum(layer_out, 0.0)
                x = (jnp.dot(tt.astype(jnp.bfloat16), p["fix_wt"],
                             preferred_element_type=jnp.float32) + p["fix_b"])
        logits = (jnp.dot(layer_out.astype(jnp.bfloat16), p["lin_wt"],
                          preferred_element_type=jnp.float32) + p["lin_b"])
        logits_all.append(logits[:, :V])
    return jnp.stack(logits_all), jnp.stack(h_prev), jnp.stack(c_prev)


def init_params(key):
    """Deterministic synthetic parameters in the kernel's packed layout.

    A real port would take PyTorch's weight_ih_l{k}/weight_hh_l{k} (gate order
    i,f,g,o), transpose to (in, 4H), permute gate columns to (i,f,o,g), stack
    [W_ih ; W_hh] along K, sum b_ih + b_hh, and cast weights to bf16.
    """
    ks = jax.random.split(key, 8)
    u = lambda k, shape, s=0.1: jax.random.uniform(k, shape, jnp.float32, -s, s)
    w_fused = u(ks[0], (N_RNN, N_STACK, 2 * H, 4 * H)).astype(jnp.bfloat16)
    b = u(ks[1], (N_RNN, N_STACK, 1, 4 * H))                       # b_ih + b_hh
    lin_wt = jnp.zeros((H, V_PAD), jnp.float32).at[:, :V].set(u(ks[2], (H, V)))
    lin_b = jnp.zeros((1, V_PAD), jnp.float32).at[:, :V].set(u(ks[3], (1, V)))
    return {
        "embed":  u(ks[4], (V, E), 0.5),
        "w_fused": w_fused,                                        # bf16
        "b":       b,                                              # f32
        "fix_wt": u(ks[5], (H, E)).astype(jnp.bfloat16),           # Linear(512,128).T
        "fix_b":  u(ks[6], (1, E)),
        "lin_wt": lin_wt.astype(jnp.bfloat16),                     # V zero-padded
        "lin_b":  lin_b,
    }
    # TODO(synk): nn.MultiheadAttention(hidden_size, embed_size) is constructed
    # in __init__ but never used in forward(), so it is intentionally omitted.


if __name__ == "__main__":
    key = jax.random.PRNGKey(0)
    kp, kt, kh, kc = jax.random.split(key, 4)
    params = init_params(kp)
    tokens = jax.random.randint(kt, (T, B), 0, V, dtype=jnp.int32)
    h0 = jax.random.uniform(kh, (N_STACK, B, H), jnp.float32)   # init_h style
    c0 = jax.random.uniform(kc, (N_STACK, B, H), jnp.float32)

    logits, h_out, c_out = jax.block_until_ready(
        jax.jit(atten_forward)(tokens, h0, c0, params))

    r_logits, r_h, r_c = ref_forward(tokens, h0, c0, params)
    assert logits.shape == (T, B, V) and h_out.shape == (N_STACK, B, H)
    assert jnp.allclose(logits, r_logits, atol=5e-3, rtol=5e-3)
    assert jnp.allclose(h_out, r_h, atol=5e-3, rtol=5e-3)
    assert jnp.allclose(c_out, r_c, atol=5e-3, rtol=5e-3)
    print("KERNEL_OK")
</pallas_src>

<mosaic_0001>
module attributes {stable_mosaic.version = 11 : i64} {
  func.func @atten_kernel(%arg0: i32, %arg1: memref<1x8x128xf32, #tpu.memory_space<vmem>>, %arg2: memref<3x8x128xf32, #tpu.memory_space<vmem>>, %arg3: memref<3x8x128xf32, #tpu.memory_space<vmem>>, %arg4: memref<3x3x256x512xbf16, #tpu.memory_space<vmem>>, %arg5: memref<3x3x1x512xf32, #tpu.memory_space<vmem>>, %arg6: memref<128x128xbf16, #tpu.memory_space<vmem>>, %arg7: memref<1x128xf32, #tpu.memory_space<vmem>>, %arg8: memref<128x128xbf16, #tpu.memory_space<vmem>>, %arg9: memref<1x128xf32, #tpu.memory_space<vmem>>, %arg10: memref<1x8x128xf32, #tpu.memory_space<vmem>>, %arg11: memref<3x8x128xf32, #tpu.memory_space<vmem>>, %arg12: memref<3x8x128xf32, #tpu.memory_space<vmem>>) attributes {dimension_semantics = [#tpu.dimension_semantics<arbitrary>], iteration_bounds = array<i64: 8>, scalar_prefetch = 0 : i64, scratch_operands = 0 : i64, tpu.core_type = #tpu.core_type<tc>, window_params = [{transform_indices = @transform_0, window_bounds = array<i64: 1, 8, 128>}, {pipeline_mode = #tpu.pipeline_mode<synchronous>, transform_indices = @transform_1, window_bounds = array<i64: 3, 8, 128>}, {pipeline_mode = #tpu.pipeline_mode<synchronous>, transform_indices = @transform_2, window_bounds = array<i64: 3, 8, 128>}, {pipeline_mode = #tpu.pipeline_mode<synchronous>, transform_indices = @transform_3, window_bounds = array<i64: 3, 3, 256, 512>}, {pipeline_mode = #tpu.pipeline_mode<synchronous>, transform_indices = @transform_4, window_bounds = array<i64: 3, 3, 1, 512>}, {pipeline_mode = #tpu.pipeline_mode<synchronous>, transform_indices = @transform_5, window_bounds = array<i64: 128, 128>}, {pipeline_mode = #tpu.pipeline_mode<synchronous>, transform_indices = @transform_6, window_bounds = array<i64: 1, 128>}, {pipeline_mode = #tpu.pipeline_mode<synchronous>, transform_indices = @transform_7, window_bounds = array<i64: 128, 128>}, {pipeline_mode = #tpu.pipeline_mode<synchronous>, transform_indices = @transform_8, window_bounds = array<i64: 1, 128>}, {transform_indices = @transform_9, window_bounds = array<i64: 1, 8, 128>}, {pipeline_mode = #tpu.pipeline_mode<synchronous>, transform_indices = @transform_10, window_bounds = array<i64: 3, 8, 128>}, {pipeline_mode = #tpu.pipeline_mode<synchronous>, transform_indices = @transform_11, window_bounds = array<i64: 3, 8, 128>}]} {
    %c0_i32 = arith.constant 0 : i32
    %0 = arith.cmpi eq, %arg0, %c0_i32 : i32
    %1 = arith.extui %0 : i1 to i32
    %c0_i32_0 = arith.constant 0 : i32
    %2 = arith.cmpi ne, %1, %c0_i32_0 : i32
    scf.if %2 {
      %c0_145 = arith.constant 0 : index
      %c0_146 = arith.constant 0 : index
      %c0_147 = arith.constant 0 : index
      %283 = vector.load %arg2[%c0_145, %c0_146, %c0_147] : memref<3x8x128xf32, #tpu.memory_space<vmem>>, vector<3x8x128xf32>
      %c0_148 = arith.constant 0 : index
      %c0_149 = arith.constant 0 : index
      %c0_150 = arith.constant 0 : index
      %284 = vector.load %arg11[%c0_148, %c0_149, %c0_150] : memref<3x8x128xf32, #tpu.memory_space<vmem>>, vector<3x8x128xf32>
      tpu.vector_store %arg11[%c0_148, %c0_149, %c0_150], %283 {strides = array<i32>} : memref<3x8x128xf32, #tpu.memory_space<vmem>>, vector<3x8x128xf32>,
      %c0_151 = arith.constant 0 : index
      %c0_152 = arith.constant 0 : index
      %c0_153 = arith.constant 0 : index
      %285 = vector.load %arg3[%c0_151, %c0_152, %c0_153] : memref<3x8x128xf32, #tpu.memory_space<vmem>>, vector<3x8x128xf32>
      %c0_154 = arith.constant 0 : index
      %c0_155 = arith.constant 0 : index
      %c0_156 = arith.constant 0 : index
      %286 = vector.load %arg12[%c0_154, %c0_155, %c0_156] : memref<3x8x128xf32, #tpu.memory_space<vmem>>, vector<3x8x128xf32>
      tpu.vector_store %arg12[%c0_154, %c0_155, %c0_156], %285 {strides = array<i32>} : memref<3x8x128xf32, #tpu.memory_space<vmem>>, vector<3x8x128xf32>,
    } else {
    }
    %c0 = arith.constant 0 : index
    %c0_1 = arith.constant 0 : index
    %c0_2 = arith.constant 0 : index
    %3 = vector.load %arg11[%c0, %c0_1, %c0_2] : memref<3x8x128xf32, #tpu.memory_space<vmem>>, vector<1x8x128xf32>
    %4 = vector.shape_cast %3 : vector<1x8x128xf32> to vector<8x128xf32>
    %c1 = arith.constant 1 : index
    %c0_3 = arith.constant 0 : index
    %c0_4 = arith.constant 0 : index
    %5 = vector.load %arg11[%c1, %c0_3, %c0_4] : memref<3x8x128xf32, #tpu.memory_space<vmem>>, vector<1x8x128xf32>
    %6 = vector.shape_cast %5 : vector<1x8x128xf32> to vector<8x128xf32>
    %c2 = arith.constant 2 : index
    %c0_5 = arith.constant 0 : index
    %c0_6 = arith.constant 0 : index
    %7 = vector.load %arg11[%c2, %c0_5, %c0_6] : memref<3x8x128xf32, #tpu.memory_space<vmem>>, vector<1x8x128xf32>
    %8 = vector.shape_cast %7 : vector<1x8x128xf32> to vector<8x128xf32>
    %c0_7 = arith.constant 0 : index
    %c0_8 = arith.constant 0 : index
    %c0_9 = arith.constant 0 : index
    %9 = vector.load %arg12[%c0_7, %c0_8, %c0_9] : memref<3x8x128xf32, #tpu.memory_space<vmem>>, vector<1x8x128xf32>
    %10 = vector.shape_cast %9 : vector<1x8x128xf32> to vector<8x128xf32>
    %c1_10 = arith.constant 1 : index
    %c0_11 = arith.constant 0 : index
    %c0_12 = arith.constant 0 : index
    %11 = vector.load %arg12[%c1_10, %c0_11, %c0_12] : memref<3x8x128xf32, #tpu.memory_space<vmem>>, vector<1x8x128xf32>
    %12 = vector.shape_cast %11 : vector<1x8x128xf32> to vector<8x128xf32>
    %c2_13 = arith.constant 2 : index
    %c0_14 = arith.constant 0 : index
    %c0_15 = arith.constant 0 : index
    %13 = vector.load %arg12[%c2_13, %c0_14, %c0_15] : memref<3x8x128xf32, #tpu.memory_space<vmem>>, vector<1x8x128xf32>
    %14 = vector.shape_cast %13 : vector<1x8x128xf32> to vector<8x128xf32>
    %c0_16 = arith.constant 0 : index
    %c0_17 = arith.constant 0 : index
    %c0_18 = arith.constant 0 : index
    %15 = vector.load %arg1[%c0_16, %c0_17, %c0_18] : memref<1x8x128xf32, #tpu.memory_space<vmem>>, vector<1x8x128xf32>
    %16 = vector.shape_cast %15 : vector<1x8x128xf32> to vector<8x128xf32>
    %17 = tpu.concatenate %16, %4 in 1 : vector<8x128xf32>, vector<8x128xf32> -> vector<8x256xf32>
    %18 = arith.truncf %17 : vector<8x256xf32> to vector<8x256xbf16>
    %c0_19 = arith.constant 0 : index
    %c0_20 = arith.constant 0 : index
    %c0_21 = arith.constant 0 : index
    %c0_22 = arith.constant 0 : index
    %19 = vector.load %arg4[%c0_19, %c0_20, %c0_21, %c0_22] : memref<3x3x256x512xbf16, #tpu.memory_space<vmem>>, vector<1x1x256x512xbf16>
    %20 = vector.shape_cast %19 : vector<1x1x256x512xbf16> to vector<256x512xbf16>
    %cst = arith.constant dense<0.000000e+00> : vector<8x512xf32>
    %21 = tpu.matmul %18, %20, %cst {dimension_numbers = #tpu.dot_dimension_numbers<[1], [0], [0], [1], [0, 0, 1, 1], [], []>} : vector<8x256xbf16>, vector<256x512xbf16>, vector<8x512xf32> -> vector<8x512xf32>
    %c0_23 = arith.constant 0 : index
    %c0_24 = arith.constant 0 : index
    %c0_25 = arith.constant 0 : index
    %c0_26 = arith.constant 0 : index
    %22 = vector.load %arg5[%c0_23, %c0_24, %c0_25, %c0_26] : memref<3x3x1x512xf32, #tpu.memory_space<vmem>>, vector<1x1x1x512xf32>
    %23 = vector.shape_cast %22 : vector<1x1x1x512xf32> to vector<1x512xf32>
    %24 = vector.broadcast %23 : vector<1x512xf32> to vector<8x512xf32>
    %25 = arith.addf %21, %24 : vector<8x512xf32>
    %26 = vector.extract_strided_slice %25 {offsets = [0, 0], sizes = [8, 384], strides = [1, 1]} : vector<8x512xf32> to vector<8x384xf32>
    %27 = arith.negf %26 : vector<8x384xf32>
    %28 = math.exp %27 : vector<8x384xf32>
    %cst_27 = arith.constant 1.000000e+00 : f32
    %29 = vector.broadcast %cst_27 : f32 to vector<8x384xf32>
    %30 = arith.addf %29, %28 : vector<8x384xf32>
    %31 = arith.divf %29, %30 : vector<8x384xf32>
    %32 = vector.extract_strided_slice %31 {offsets = [0, 0], sizes = [8, 128], strides = [1, 1]} : vector<8x384xf32> to vector<8x128xf32>
    %33 = vector.extract_strided_slice %31 {offsets = [0, 128], sizes = [8, 128], strides = [1, 1]} : vector<8x384xf32> to vector<8x128xf32>
    %34 = vector.extract_strided_slice %31 {offsets = [0, 256], sizes = [8, 128], strides = [1, 1]} : vector<8x384xf32> to vector<8x128xf32>
    %35 = vector.extract_strided_slice %25 {offsets = [0, 384], sizes = [8, 128], strides = [1, 1]} : vector<8x512xf32> to vector<8x128xf32>
    %36 = math.tanh %35 : vector<8x128xf32>
    %37 = arith.mulf %33, %10 : vector<8x128xf32>
    %38 = arith.mulf %32, %36 : vector<8x128xf32>
    %39 = arith.addf %37, %38 : vector<8x128xf32>
    %40 = math.tanh %39 : vector<8x128xf32>
    %41 = arith.mulf %34, %40 : vector<8x128xf32>
    %42 = tpu.concatenate %41, %6 in 1 : vector<8x128xf32>, vector<8x128xf32> -> vector<8x256xf32>
    %43 = arith.truncf %42 : vector<8x256xf32> to vector<8x256xbf16>
    %c0_28 = arith.constant 0 : index
    %c1_29 = arith.constant 1 : index
    %c0_30 = arith.constant 0 : index
    %c0_31 = arith.constant 0 : index
    %44 = vector.load %arg4[%c0_28, %c1_29, %c0_30, %c0_31] : memref<3x3x256x512xbf16, #tpu.memory_space<vmem>>, vector<1x1x256x512xbf16>
    %45 = vector.shape_cast %44 : vector<1x1x256x512xbf16> to vector<256x512xbf16>
    %cst_32 = arith.constant dense<0.000000e+00> : vector<8x512xf32>
    %46 = tpu.matmul %43, %45, %cst_32 {dimension_numbers = #tpu.dot_dimension_numbers<[1], [0], [0], [1], [0, 0, 1, 1], [], []>} : vector<8x256xbf16>, vector<256x512xbf16>, vector<8x512xf32> -> vector<8x512xf32>
    %c0_33 = arith.constant 0 : index
    %c1_34 = arith.constant 1 : index
    %c0_35 = arith.constant 0 : index
    %c0_36 = arith.constant 0 : index
    %47 = vector.load %arg5[%c0_33, %c1_34, %c0_35, %c0_36] : memref<3x3x1x512xf32, #tpu.memory_space<vmem>>, vector<1x1x1x512xf32>
    %48 = vector.shape_cast %47 : vector<1x1x1x512xf32> to vector<1x512xf32>
    %49 = vector.broadcast %48 : vector<1x512xf32> to vector<8x512xf32>
    %50 = arith.addf %46, %49 : vector<8x512xf32>
    %51 = vector.extract_strided_slice %50 {offsets = [0, 0], sizes = [8, 384], strides = [1, 1]} : vector<8x512xf32> to vector<8x384xf32>
    %52 = arith.negf %51 : vector<8x384xf32>
    %53 = math.exp %52 : vector<8x384xf32>
    %cst_37 = arith.constant 1.000000e+00 : f32
    %54 = vector.broadcast %cst_37 : f32 to vector<8x384xf32>
    %55 = arith.addf %54, %53 : vector<8x384xf32>
    %56 = arith.divf %54, %55 : vector<8x384xf32>
    %57 = vector.extract_strided_slice %56 {offsets = [0, 0], sizes = [8, 128], strides = [1, 1]} : vector<8x384xf32> to vector<8x128xf32>
    %58 = vector.extract_strided_slice %56 {offsets = [0, 128], sizes = [8, 128], strides = [1, 1]} : vector<8x384xf32> to vector<8x128xf32>
    %59 = vector.extract_strided_slice %56 {offsets = [0, 256], sizes = [8, 128], strides = [1, 1]} : vector<8x384xf32> to vector<8x128xf32>
    %60 = vector.extract_strided_slice %50 {offsets = [0, 384], sizes = [8, 128], strides = [1, 1]} : vector<8x512xf32> to vector<8x128xf32>
    %61 = math.tanh %60 : vector<8x128xf32>
    %62 = arith.mulf %58, %12 : vector<8x128xf32>
    %63 = arith.mulf %57, %61 : vector<8x128xf32>
    %64 = arith.addf %62, %63 : vector<8x128xf32>
    %65 = math.tanh %64 : vector<8x128xf32>
    %66 = arith.mulf %59, %65 : vector<8x128xf32>
    %67 = tpu.concatenate %66, %8 in 1 : vector<8x128xf32>, vector<8x128xf32> -> vector<8x256xf32>
    %68 = arith.truncf %67 : vector<8x256xf32> to vector<8x256xbf16>
    %c0_38 = arith.constant 0 : index
    %c2_39 = arith.constant 2 : index
    %c0_40 = arith.constant 0 : index
    %c0_41 = arith.constant 0 : index
    %69 = vector.load %arg4[%c0_38, %c2_39, %c0_40, %c0_41] : memref<3x3x256x512xbf16, #tpu.memory_space<vmem>>, vector<1x1x256x512xbf16>
    %70 = vector.shape_cast %69 : vector<1x1x256x512xbf16> to vector<256x512xbf16>
    %cst_42 = arith.constant dense<0.000000e+00> : vector<8x512xf32>
    %71 = tpu.matmul %68, %70, %cst_42 {dimension_numbers = #tpu.dot_dimension_numbers<[1], [0], [0], [1], [0, 0, 1, 1], [], []>} : vector<8x256xbf16>, vector<256x512xbf16>, vector<8x512xf32> -> vector<8x512xf32>
    %c0_43 = arith.constant 0 : index
    %c2_44 = arith.constant 2 : index
    %c0_45 = arith.constant 0 : index
    %c0_46 = arith.constant 0 : index
    %72 = vector.load %arg5[%c0_43, %c2_44, %c0_45, %c0_46] : memref<3x3x1x512xf32, #tpu.memory_space<vmem>>, vector<1x1x1x512xf32>
    %73 = vector.shape_cast %72 : vector<1x1x1x512xf32> to vector<1x512xf32>
    %74 = vector.broadcast %73 : vector<1x512xf32> to vector<8x512xf32>
    %75 = arith.addf %71, %74 : vector<8x512xf32>
    %76 = vector.extract_strided_slice %75 {offsets = [0, 0], sizes = [8, 384], strides = [1, 1]} : vector<8x512xf32> to vector<8x384xf32>
    %77 = arith.negf %76 : vector<8x384xf32>
    %78 = math.exp %77 : vector<8x384xf32>
    %cst_47 = arith.constant 1.000000e+00 : f32
    %79 = vector.broadcast %cst_47 : f32 to vector<8x384xf32>
    %80 = arith.addf %79, %78 : vector<8x384xf32>
    %81 = arith.divf %79, %80 : vector<8x384xf32>
    %82 = vector.extract_strided_slice %81 {offsets = [0, 0], sizes = [8, 128], strides = [1, 1]} : vector<8x384xf32> to vector<8x128xf32>
    %83 = vector.extract_strided_slice %81 {offsets = [0, 128], sizes = [8, 128], strides = [1, 1]} : vector<8x384xf32> to vector<8x128xf32>
    %84 = vector.extract_strided_slice %81 {offsets = [0, 256], sizes = [8, 128], strides = [1, 1]} : vector<8x384xf32> to vector<8x128xf32>
    %85 = vector.extract_strided_slice %75 {offsets = [0, 384], sizes = [8, 128], strides = [1, 1]} : vector<8x512xf32> to vector<8x128xf32>
    %86 = math.tanh %85 : vector<8x128xf32>
    %87 = arith.mulf %83, %14 : vector<8x128xf32>
    %88 = arith.mulf %82, %86 : vector<8x128xf32>
    %89 = arith.addf %87, %88 : vector<8x128xf32>
    %90 = math.tanh %89 : vector<8x128xf32>
    %91 = arith.mulf %84, %90 : vector<8x128xf32>
    %92 = arith.truncf %91 : vector<8x128xf32> to vector<8x128xbf16>
    %c0_48 = arith.constant 0 : index
    %c0_49 = arith.constant 0 : index
    %93 = vector.load %arg6[%c0_48, %c0_49] : memref<128x128xbf16, #tpu.memory_space<vmem>>, vector<128x128xbf16>
    %cst_50 = arith.constant dense<0.000000e+00> : vector<8x128xf32>
    %94 = tpu.matmul %92, %93, %cst_50 {dimension_numbers = #tpu.dot_dimension_numbers<[1], [0], [0], [1], [0, 0, 1, 1], [], []>} : vector<8x128xbf16>, vector<128x128xbf16>, vector<8x128xf32> -> vector<8x128xf32>
    %c0_51 = arith.constant 0 : index
    %c0_52 = arith.constant 0 : index
    %95 = vector.load %arg7[%c0_51, %c0_52] : memref<1x128xf32, #tpu.memory_space<vmem>>, vector<1x128xf32>
    %96 = vector.broadcast %95 : vector<1x128xf32> to vector<8x128xf32>
    %97 = arith.addf %94, %96 : vector<8x128xf32>
    %98 = tpu.concatenate %97, %41 in 1 : vector<8x128xf32>, vector<8x128xf32> -> vector<8x256xf32>
    %99 = arith.truncf %98 : vector<8x256xf32> to vector<8x256xbf16>
    %c1_53 = arith.constant 1 : index
    %c0_54 = arith.constant 0 : index
    %c0_55 = arith.constant 0 : index
    %c0_56 = arith.constant 0 : index
    %100 = vector.load %arg4[%c1_53, %c0_54, %c0_55, %c0_56] : memref<3x3x256x512xbf16, #tpu.memory_space<vmem>>, vector<1x1x256x512xbf16>
    %101 = vector.shape_cast %100 : vector<1x1x256x512xbf16> to vector<256x512xbf16>
    %cst_57 = arith.constant dense<0.000000e+00> : vector<8x512xf32>
    %102 = tpu.matmul %99, %101, %cst_57 {dimension_numbers = #tpu.dot_dimension_numbers<[1], [0], [0], [1], [0, 0, 1, 1], [], []>} : vector<8x256xbf16>, vector<256x512xbf16>, vector<8x512xf32> -> vector<8x512xf32>
    %c1_58 = arith.constant 1 : index
    %c0_59 = arith.constant 0 : index
    %c0_60 = arith.constant 0 : index
    %c0_61 = arith.constant 0 : index
    %103 = vector.load %arg5[%c1_58, %c0_59, %c0_60, %c0_61] : memref<3x3x1x512xf32, #tpu.memory_space<vmem>>, vector<1x1x1x512xf32>
    %104 = vector.shape_cast %103 : vector<1x1x1x512xf32> to vector<1x512xf32>
    %105 = vector.broadcast %104 : vector<1x512xf32> to vector<8x512xf32>
    %106 = arith.addf %102, %105 : vector<8x512xf32>
    %107 = vector.extract_strided_slice %106 {offsets = [0, 0], sizes = [8, 384], strides = [1, 1]} : vector<8x512xf32> to vector<8x384xf32>
    %108 = arith.negf %107 : vector<8x384xf32>
    %109 = math.exp %108 : vector<8x384xf32>
    %cst_62 = arith.constant 1.000000e+00 : f32
    %110 = vector.broadcast %cst_62 : f32 to vector<8x384xf32>
    %111 = arith.addf %110, %109 : vector<8x384xf32>
    %112 = arith.divf %110, %111 : vector<8x384xf32>
    %113 = vector.extract_strided_slice %112 {offsets = [0, 0], sizes = [8, 128], strides = [1, 1]} : vector<8x384xf32> to vector<8x128xf32>
    %114 = vector.extract_strided_slice %112 {offsets = [0, 128], sizes = [8, 128], strides = [1, 1]} : vector<8x384xf32> to vector<8x128xf32>
    %115 = vector.extract_strided_slice %112 {offsets = [0, 256], sizes = [8, 128], strides = [1, 1]} : vector<8x384xf32> to vector<8x128xf32>
    %116 = vector.extract_strided_slice %106 {offsets = [0, 384], sizes = [8, 128], strides = [1, 1]} : vector<8x512xf32> to vector<8x128xf32>
    %117 = math.tanh %116 : vector<8x128xf32>
    %118 = arith.mulf %114, %39 : vector<8x128xf32>
    %119 = arith.mulf %113, %117 : vector<8x128xf32>
    %120 = arith.addf %118, %119 : vector<8x128xf32>
    %121 = math.tanh %120 : vector<8x128xf32>
    %122 = arith.mulf %115, %121 : vector<8x128xf32>
    %123 = tpu.concatenate %122, %66 in 1 : vector<8x128xf32>, vector<8x128xf32> -> vector<8x256xf32>
    %124 = arith.truncf %123 : vector<8x256xf32> to vector<8x256xbf16>
    %c1_63 = arith.constant 1 : index
    %c1_64 = arith.constant 1 : index
    %c0_65 = arith.constant 0 : index
    %c0_66 = arith.constant 0 : index
    %125 = vector.load %arg4[%c1_63, %c1_64, %c0_65, %c0_66] : memref<3x3x256x512xbf16, #tpu.memory_space<vmem>>, vector<1x1x256x512xbf16>
    %126 = vector.shape_cast %125 : vector<1x1x256x512xbf16> to vector<256x512xbf16>
    %cst_67 = arith.constant dense<0.000000e+00> : vector<8x512xf32>
    %127 = tpu.matmul %124, %126, %cst_67 {dimension_numbers = #tpu.dot_dimension_numbers<[1], [0], [0], [1], [0, 0, 1, 1], [], []>} : vector<8x256xbf16>, vector<256x512xbf16>, vector<8x512xf32> -> vector<8x512xf32>
    %c1_68 = arith.constant 1 : index
    %c1_69 = arith.constant 1 : index
    %c0_70 = arith.constant 0 : index
    %c0_71 = arith.constant 0 : index
    %128 = vector.load %arg5[%c1_68, %c1_69, %c0_70, %c0_71] : memref<3x3x1x512xf32, #tpu.memory_space<vmem>>, vector<1x1x1x512xf32>
    %129 = vector.shape_cast %128 : vector<1x1x1x512xf32> to vector<1x512xf32>
    %130 = vector.broadcast %129 : vector<1x512xf32> to vector<8x512xf32>
    %131 = arith.addf %127, %130 : vector<8x512xf32>
    %132 = vector.extract_strided_slice %131 {offsets = [0, 0], sizes = [8, 384], strides = [1, 1]} : vector<8x512xf32> to vector<8x384xf32>
    %133 = arith.negf %132 : vector<8x384xf32>
    %134 = math.exp %133 : vector<8x384xf32>
    %cst_72 = arith.constant 1.000000e+00 : f32
    %135 = vector.broadcast %cst_72 : f32 to vector<8x384xf32>
    %136 = arith.addf %135, %134 : vector<8x384xf32>
    %137 = arith.divf %135, %136 : vector<8x384xf32>
    %138 = vector.extract_strided_slice %137 {offsets = [0, 0], sizes = [8, 128], strides = [1, 1]} : vector<8x384xf32> to vector<8x128xf32>
    %139 = vector.extract_strided_slice %137 {offsets = [0, 128], sizes = [8, 128], strides = [1, 1]} : vector<8x384xf32> to vector<8x128xf32>
    %140 = vector.extract_strided_slice %137 {offsets = [0, 256], sizes = [8, 128], strides = [1, 1]} : vector<8x384xf32> to vector<8x128xf32>
    %141 = vector.extract_strided_slice %131 {offsets = [0, 384], sizes = [8, 128], strides = [1, 1]} : vector<8x512xf32> to vector<8x128xf32>
    %142 = math.tanh %141 : vector<8x128xf32>
    %143 = arith.mulf %139, %64 : vector<8x128xf32>
    %144 = arith.mulf %138, %142 : vector<8x128xf32>
    %145 = arith.addf %143, %144 : vector<8x128xf32>
    %146 = math.tanh %145 : vector<8x128xf32>
    %147 = arith.mulf %140, %146 : vector<8x128xf32>
    %148 = tpu.concatenate %147, %91 in 1 : vector<8x128xf32>, vector<8x128xf32> -> vector<8x256xf32>
    %149 = arith.truncf %148 : vector<8x256xf32> to vector<8x256xbf16>
    %c1_73 = arith.constant 1 : index
    %c2_74 = arith.constant 2 : index
    %c0_75 = arith.constant 0 : index
    %c0_76 = arith.constant 0 : index
    %150 = vector.load %arg4[%c1_73, %c2_74, %c0_75, %c0_76] : memref<3x3x256x512xbf16, #tpu.memory_space<vmem>>, vector<1x1x256x512xbf16>
    %151 = vector.shape_cast %150 : vector<1x1x256x512xbf16> to vector<256x512xbf16>
    %cst_77 = arith.constant dense<0.000000e+00> : vector<8x512xf32>
    %152 = tpu.matmul %149, %151, %cst_77 {dimension_numbers = #tpu.dot_dimension_numbers<[1], [0], [0], [1], [0, 0, 1, 1], [], []>} : vector<8x256xbf16>, vector<256x512xbf16>, vector<8x512xf32> -> vector<8x512xf32>
    %c1_78 = arith.constant 1 : index
    %c2_79 = arith.constant 2 : index
    %c0_80 = arith.constant 0 : index
    %c0_81 = arith.constant 0 : index
    %153 = vector.load %arg5[%c1_78, %c2_79, %c0_80, %c0_81] : memref<3x3x1x512xf32, #tpu.memory_space<vmem>>, vector<1x1x1x512xf32>
    %154 = vector.shape_cast %153 : vector<1x1x1x512xf32> to vector<1x512xf32>
    %155 = vector.broadcast %154 : vector<1x512xf32> to vector<8x512xf32>
    %156 = arith.addf %152, %155 : vector<8x512xf32>
    %157 = vector.extract_strided_slice %156 {offsets = [0, 0], sizes = [8, 384], strides = [1, 1]} : vector<8x512xf32> to vector<8x384xf32>
    %158 = arith.negf %157 : vector<8x384xf32>
    %159 = math.exp %158 : vector<8x384xf32>
    %cst_82 = arith.constant 1.000000e+00 : f32
    %160 = vector.broadcast %cst_82 : f32 to vector<8x384xf32>
    %161 = arith.addf %160, %159 : vector<8x384xf32>
    %162 = arith.divf %160, %161 : vector<8x384xf32>
    %163 = vector.extract_strided_slice %162 {offsets = [0, 0], sizes = [8, 128], strides = [1, 1]} : vector<8x384xf32> to vector<8x128xf32>
    %164 = vector.extract_strided_slice %162 {offsets = [0, 128], sizes = [8, 128], strides = [1, 1]} : vector<8x384xf32> to vector<8x128xf32>
    %165 = vector.extract_strided_slice %162 {offsets = [0, 256], sizes = [8, 128], strides = [1, 1]} : vector<8x384xf32> to vector<8x128xf32>
    %166 = vector.extract_strided_slice %156 {offsets = [0, 384], sizes = [8, 128], strides = [1, 1]} : vector<8x512xf32> to vector<8x128xf32>
    %167 = math.tanh %166 : vector<8x128xf32>
    %168 = arith.mulf %164, %89 : vector<8x128xf32>
    %169 = arith.mulf %163, %167 : vector<8x128xf32>
    %170 = arith.addf %168, %169 : vector<8x128xf32>
    %171 = math.tanh %170 : vector<8x128xf32>
    %172 = arith.mulf %165, %171 : vector<8x128xf32>
    %cst_83 = arith.constant 0.000000e+00 : f32
    %173 = vector.broadcast %cst_83 : f32 to vector<8x128xf32>
    %174 = arith.maximumf %172, %173 : vector<8x128xf32>
    %175 = arith.truncf %174 : vector<8x128xf32> to vector<8x128xbf16>
    %c0_84 = arith.constant 0 : index
    %c0_85 = arith.constant 0 : index
    %176 = vector.load %arg6[%c0_84, %c0_85] : memref<128x128xbf16, #tpu.memory_space<vmem>>, vector<128x128xbf16>
    %cst_86 = arith.constant dense<0.000000e+00> : vector<8x128xf32>
    %177 = tpu.matmul %175, %176, %cst_86 {dimension_numbers = #tpu.dot_dimension_numbers<[1], [0], [0], [1], [0, 0, 1, 1], [], []>} : vector<8x128xbf16>, vector<128x128xbf16>, vector<8x128xf32> -> vector<8x128xf32>
    %c0_87 = arith.constant 0 : index
    %c0_88 = arith.constant 0 : index
    %178 = vector.load %arg7[%c0_87, %c0_88] : memref<1x128xf32, #tpu.memory_space<vmem>>, vector<1x128xf32>
    %179 = vector.broadcast %178 : vector<1x128xf32> to vector<8x128xf32>
    %180 = arith.addf %177, %179 : vector<8x128xf32>
    %181 = tpu.concatenate %180, %122 in 1 : vector<8x128xf32>, vector<8x128xf32> -> vector<8x256xf32>
    %182 = arith.truncf %181 : vector<8x256xf32> to vector<8x256xbf16>
    %c2_89 = arith.constant 2 : index
    %c0_90 = arith.constant 0 : index
    %c0_91 = arith.constant 0 : index
    %c0_92 = arith.constant 0 : index
    %183 = vector.load %arg4[%c2_89, %c0_90, %c0_91, %c0_92] : memref<3x3x256x512xbf16, #tpu.memory_space<vmem>>, vector<1x1x256x512xbf16>
    %184 = vector.shape_cast %183 : vector<1x1x256x512xbf16> to vector<256x512xbf16>
    %cst_93 = arith.constant dense<0.000000e+00> : vector<8x512xf32>
    %185 = tpu.matmul %182, %184, %cst_93 {dimension_numbers = #tpu.dot_dimension_numbers<[1], [0], [0], [1], [0, 0, 1, 1], [], []>} : vector<8x256xbf16>, vector<256x512xbf16>, vector<8x512xf32> -> vector<8x512xf32>
    %c2_94 = arith.constant 2 : index
    %c0_95 = arith.constant 0 : index
    %c0_96 = arith.constant 0 : index
    %c0_97 = arith.constant 0 : index
    %186 = vector.load %arg5[%c2_94, %c0_95, %c0_96, %c0_97] : memref<3x3x1x512xf32, #tpu.memory_space<vmem>>, vector<1x1x1x512xf32>
    %187 = vector.shape_cast %186 : vector<1x1x1x512xf32> to vector<1x512xf32>
    %188 = vector.broadcast %187 : vector<1x512xf32> to vector<8x512xf32>
    %189 = arith.addf %185, %188 : vector<8x512xf32>
    %190 = vector.extract_strided_slice %189 {offsets = [0, 0], sizes = [8, 384], strides = [1, 1]} : vector<8x512xf32> to vector<8x384xf32>
    %191 = arith.negf %190 : vector<8x384xf32>
    %192 = math.exp %191 : vector<8x384xf32>
    %cst_98 = arith.constant 1.000000e+00 : f32
    %193 = vector.broadcast %cst_98 : f32 to vector<8x384xf32>
    %194 = arith.addf %193, %192 : vector<8x384xf32>
    %195 = arith.divf %193, %194 : vector<8x384xf32>
    %196 = vector.extract_strided_slice %195 {offsets = [0, 0], sizes = [8, 128], strides = [1, 1]} : vector<8x384xf32> to vector<8x128xf32>
    %197 = vector.extract_strided_slice %195 {offsets = [0, 128], sizes = [8, 128], strides = [1, 1]} : vector<8x384xf32> to vector<8x128xf32>
    %198 = vector.extract_strided_slice %195 {offsets = [0, 256], sizes = [8, 128], strides = [1, 1]} : vector<8x384xf32> to vector<8x128xf32>
    %199 = vector.extract_strided_slice %189 {offsets = [0, 384], sizes = [8, 128], strides = [1, 1]} : vector<8x512xf32> to vector<8x128xf32>
    %200 = math.tanh %199 : vector<8x128xf32>
    %201 = arith.mulf %197, %120 : vector<8x128xf32>
    %202 = arith.mulf %196, %200 : vector<8x128xf32>
    %203 = arith.addf %201, %202 : vector<8x128xf32>
    %204 = math.tanh %203 : vector<8x128xf32>
    %205 = arith.mulf %198, %204 : vector<8x128xf32>
    %206 = tpu.concatenate %205, %147 in 1 : vector<8x128xf32>, vector<8x128xf32> -> vector<8x256xf32>
    %207 = arith.truncf %206 : vector<8x256xf32> to vector<8x256xbf16>
    %c2_99 = arith.constant 2 : index
    %c1_100 = arith.constant 1 : index
    %c0_101 = arith.constant 0 : index
    %c0_102 = arith.constant 0 : index
    %208 = vector.load %arg4[%c2_99, %c1_100, %c0_101, %c0_102] : memref<3x3x256x512xbf16, #tpu.memory_space<vmem>>, vector<1x1x256x512xbf16>
    %209 = vector.shape_cast %208 : vector<1x1x256x512xbf16> to vector<256x512xbf16>
    %cst_103 = arith.constant dense<0.000000e+00> : vector<8x512xf32>
    %210 = tpu.matmul %207, %209, %cst_103 {dimension_numbers = #tpu.dot_dimension_numbers<[1], [0], [0], [1], [0, 0, 1, 1], [], []>} : vector<8x256xbf16>, vector<256x512xbf16>, vector<8x512xf32> -> vector<8x512xf32>
    %c2_104 = arith.constant 2 : index
    %c1_105 = arith.constant 1 : index
    %c0_106 = arith.constant 0 : index
    %c0_107 = arith.constant 0 : index
    %211 = vector.load %arg5[%c2_104, %c1_105, %c0_106, %c0_107] : memref<3x3x1x512xf32, #tpu.memory_space<vmem>>, vector<1x1x1x512xf32>
    %212 = vector.shape_cast %211 : vector<1x1x1x512xf32> to vector<1x512xf32>
    %213 = vector.broadcast %212 : vector<1x512xf32> to vector<8x512xf32>
    %214 = arith.addf %210, %213 : vector<8x512xf32>
    %215 = vector.extract_strided_slice %214 {offsets = [0, 0], sizes = [8, 384], strides = [1, 1]} : vector<8x512xf32> to vector<8x384xf32>
    %216 = arith.negf %215 : vector<8x384xf32>
    %217 = math.exp %216 : vector<8x384xf32>
    %cst_108 = arith.constant 1.000000e+00 : f32
    %218 = vector.broadcast %cst_108 : f32 to vector<8x384xf32>
    %219 = arith.addf %218, %217 : vector<8x384xf32>
    %220 = arith.divf %218, %219 : vector<8x384xf32>
    %221 = vector.extract_strided_slice %220 {offsets = [0, 0], sizes = [8, 128], strides = [1, 1]} : vector<8x384xf32> to vector<8x128xf32>
    %222 = vector.extract_strided_slice %220 {offsets = [0, 128], sizes = [8, 128], strides = [1, 1]} : vector<8x384xf32> to vector<8x128xf32>
    %223 = vector.extract_strided_slice %220 {offsets = [0, 256], sizes = [8, 128], strides = [1, 1]} : vector<8x384xf32> to vector<8x128xf32>
    %224 = vector.extract_strided_slice %214 {offsets = [0, 384], sizes = [8, 128], strides = [1, 1]} : vector<8x512xf32> to vector<8x128xf32>
    %225 = math.tanh %224 : vector<8x128xf32>
    %226 = arith.mulf %222, %145 : vector<8x128xf32>
    %227 = arith.mulf %221, %225 : vector<8x128xf32>
    %228 = arith.addf %226, %227 : vector<8x128xf32>
    %229 = math.tanh %228 : vector<8x128xf32>
    %230 = arith.mulf %223, %229 : vector<8x128xf32>
    %231 = tpu.concatenate %230, %172 in 1 : vector<8x128xf32>, vector<8x128xf32> -> vector<8x256xf32>
    %232 = arith.truncf %231 : vector<8x256xf32> to vector<8x256xbf16>
    %c2_109 = arith.constant 2 : index
    %c2_110 = arith.constant 2 : index
    %c0_111 = arith.constant 0 : index
    %c0_112 = arith.constant 0 : index
    %233 = vector.load %arg4[%c2_109, %c2_110, %c0_111, %c0_112] : memref<3x3x256x512xbf16, #tpu.memory_space<vmem>>, vector<1x1x256x512xbf16>
    %234 = vector.shape_cast %233 : vector<1x1x256x512xbf16> to vector<256x512xbf16>
    %cst_113 = arith.constant dense<0.000000e+00> : vector<8x512xf32>
    %235 = tpu.matmul %232, %234, %cst_113 {dimension_numbers = #tpu.dot_dimension_numbers<[1], [0], [0], [1], [0, 0, 1, 1], [], []>} : vector<8x256xbf16>, vector<256x512xbf16>, vector<8x512xf32> -> vector<8x512xf32>
    %c2_114 = arith.constant 2 : index
    %c2_115 = arith.constant 2 : index
    %c0_116 = arith.constant 0 : index
    %c0_117 = arith.constant 0 : index
    %236 = vector.load %arg5[%c2_114, %c2_115, %c0_116, %c0_117] : memref<3x3x1x512xf32, #tpu.memory_space<vmem>>, vector<1x1x1x512xf32>
    %237 = vector.shape_cast %236 : vector<1x1x1x512xf32> to vector<1x512xf32>
    %238 = vector.broadcast %237 : vector<1x512xf32> to vector<8x512xf32>
    %239 = arith.addf %235, %238 : vector<8x512xf32>
    %240 = vector.extract_strided_slice %239 {offsets = [0, 0], sizes = [8, 384], strides = [1, 1]} : vector<8x512xf32> to vector<8x384xf32>
    %241 = arith.negf %240 : vector<8x384xf32>
    %242 = math.exp %241 : vector<8x384xf32>
    %cst_118 = arith.constant 1.000000e+00 : f32
    %243 = vector.broadcast %cst_118 : f32 to vector<8x384xf32>
    %244 = arith.addf %243, %242 : vector<8x384xf32>
    %245 = arith.divf %243, %244 : vector<8x384xf32>
    %246 = vector.extract_strided_slice %245 {offsets = [0, 0], sizes = [8, 128], strides = [1, 1]} : vector<8x384xf32> to vector<8x128xf32>
    %247 = vector.extract_strided_slice %245 {offsets = [0, 128], sizes = [8, 128], strides = [1, 1]} : vector<8x384xf32> to vector<8x128xf32>
    %248 = vector.extract_strided_slice %245 {offsets = [0, 256], sizes = [8, 128], strides = [1, 1]} : vector<8x384xf32> to vector<8x128xf32>
    %249 = vector.extract_strided_slice %239 {offsets = [0, 384], sizes = [8, 128], strides = [1, 1]} : vector<8x512xf32> to vector<8x128xf32>
    %250 = math.tanh %249 : vector<8x128xf32>
    %251 = arith.mulf %247, %170 : vector<8x128xf32>
    %252 = arith.mulf %246, %250 : vector<8x128xf32>
    %253 = arith.addf %251, %252 : vector<8x128xf32>
    %254 = math.tanh %253 : vector<8x128xf32>
    %255 = arith.mulf %248, %254 : vector<8x128xf32>
    %256 = arith.truncf %255 : vector<8x128xf32> to vector<8x128xbf16>
    %c0_119 = arith.constant 0 : index
    %c0_120 = arith.constant 0 : index
    %257 = vector.load %arg8[%c0_119, %c0_120] : memref<128x128xbf16, #tpu.memory_space<vmem>>, vector<128x128xbf16>
    %cst_121 = arith.constant dense<0.000000e+00> : vector<8x128xf32>
    %258 = tpu.matmul %256, %257, %cst_121 {dimension_numbers = #tpu.dot_dimension_numbers<[1], [0], [0], [1], [0, 0, 1, 1], [], []>} : vector<8x128xbf16>, vector<128x128xbf16>, vector<8x128xf32> -> vector<8x128xf32>
    %c0_122 = arith.constant 0 : index
    %c0_123 = arith.constant 0 : index
    %259 = vector.load %arg9[%c0_122, %c0_123] : memref<1x128xf32, #tpu.memory_space<vmem>>, vector<1x128xf32>
    %260 = vector.broadcast %259 : vector<1x128xf32> to vector<8x128xf32>
    %261 = arith.addf %258, %260 : vector<8x128xf32>
    %c0_124 = arith.constant 0 : index
    %c0_125 = arith.constant 0 : index
    %c0_126 = arith.constant 0 : index
    %262 = vector.load %arg10[%c0_124, %c0_125, %c0_126] : memref<1x8x128xf32, #tpu.memory_space<vmem>>, vector<1x8x128xf32>
    %263 = vector.shape_cast %262 : vector<1x8x128xf32> to vector<8x128xf32>
    %264 = vector.shape_cast %261 : vector<8x128xf32> to vector<1x8x128xf32>
    tpu.vector_store %arg10[%c0_124, %c0_125, %c0_126], %264 {strides = array<i32>} : memref<1x8x128xf32, #tpu.memory_space<vmem>>, vector<1x8x128xf32>,
    %c0_127 = arith.constant 0 : index
    %c0_128 = arith.constant 0 : index
    %c0_129 = arith.constant 0 : index
    %265 = vector.load %arg11[%c0_127, %c0_128, %c0_129] : memref<3x8x128xf32, #tpu.memory_space<vmem>>, vector<1x8x128xf32>
    %266 = vector.shape_cast %265 : vector<1x8x128xf32> to vector<8x128xf32>
    %267 = vector.shape_cast %205 : vector<8x128xf32> to vector<1x8x128xf32>
    tpu.vector_store %arg11[%c0_127, %c0_128, %c0_129], %267 {strides = array<i32>} : memref<3x8x128xf32, #tpu.memory_space<vmem>>, vector<1x8x128xf32>,
    %c0_130 = arith.constant 0 : index
    %c0_131 = arith.constant 0 : index
    %c0_132 = arith.constant 0 : index
    %268 = vector.load %arg12[%c0_130, %c0_131, %c0_132] : memref<3x8x128xf32, #tpu.memory_space<vmem>>, vector<1x8x128xf32>
    %269 = vector.shape_cast %268 : vector<1x8x128xf32> to vector<8x128xf32>
    %270 = vector.shape_cast %203 : vector<8x128xf32> to vector<1x8x128xf32>
    tpu.vector_store %arg12[%c0_130, %c0_131, %c0_132], %270 {strides = array<i32>} : memref<3x8x128xf32, #tpu.memory_space<vmem>>, vector<1x8x128xf32>,
    %c1_133 = arith.constant 1 : index
    %c0_134 = arith.constant 0 : index
    %c0_135 = arith.constant 0 : index
    %271 = vector.load %arg11[%c1_133, %c0_134, %c0_135] : memref<3x8x128xf32, #tpu.memory_space<vmem>>, vector<1x8x128xf32>
    %272 = vector.shape_cast %271 : vector<1x8x128xf32> to vector<8x128xf32>
    %273 = vector.shape_cast %230 : vector<8x128xf32> to vector<1x8x128xf32>
    tpu.vector_store %arg11[%c1_133, %c0_134, %c0_135], %273 {strides = array<i32>} : memref<3x8x128xf32, #tpu.memory_space<vmem>>, vector<1x8x128xf32>,
    %c1_136 = arith.constant 1 : index
    %c0_137 = arith.constant 0 : index
    %c0_138 = arith.constant 0 : index
    %274 = vector.load %arg12[%c1_136, %c0_137, %c0_138] : memref<3x8x128xf32, #tpu.memory_space<vmem>>, vector<1x8x128xf32>
    %275 = vector.shape_cast %274 : vector<1x8x128xf32> to vector<8x128xf32>
    %276 = vector.shape_cast %228 : vector<8x128xf32> to vector<1x8x128xf32>
    tpu.vector_store %arg12[%c1_136, %c0_137, %c0_138], %276 {strides = array<i32>} : memref<3x8x128xf32, #tpu.memory_space<vmem>>, vector<1x8x128xf32>,
    %c2_139 = arith.constant 2 : index
    %c0_140 = arith.constant 0 : index
    %c0_141 = arith.constant 0 : index
    %277 = vector.load %arg11[%c2_139, %c0_140, %c0_141] : memref<3x8x128xf32, #tpu.memory_space<vmem>>, vector<1x8x128xf32>
    %278 = vector.shape_cast %277 : vector<1x8x128xf32> to vector<8x128xf32>
    %279 = vector.shape_cast %255 : vector<8x128xf32> to vector<1x8x128xf32>
    tpu.vector_store %arg11[%c2_139, %c0_140, %c0_141], %279 {strides = array<i32>} : memref<3x8x128xf32, #tpu.memory_space<vmem>>, vector<1x8x128xf32>,
    %c2_142 = arith.constant 2 : index
    %c0_143 = arith.constant 0 : index
    %c0_144 = arith.constant 0 : index
    %280 = vector.load %arg12[%c2_142, %c0_143, %c0_144] : memref<3x8x128xf32, #tpu.memory_space<vmem>>, vector<1x8x128xf32>
    %281 = vector.shape_cast %280 : vector<1x8x128xf32> to vector<8x128xf32>
    %282 = vector.shape_cast %253 : vector<8x128xf32> to vector<1x8x128xf32>
    tpu.vector_store %arg12[%c2_142, %c0_143, %c0_144], %282 {strides = array<i32>} : memref<3x8x128xf32, #tpu.memory_space<vmem>>, vector<1x8x128xf32>,
    return
  }
  func.func @transform_0(%arg0: i32) -> (i32, i32, i32) {
    %c0_i32 = arith.constant 0 : i32
    %c0_i32_0 = arith.constant 0 : i32
    %c0_i32_1 = arith.constant 0 : i32
    return %arg0, %c0_i32, %c0_i32_0 : i32, i32, i32
  }
  func.func @transform_1(%arg0: i32) -> (i32, i32, i32) {
    %c0_i32 = arith.constant 0 : i32
    %c0_i32_0 = arith.constant 0 : i32
    %c0_i32_1 = arith.constant 0 : i32
    %c0_i32_2 = arith.constant 0 : i32
    return %c0_i32, %c0_i32_0, %c0_i32_1 : i32, i32, i32
  }
  func.func @transform_2(%arg0: i32) -> (i32, i32, i32) {
    %c0_i32 = arith.constant 0 : i32
    %c0_i32_0 = arith.constant 0 : i32
    %c0_i32_1 = arith.constant 0 : i32
    %c0_i32_2 = arith.constant 0 : i32
    return %c0_i32, %c0_i32_0, %c0_i32_1 : i32, i32, i32
  }
  func.func @transform_3(%arg0: i32) -> (i32, i32, i32, i32) {
    %c0_i32 = arith.constant 0 : i32
    %c0_i32_0 = arith.constant 0 : i32
    %c0_i32_1 = arith.constant 0 : i32
    %c0_i32_2 = arith.constant 0 : i32
    %c0_i32_3 = arith.constant 0 : i32
    return %c0_i32, %c0_i32_0, %c0_i32_1, %c0_i32_2 : i32, i32, i32, i32
  }
  func.func @transform_4(%arg0: i32) -> (i32, i32, i32, i32) {
    %c0_i32 = arith.constant 0 : i32
    %c0_i32_0 = arith.constant 0 : i32
    %c0_i32_1 = arith.constant 0 : i32
    %c0_i32_2 = arith.constant 0 : i32
    %c0_i32_3 = arith.constant 0 : i32
    return %c0_i32, %c0_i32_0, %c0_i32_1, %c0_i32_2 : i32, i32, i32, i32
  }
  func.func @transform_5(%arg0: i32) -> (i32, i32) {
    %c0_i32 = arith.constant 0 : i32
    %c0_i32_0 = arith.constant 0 : i32
    %c0_i32_1 = arith.constant 0 : i32
    return %c0_i32, %c0_i32_0 : i32, i32
  }
  func.func @transform_6(%arg0: i32) -> (i32, i32) {
    %c0_i32 = arith.constant 0 : i32
    %c0_i32_0 = arith.constant 0 : i32
    %c0_i32_1 = arith.constant 0 : i32
    return %c0_i32, %c0_i32_0 : i32, i32
  }
  func.func @transform_7(%arg0: i32) -> (i32, i32) {
    %c0_i32 = arith.constant 0 : i32
    %c0_i32_0 = arith.constant 0 : i32
    %c0_i32_1 = arith.constant 0 : i32
    return %c0_i32, %c0_i32_0 : i32, i32
  }
  func.func @transform_8(%arg0: i32) -> (i32, i32) {
    %c0_i32 = arith.constant 0 : i32
    %c0_i32_0 = arith.constant 0 : i32
    %c0_i32_1 = arith.constant 0 : i32
    return %c0_i32, %c0_i32_0 : i32, i32
  }
  func.func @transform_9(%arg0: i32) -> (i32, i32, i32) {
    %c0_i32 = arith.constant 0 : i32
    %c0_i32_0 = arith.constant 0 : i32
    %c0_i32_1 = arith.constant 0 : i32
    return %arg0, %c0_i32, %c0_i32_0 : i32, i32, i32
  }
  func.func @transform_10(%arg0: i32) -> (i32, i32, i32) {
    %c0_i32 = arith.constant 0 : i32
    %c0_i32_0 = arith.constant 0 : i32
    %c0_i32_1 = arith.constant 0 : i32
    %c0_i32_2 = arith.constant 0 : i32
    return %c0_i32, %c0_i32_0, %c0_i32_1 : i32, i32, i32
  }
  func.func @transform_11(%arg0: i32) -> (i32, i32, i32) {
    %c0_i32 = arith.constant 0 : i32
    %c0_i32_0 = arith.constant 0 : i32
    %c0_i32_1 = arith.constant 0 : i32
    %c0_i32_2 = arith.constant 0 : i32
    return %c0_i32, %c0_i32_0, %c0_i32_1 : i32, i32, i32
  }
}

</mosaic_0001>

<bundles_post_ra>
// kernel: atten_forward.1
= control target key start
LH: loop header
LB: loop body
LE: loop exit
PB: predicated region body
PF: predicated region fallthrough
CT: control target
= control target key end

     0   :  { %s8347_s0 = inlined_call_operand.vmem [shape: f32[8,8,128], index: 0, kind: input, shape index: {}]   ;;  %s8348_s1 = inlined_call_operand.hbm [shape: f32[3,8,128], index: 1, kind: input, shape index: {}]   ;;  %s8349_s2 = inlined_call_operand.hbm [shape: f32[3,8,128], index: 2, kind: input, shape index: {}]   ;;  %s8350_s3 = inlined_call_operand.hbm [shape: bf16[3,3,256,512], index: 3, kind: input, shape index: {}]   ;;  %s8351_s4 = inlined_call_operand.hbm [shape: f32[3,3,1,512], index: 4, kind: input, shape index: {}]   ;;  %s8352_s5 = inlined_call_operand.hbm [shape: bf16[128,128], index: 5, kind: input, shape index: {}]   ;;  %s8353_s6 = inlined_call_operand.hbm [shape: f32[1,128], index: 6, kind: input, shape index: {}]   ;;  %s8354_s7 = inlined_call_operand.hbm [shape: bf16[128,128], index: 7, kind: input, shape index: {}]   ;;  %s8355_s8 = inlined_call_operand.hbm [shape: f32[1,128], index: 8, kind: input, shape index: {}]   ;;  %s8356_s9 = inlined_call_operand.hbm [shape: f32[8,8,128], index: 9, kind: output, shape index: {0}]   ;;  %s8357_s10 = inlined_call_operand.hbm [shape: f32[3,8,128], index: 10, kind: output, shape index: {1}]   ;;  %s8358_s11 = inlined_call_operand.hbm [shape: f32[3,8,128], index: 11, kind: output, shape index: {2}]  }
   0x1   :  { %8372 = sst [smem:[#allocation30_spill]] %s8349_s2 }
   0x2   :  { %17 = vsyncpa [#allocation3], 0 }
   0x3   :  { %18 = vsyncpa [#allocation6], 0 }
   0x4   :  { %19 = vsyncpa [#allocation9], 0 }
   0x5   :  { %20 = vsyncpa [#allocation12], 0 }
   0x6   :  { %21 = vsyncpa [#allocation15], 0 }
   0x7   :  { %22 = vsyncpa [#allocation4], 0 }
   0x8   :  { %24 = vsyncpa [#allocation4 + $0x1], 0 }
   0x9   :  { %25 = vsyncpa [#allocation18], 0  ;;  %s7967_s17 = smov 0   ;;  %s7969_s18 = smov 0  }
   0xa   :  { %s7971_s19 = smov 0   ;;  %s7973_s20 = smov 0  }
   0xb LB: > { %8373 = sst [smem:[#allocation27_spill]] %s7880_s19  ;;  %s7988_s21 = sadd.s32 4294967295, %s7884_s20   ;;  %s7884_s20 = sphi %s7973_s20, %s8406_s20   ;;  %s7880_s19 = sphi %s7971_s19, %s8408_s19   ;;  %s7876_s18 = sphi %s7969_s18, %s8410_s18   ;;  %s7872_s17 = sphi %s7967_s17, %s8409_s17  }
   0xc   : > { %s5628_s22 = sadd.s32 4294967294, %s7884_s20   ;;  %s7992_s23 = sadd.s32 1, %s7884_s20  }
   0xd   : > { %8374 = sst [smem:[#allocation28_spill]] %s7992_s23  ;;  %s232_s24 = sadd.s32 1, %s7880_s19 }
   0xe   : > { %s229_s25 = ssub.s32 %s7884_s20, %s7992_s23  ;;  %p242_p0 = scmp.ne.s32.totalorder %s7880_s19, %s7876_s18 }
   0xf   : > { %p230_p1 = scmp.eq.s32.totalorder %s229_s25, 0  ;;  %p8359_p2 = scmp.eq.s32.totalorder %s7988_s21, 7 }
  0x10   : > { %p248_p3 = scmp.ne.s32.totalorder %s7876_s18, %s7872_s17  ;;  %p249_p4 = scmp.eq.s32.totalorder %s5628_s22, 7 }
  0x11   : > { %s8003_s26 = scalar_select %p230_p1, %s7880_s19, %s232_s24  }
  0x12   : > { %p8007_p5 = por %p8359_p2, %p242_p0  ;;  %p8011_p6 = por %p249_p4, %p248_p3 }
  0x13   : > { %8375 = sst [smem:[#allocation29_spill]] %s8003_s26  ;;  %p5629_p7 = scmp.ge.s32.totalorder %s7884_s20, 1 }
  0x14   : > { %s8376_s27 = scalar_select %p8007_p5, 1, 0 }
  0x15   : > { %s8377_s28 = scalar_select %p8011_p6, 1, 0 }
  0x16   : > { %p298_p8 = scmp.lt.s32.totalorder %s7884_s20, 9  ;;  %p8365_p10 = scmp.eq.s32.totalorder %s7988_s21, 0 }
  0x17   : > { %s7886_s30 = smov [#allocation5]   ;;  %s7887_s14 = smov [#allocation8]  }
  0x18   : > { %p8019_p11 = pnand %p5629_p7, %p298_p8  ;;  %s323_s12 = sshll.u32 %s7886_s30, 4  ;;  %s324_s12 = int_to_ptr.vmem [resolvable:$true] %s323_s12 }
  0x19   : > { %s349_s15 = sshll.u32 %s7887_s14, 4  ;;  %s7555_s22 = scalar_lea.vmem %s324_s12, 384  ;;  %s350_s15 = int_to_ptr.vmem [resolvable:$true] %s349_s15 }
  0x1a   : > { %s8378_s29 = scalar_select %p8019_p11, 1, 0 }
  0x1b   : > { %p6409_p12 = pneg %p8019_p11  ;;  %p7556_p1 = scmp.ne.s32.totalorder %s324_s12, %s7555_s22 }
  0x1c   : > { %p7563_p7 = scmp.lt.s32.totalorder %s324_s12, %s324_s12  ;;  %p7564_p8 = scmp.lt.s32.totalorder %s7555_s22, %s7555_s22 }
  0x1d   : > { %p8027_p13 = pnand %p8365_p10, %p6409_p12 }
  0x1e   : > { %p7565_p12 = por %p7564_p8, %p7563_p7 }
  0x1f   : > { %p8033_p0 = pneg %p8027_p13 }
  0x21   : > { %p7558_p3 = pnand %p7556_p1, %p8033_p0 }
  0x23   : > { %p7559_p4 = pneg %p7558_p3 }
  0x25   : > { %p7566_p2 = pnand %p7565_p12, %p7559_p4 }
  0x27   : > { %7569 = shalt.err (!%p7566_p2)
}
  0x28   : > { %s8361_s24 = smov 128   ;;  %s8362_s25 = smov 8  }
  0x29   : > { %s8381_s2 = sld [smem:[#allocation30_spill]]  ;;  %s7581_s26 = scalar_lea.vmem %s350_s15, 576 }
  0x2a   : > { %p7582_p1 = scmp.ne.s32.totalorder %s350_s15, %s7581_s26  ;;  %p7589_p7 = scmp.lt.s32.totalorder %s350_s15, %s350_s15 }
  0x2b   : > { %p7590_p4 = scmp.lt.s32.totalorder %s7581_s26, %s7581_s26 }
  0x2c   : > { %p7584_p3 = pnand %p7582_p1, %p8033_p0 }
  0x2d   : > { %p7591_p2 = por %p7590_p4, %p7589_p7 }
  0x2e   : > { %p7585_p9 = pneg %p7584_p3 }
  0x2f   : > { %6415 = dma.hbm_to_vmem [thread:$0]  (!%p8027_p13), %s8381_s2, 384, %s324_s12, [#allocation6], %s8361_s24, %s8361_s24, %s8362_s25  }
  0x30   : > { %p7592_p8 = pnand %p7591_p2, %p7585_p9 }
  0x32   : > { %7595 = shalt.err (!%p7592_p8)
}
  0x33   : > { %s8368_s22 = smov 64   ;;  %s8370_s19 = smov 4  }
  0x34   : > { %6421 = dma.hbm_to_vmem [thread:$0]  (!%p8027_p13), %s8351_s4, 576, %s350_s15, [#allocation9], %s8368_s22, %s8368_s22, %s8370_s19  }
  0x35   : > { %s7892_s14 = smov [#allocation11]   ;;  %s7893_s25 = smov [#allocation2]  }
  0x36   : > { %s376_s24 = sshll.u32 %s7892_s14, 4  ;;  %s310_s2 = sshll.u32 %s7893_s25, 4  ;;  %s377_s24 = int_to_ptr.vmem [resolvable:$true] %s376_s24  ;;  %s311_s2 = int_to_ptr.vmem [resolvable:$true] %s310_s2 }
  0x37   : > { %s7607_s26 = scalar_lea.vmem %s377_s24, 16  ;;  %s7614_s23 = scalar_lea.vmem %s377_s24, 32 }
  0x38   : > { %p7608_p9 = scmp.ne.s32.totalorder %s377_s24, %s7607_s26  ;;  %p7615_p3 = scmp.lt.s32.totalorder %s377_s24, %s377_s24 }
  0x39   : > { %p7616_p7 = scmp.lt.s32.totalorder %s7614_s23, %s7607_s26 }
  0x3a   : > { %p7610_p12 = pnand %p7608_p9, %p8033_p0 }
  0x3b   : > { %p7617_p4 = por %p7616_p7, %p7615_p3 }
  0x3c   : > { %p7611_p1 = pneg %p7610_p12 }
  0x3e   : > { %p7618_p2 = pnand %p7617_p4, %p7611_p1 }
  0x40   : > { %7621 = shalt.err (!%p7618_p2)
}
  0x41   : > { %6427 = dma.hbm_to_vmem [thread:$0]  (!%p8027_p13), %s8353_s6, 16, %s377_s24, [#allocation12]  }
  0x42   : > { %s7633_s25 = scalar_lea.vmem %s311_s2, 384  ;;  %p7641_p9 = scmp.lt.s32.totalorder %s311_s2, %s311_s2 }
  0x43   : > { %p7634_p8 = scmp.ne.s32.totalorder %s311_s2, %s7633_s25  ;;  %p7642_p12 = scmp.lt.s32.totalorder %s7633_s25, %s7633_s25 }
  0x45   : > { %p7636_p10 = pnand %p7634_p8, %p8033_p0  ;;  %p7643_p5 = por %p7642_p12, %p7641_p9 }
  0x47   : > { %p7637_p6 = pneg %p7636_p10 }
  0x49   : > { %p7644_p11 = pnand %p7643_p5, %p7637_p6 }
  0x4b   : > { %7647 = shalt.err (!%p7644_p11)
}
  0x4c   : > { %s8382_s23 = smov 8   ;;  %s8383_s12 = smov 128  }
  0x4d   : > { %6412 = dma.hbm_to_vmem [thread:$0]  (!%p8027_p13), %s8348_s1, 384, %s311_s2, [#allocation3], %s8383_s12, %s8383_s12, %s8382_s23  }
  0x4e   : > { %s7894_s24 = smov [#allocation7]  }
  0x4f   : > { %s336_s15 = sshll.u32 %s7894_s24, 4  ;;  %s337_s15 = int_to_ptr.vmem [resolvable:$true] %s336_s15 }
  0x50   : > { %s7659_s30 = scalar_lea.vmem %s337_s15, 73728  ;;  %p7667_p5 = scmp.lt.s32.totalorder %s337_s15, %s337_s15 }
  0x51   : > { %p7660_p10 = scmp.ne.s32.totalorder %s337_s15, %s7659_s30  ;;  %p7668_p6 = scmp.lt.s32.totalorder %s7659_s30, %s7659_s30 }
  0x53   : > { %p7662_p1 = pnand %p7660_p10, %p8033_p0  ;;  %p7669_p11 = por %p7668_p6, %p7667_p5 }
  0x55   : > { %p7663_p3 = pneg %p7662_p1 }
  0x57   : > { %p7670_p7 = pnand %p7669_p11, %p7663_p3 }
  0x59   : > { %7673 = shalt.err (!%p7670_p7)
}
  0x5a   : > { %s7895_s25 = smov 256   ;;  %s7896_s22 = smov 16  }
  0x5b   : > { %6418 = dma.hbm_to_vmem [thread:$0]  (!%p8027_p13), %s8350_s3, 73728, %s337_s15, [#allocation6], %s7895_s25, %s7895_s25, %s7896_s22  }
  0x5c   : > { %s7897_s23 = smov [#allocation10]   ;;  %s7898_s26 = smov [#allocation13]  }
  0x5d   : > { %s362_s12 = sshll.u32 %s7897_s23, 4  ;;  %s386_s24 = sshll.u32 %s7898_s26, 4  ;;  %s363_s12 = int_to_ptr.vmem [resolvable:$true] %s362_s12  ;;  %s387_s24 = int_to_ptr.vmem [resolvable:$true] %s386_s24 }
  0x5e   : > { %s7685_s19 = scalar_lea.vmem %s363_s12, 1024  ;;  %p7693_p9 = scmp.lt.s32.totalorder %s363_s12, %s363_s12 }
  0x5f   : > { %p7686_p4 = scmp.ne.s32.totalorder %s363_s12, %s7685_s19  ;;  %p7694_p12 = scmp.lt.s32.totalorder %s7685_s19, %s7685_s19 }
  0x61   : > { %p7688_p2 = pnand %p7686_p4, %p8033_p0  ;;  %p7695_p10 = por %p7694_p12, %p7693_p9 }
  0x63   : > { %p7689_p8 = pneg %p7688_p2 }
  0x65   : > { %p7696_p1 = pnand %p7695_p10, %p7689_p8 }
  0x67   : > { %7699 = shalt.err (!%p7696_p1)
}
  0x68   : > { %s8384_s30 = smov 4   ;;  %s8385_s14 = smov 64  }
  0x69   : > { %6424 = dma.hbm_to_vmem [thread:$0]  (!%p8027_p13), %s8352_s5, 1024, %s363_s12, [#allocation9], %s8385_s14, %s8385_s14, %s8384_s30  }
  0x6a   : > { %s7711_s25 = scalar_lea.vmem %s387_s24, 1024  ;;  %p7719_p11 = scmp.lt.s32.totalorder %s387_s24, %s387_s24 }
  0x6b   : > { %p7712_p3 = scmp.ne.s32.totalorder %s387_s24, %s7711_s25  ;;  %p7720_p7 = scmp.lt.s32.totalorder %s7711_s25, %s7711_s25 }
  0x6d   : > { %p7714_p5 = pnand %p7712_p3, %p8033_p0  ;;  %p7721_p4 = por %p7720_p7, %p7719_p11 }
  0x6f   : > { %p7715_p6 = pneg %p7714_p5 }
  0x71   : > { %p7722_p2 = pnand %p7721_p4, %p7715_p6 }
  0x73   : > { %7725 = shalt.err (!%p7722_p2)
}
  0x74   : > { %6430 = dma.hbm_to_vmem [thread:$0]  (!%p8027_p13), %s8354_s7, 1024, %s387_s24, [#allocation12], %s8385_s14, %s8385_s14, %s8384_s30  }
  0x75   : > { %s7899_s23 = smov [#allocation14]  }
  0x76   : > { %s400_s12 = sshll.u32 %s7899_s23, 4  ;;  %s401_s12 = int_to_ptr.vmem [resolvable:$true] %s400_s12 }
  0x77   : > { %s7737_s26 = scalar_lea.vmem %s401_s12, 16  ;;  %s7744_s22 = scalar_lea.vmem %s401_s12, 32 }
  0x78   : > { %p7738_p8 = scmp.ne.s32.totalorder %s401_s12, %s7737_s26  ;;  %p7745_p10 = scmp.lt.s32.totalorder %s401_s12, %s401_s12 }
  0x79   : > { %p7746_p1 = scmp.lt.s32.totalorder %s7744_s22, %s7737_s26 }
  0x7a   : > { %p7740_p9 = pnand %p7738_p8, %p8033_p0 }
  0x7b   : > { %p7747_p3 = por %p7746_p1, %p7745_p10 }
  0x7c   : > { %p7741_p12 = pneg %p7740_p9 }
  0x7e   : > { %p7748_p5 = pnand %p7747_p3, %p7741_p12 }
  0x80   : > { %7751 = shalt.err (!%p7748_p5)
}
  0x81   : > { %6433 = dma.hbm_to_vmem [thread:$0]  (!%p8027_p13), %s8355_s8, 16, %s401_s12, [#allocation15]  }
  0x82   : > { %p8386_p6 = scmp.ne.s32.totalorder %s8378_s29, 0 }
  0x83   : > { %p8387_p11 = scmp.eq.s32.totalorder (!%p8386_p6), %s7988_s21, 0 }
  0x84   : > { %420 = sbr.rel (%p8386_p6) target bundleno = 3097 (0xc19), region = 56 }
  0x89   : > { %7843 = dma.done.wait (%p8387_p11), [#allocation3], 384   ;;  %p8388_p0 = pmov %p8387_p11 }
  0x8b   : > { %7845 = vsyncadd (%p8388_p0), [#allocation3], 4294966912  ;;  %p8389_p7 = pmov %p8388_p0 }
  0x8c   : > { %p8390_p4 = pmov %p8388_p0 }
  0x8d   : > { %7847 = dma.done.wait (%p8389_p7), [#allocation6], 74112  }
  0x8e   : > { %7849 = vsyncadd (%p8390_p4), [#allocation6], 4294893184  ;;  %p8391_p2 = pmov %p8388_p0 }
  0x8f   : > { %p8392_p13 = pmov %p8388_p0 }
  0x90   : > { %7851 = dma.done.wait (%p8391_p2), [#allocation9], 1600  }
  0x91   : > { %7853 = vsyncadd (%p8392_p13), [#allocation9], 4294965696  ;;  %p8393_p8 = pmov %p8388_p0 }
  0x92   : > { %p8394_p9 = pmov %p8388_p0 }
  0x93   : > { %7855 = dma.done.wait (%p8393_p8), [#allocation12], 1040  }
  0x94   : > { %7857 = vsyncadd (%p8394_p9), [#allocation12], 4294966256  ;;  %p8395_p12 = pmov %p8388_p0 }
  0x95   : > { %p8396_p10 = pmov %p8388_p0 }
  0x96   : > { %7859 = dma.done.wait (%p8395_p12), [#allocation15], 16  }
  0x97   : > { %7861 = vsyncadd (%p8396_p10), [#allocation15], 4294967280  ;;  %s480_s29 = sand.u32 1, %s7876_s18   ;;  %p487_p1 = scmp.lt.s32.totalorder %s7988_s21, 7 }
  0x98   : > { %s8134_s13 = sshll.u32 %s480_s29, 3  ;;  %p8397_p3 = scmp.ne.s32.totalorder %s7988_s21, 0 }
  0x99   : > { %s488_s16 = scalar_select %p487_p1, %s7988_s21, 7 }
  0x9a   : > { %s482_s2 = scalar_lea.vmem [#allocation16], %s8134_s13  ;;  %495 = sbr.rel (%p8397_p3) target bundleno = 163 (0xa3), region = 92 }
  0x9b   : > { %s5649_s24 = sshll.u32 %s488_s16, 3 }
  0x9c   : > { %s8140_s19 = scalar_lea.vmem %s8347_s0, %s5649_s24 }
  0x9f   : > { %v496_v0 = vld [vmem:[#allocation2] sm:$0xff]  ;;  %v497_v1 = vld [vmem:[#allocation2 + $0x8] sm:$0xff]  ;;  %v498_v2 = vld [vmem:[#allocation2 + $0x10] sm:$0xff] }
  0xa0   : > { %499 = vst [vmem:[#allocation17] sm:$0xff] %v496_v0  ;;  %500 = vst [vmem:[#allocation17 + $0x8] sm:$0xff] %v497_v1  ;;  %v502_v3 = vld [vmem:[#allocation5] sm:$0xff]  ;;  %v503_v4 = vld [vmem:[#allocation5 + $0x8] sm:$0xff] }
  0xa1   : > { %501 = vst [vmem:[#allocation17 + $0x10] sm:$0xff] %v498_v2  ;;  %v504_v5 = vld [vmem:[#allocation5 + $0x10] sm:$0xff]  ;;  %505 = vst [vmem:[#allocation19] sm:$0xff] %v502_v3 }
  0xa2   : > { %506 = vst [vmem:[#allocation19 + $0x8] sm:$0xff] %v503_v4  ;;  %507 = vst [vmem:[#allocation19 + $0x10] sm:$0xff] %v504_v5 }
  0xa3 PF: > { %v6511_v6 = vld [vmem:[#allocation7 + $0xe4] ss:$16 sps:$4 sm:$0xff]   ;;  %v6513_v7 = vld [vmem:[#allocation7 + $0xe0] ss:$16 sps:$4 sm:$0xff]   ;;  %v6522_v11 = vld [vmem:[#allocation7 + $0xec] ss:$16 sps:$4 sm:$0xff]  }
  0xa4   : > { %927 = vmatprep.subr.bf16.mxu0 %v6511_v6  ;;  %v6514_v8 = vld [vmem:[#allocation7 + $0xc4] ss:$16 sps:$4 sm:$0xff]   ;;  %v6516_v9 = vld [vmem:[#allocation7 + $0xc0] ss:$16 sps:$4 sm:$0xff]   ;;  %v6525_v12 = vld [vmem:[#allocation7 + $0xe8] ss:$16 sps:$4 sm:$0xff]   ;;  %968 = vmatprep.subr.bf16.mxu1 %v6522_v11 }
  0xa5   : > { %928 = vmatpush1.bf16.msra.mxu0 %v6513_v7  ;;  %v6517_v10 = vld [vmem:[#allocation7 + $0xa4] ss:$16 sps:$4 sm:$0xff]   ;;  %v6519_v13 = vld [vmem:[#allocation7 + $0xa0] ss:$16 sps:$4 sm:$0xff]   ;;  %969 = vmatpush1.bf16.msra.mxu1 %v6525_v12  ;;  %v6528_v15 = vld [vmem:[#allocation7 + $0xcc] ss:$16 sps:$4 sm:$0xff]  }
  0xa6   : > { %929 = vmatprep.subr.bf16.mxu0 %v6514_v8  ;;  %v6520_v14 = vld [vmem:[#allocation7 + $0x84] ss:$16 sps:$4 sm:$0xff]   ;;  %v6531_v16 = vld [vmem:[#allocation7 + $0xc8] ss:$16 sps:$4 sm:$0xff]   ;;  %970 = vmatprep.subr.bf16.mxu1 %v6528_v15  ;;  %v6524_v17 = vld [vmem:[#allocation7 + $0x80] ss:$16 sps:$4 sm:$0xff]  }
  0xa7   : > { %v6526_v18 = vld [vmem:[#allocation7 + $0x64] ss:$16 sps:$4 sm:$0xff]   ;;  %v6534_v19 = vld [vmem:[#allocation7 + $0xac] ss:$16 sps:$4 sm:$0xff]   ;;  %v6537_v20 = vld [vmem:[#allocation7 + $0xa8] ss:$16 sps:$4 sm:$0xff]  }
  0xa8   : > { %v6540_v21 = vld [vmem:[#allocation7 + $0x8c] ss:$16 sps:$4 sm:$0xff]   ;;  %v6530_v22 = vld [vmem:[#allocation7 + $0x60] ss:$16 sps:$4 sm:$0xff]   ;;  %v6532_v23 = vld [vmem:[#allocation7 + $0x44] ss:$16 sps:$4 sm:$0xff]  }
  0xa9   : > { %930 = vmatpush1.bf16.msra.mxu0 %v6516_v9  ;;  %971 = vmatpush1.bf16.msra.mxu1 %v6531_v16  ;;  %v6543_v24 = vld [vmem:[#allocation7 + $0x88] ss:$16 sps:$4 sm:$0xff]   ;;  %v6546_v25 = vld [vmem:[#allocation7 + $0x6c] ss:$16 sps:$4 sm:$0xff]   ;;  %v6536_v26 = vld [vmem:[#allocation7 + $0x40] ss:$16 sps:$4 sm:$0xff]  }
  0xaa   : > { %931 = vmatprep.subr.bf16.mxu0 %v6517_v10  ;;  %972 = vmatprep.subr.bf16.mxu1 %v6534_v19  ;;  %v6538_v27 = vld [vmem:[#allocation7 + $0x24] ss:$16 sps:$4 sm:$0xff]   ;;  %v6549_v28 = vld [vmem:[#allocation7 + $0x68] ss:$16 sps:$4 sm:$0xff]   ;;  %v6552_v29 = vld [vmem:[#allocation7 + $0x4c] ss:$16 sps:$4 sm:$0xff]  }
  0xab   : > { %v6542_v30 = vld [vmem:[#allocation7 + $0x20] ss:$16 sps:$4 sm:$0xff]   ;;  %v6544_v31 = vld [vmem:[#allocation7 + $0x4] ss:$16 sps:$4 sm:$0xff]   ;;  %v6555_v32 = vld [vmem:[#allocation7 + $0x48] ss:$16 sps:$4 sm:$0xff]  }
  0xac   : > { %v6558_v33 = vld [vmem:[#allocation7 + $0x2c] ss:$16 sps:$4 sm:$0xff]   ;;  %v6548_v34 = vld [vmem:[#allocation7] ss:$16 sps:$4 sm:$0xff]   ;;  %v6550_v35 = vld [vmem:[#allocation7 + $0x1e4] ss:$16 sps:$4 sm:$0xff]  }
  0xad   : > { %932 = vmatpush1.bf16.msra.mxu0 %v6519_v13  ;;  %973 = vmatpush1.bf16.msra.mxu1 %v6537_v20  ;;  %v6561_v36 = vld [vmem:[#allocation7 + $0x28] ss:$16 sps:$4 sm:$0xff]   ;;  %v6564_v37 = vld [vmem:[#allocation7 + $0xc] ss:$16 sps:$4 sm:$0xff]   ;;  %v6554_v38 = vld [vmem:[#allocation7 + $0x1e0] ss:$16 sps:$4 sm:$0xff]  }
  0xae   : > { %933 = vmatprep.subr.bf16.mxu0 %v6520_v14  ;;  %974 = vmatprep.subr.bf16.mxu1 %v6540_v21  ;;  %v6556_v39 = vld [vmem:[#allocation7 + $0x1c4] ss:$16 sps:$4 sm:$0xff]   ;;  %v6567_v40 = vld [vmem:[#allocation7 + $0x8] ss:$16 sps:$4 sm:$0xff]   ;;  %v6570_v41 = vld [vmem:[#allocation7 + $0x1ec] ss:$16 sps:$4 sm:$0xff]  }
  0xaf   : > { %v6560_v42 = vld [vmem:[#allocation7 + $0x1c0] ss:$16 sps:$4 sm:$0xff]   ;;  %v6562_v43 = vld [vmem:[#allocation7 + $0x1a4] ss:$16 sps:$4 sm:$0xff]   ;;  %v6573_v44 = vld [vmem:[#allocation7 + $0x1e8] ss:$16 sps:$4 sm:$0xff]  }
  0xb0   : > { %v6576_v45 = vld [vmem:[#allocation7 + $0x1cc] ss:$16 sps:$4 sm:$0xff]   ;;  %v6566_v47 = vld [vmem:[#allocation7 + $0x1a0] ss:$16 sps:$4 sm:$0xff]   ;;  %v6568_v49 = vld [vmem:[#allocation7 + $0x184] ss:$16 sps:$4 sm:$0xff]  }
  0xb1   : > { %934 = vmatpush1.bf16.msra.mxu0 %v6524_v17  ;;  %975 = vmatpush1.bf16.msra.mxu1 %v6543_v24  ;;  %v508_v46 = vld [vmem:[#allocation17] sm:$0xff]  ;;  %v6572_v52 = vld [vmem:[#allocation7 + $0x180] ss:$16 sps:$4 sm:$0xff]   ;;  %v6574_v53 = vld [vmem:[#allocation7 + $0x164] ss:$16 sps:$4 sm:$0xff]   ;;  %vm7901_vm0 = vmmov 0  }
  0xb2   : > { %935 = vmatprep.subr.bf16.mxu0 %v6526_v18  ;;  %976 = vmatprep.subr.bf16.mxu1 %v6546_v25  ;;  %v520_v48 = vpack.c.bf16 %v508_v46, %v508_v46  ;;  %v6579_v50 = vld [vmem:[#allocation7 + $0x1c8] ss:$16 sps:$4 sm:$0xff]   ;;  %v6582_v51 = vld [vmem:[#allocation7 + $0x1ac] ss:$16 sps:$4 sm:$0xff]   ;;  %v6578_v56 = vld [vmem:[#allocation7 + $0x160] ss:$16 sps:$4 sm:$0xff]  }
  0xb3   : > { %v6585_v54 = vld [vmem:[#allocation7 + $0x1a8] ss:$16 sps:$4 sm:$0xff]   ;;  %v6588_v55 = vld [vmem:[#allocation7 + $0x18c] ss:$16 sps:$4 sm:$0xff]   ;;  %v6580_v57 = vld [vmem:[#allocation7 + $0x144] ss:$16 sps:$4 sm:$0xff]  }
  0xb4   : > { %959 = vmatprep.mubr.bf16.mxu0 %v520_v48  ;;  %1000 = vmatprep.mubr.bf16.mxu1 %v520_v48  ;;  %v6591_v58 = vld [vmem:[#allocation7 + $0x188] ss:$16 sps:$4 sm:$0xff]   ;;  %v6594_v59 = vld [vmem:[#allocation7 + $0x16c] ss:$16 sps:$4 sm:$0xff]   ;;  %v6584_v60 = vld [vmem:[#allocation7 + $0x140] ss:$16 sps:$4 sm:$0xff]  }
  0xb5   : > { %936 = vmatpush1.bf16.msra.mxu0 %v6530_v22  ;;  %977 = vmatpush1.bf16.msra.mxu1 %v6549_v28  ;;  %v6586_v61 = vld [vmem:[#allocation7 + $0x124] ss:$16 sps:$4 sm:$0xff]   ;;  %v6597_v62 = vld [vmem:[#allocation7 + $0x168] ss:$16 sps:$4 sm:$0xff]   ;;  %v6598_v63 = vld [vmem:[#allocation7 + $0x14c] ss:$16 sps:$4 sm:$0xff]  }
  0xb6   : > { %937 = vmatprep.subr.bf16.mxu0 %v6532_v23  ;;  %978 = vmatprep.subr.bf16.mxu1 %v6552_v29  ;;  %v6590_v0 = vld [vmem:[#allocation7 + $0x120] ss:$16 sps:$4 sm:$0xff]   ;;  %v6592_v1 = vld [vmem:[#allocation7 + $0x104] ss:$16 sps:$4 sm:$0xff]   ;;  %v6600_v2 = vld [vmem:[#allocation7 + $0x148] ss:$16 sps:$4 sm:$0xff]  }
  0xb7   : > { %v6601_v3 = vld [vmem:[#allocation7 + $0x12c] ss:$16 sps:$4 sm:$0xff]   ;;  %v6596_v4 = vld [vmem:[#allocation7 + $0x100] ss:$16 sps:$4 sm:$0xff]   ;;  %v6603_v6 = vld [vmem:[#allocation7 + $0x128] ss:$16 sps:$4 sm:$0xff]  }
  0xb8   : > { %v518_v5 = vld [vmem:[%s8140_s19] sm:$0xff]  ;;  %v6604_v8 = vld [vmem:[#allocation7 + $0x10c] ss:$16 sps:$4 sm:$0xff]   ;;  %v6606_v11 = vld [vmem:[#allocation7 + $0x108] ss:$16 sps:$4 sm:$0xff]   ;;  %s7902_s23 = smov [#allocation17]  }
  0xb9   : > { %938 = vmatpush1.bf16.msra.mxu0 %v6536_v26  ;;  %979 = vmatpush1.bf16.msra.mxu1 %v6555_v32  ;;  %v6609_v7 = vld [vmem:[#allocation7 + $0x2e4] ss:$16 sps:$4 sm:$0xff]   ;;  %v6607_v9 = vld [vmem:[#allocation7 + $0x2e0] ss:$16 sps:$4 sm:$0xff]   ;;  %v519_v10 = vpack.c.bf16 %v518_v5, %v518_v5  ;;  %v6612_v13 = vld [vmem:[#allocation7 + $0x2ec] ss:$16 sps:$4 sm:$0xff]  }
  0xba   : > { %939 = vmatprep.subr.bf16.mxu0 %v6538_v27  ;;  %980 = vmatprep.subr.bf16.mxu1 %v6558_v33  ;;  %v6615_v12 = vld [vmem:[#allocation7 + $0x2c4] ss:$16 sps:$4 sm:$0xff]   ;;  %v6613_v14 = vld [vmem:[#allocation7 + $0x2c0] ss:$16 sps:$4 sm:$0xff]   ;;  %v6610_v15 = vld [vmem:[#allocation7 + $0x2e8] ss:$16 sps:$4 sm:$0xff]  }
  0xbb   : > { %v6618_v16 = vld [vmem:[#allocation7 + $0x2cc] ss:$16 sps:$4 sm:$0xff]   ;;  %v6616_v17 = vld [vmem:[#allocation7 + $0x2c8] ss:$16 sps:$4 sm:$0xff]   ;;  %v6621_v18 = vld [vmem:[#allocation7 + $0x2a4] ss:$16 sps:$4 sm:$0xff]  }
  0xbc   : > { %v6624_v19 = vld [vmem:[#allocation7 + $0x2ac] ss:$16 sps:$4 sm:$0xff]   ;;  %v6619_v20 = vld [vmem:[#allocation7 + $0x2a0] ss:$16 sps:$4 sm:$0xff]   ;;  %v6622_v21 = vld [vmem:[#allocation7 + $0x2a8] ss:$16 sps:$4 sm:$0xff]  }
  0xbd   : > { %940 = vmatpush1.bf16.msra.mxu0 %v6542_v30  ;;  %981 = vmatpush1.bf16.msra.mxu1 %v6561_v36  ;;  %v6627_v22 = vld [vmem:[#allocation7 + $0x284] ss:$16 sps:$4 sm:$0xff]   ;;  %v6630_v23 = vld [vmem:[#allocation7 + $0x28c] ss:$16 sps:$4 sm:$0xff]   ;;  %v6625_v24 = vld [vmem:[#allocation7 + $0x280] ss:$16 sps:$4 sm:$0xff]  }
  0xbe   : > { %941 = vmatprep.subr.bf16.mxu0 %v6544_v31  ;;  %982 = vmatprep.subr.bf16.mxu1 %v6564_v37  ;;  %v6628_v25 = vld [vmem:[#allocation7 + $0x288] ss:$16 sps:$4 sm:$0xff]   ;;  %v6633_v26 = vld [vmem:[#allocation7 + $0x264] ss:$16 sps:$4 sm:$0xff]   ;;  %v6636_v27 = vld [vmem:[#allocation7 + $0x26c] ss:$16 sps:$4 sm:$0xff]  }
  0xbf   : > { %v6631_v28 = vld [vmem:[#allocation7 + $0x260] ss:$16 sps:$4 sm:$0xff]   ;;  %v6634_v29 = vld [vmem:[#allocation7 + $0x268] ss:$16 sps:$4 sm:$0xff]   ;;  %v6639_v30 = vld [vmem:[#allocation7 + $0x244] ss:$16 sps:$4 sm:$0xff]  }
  0xc0   : > { %v6642_v31 = vld [vmem:[#allocation7 + $0x24c] ss:$16 sps:$4 sm:$0xff]   ;;  %v6637_v32 = vld [vmem:[#allocation7 + $0x240] ss:$16 sps:$4 sm:$0xff]   ;;  %v6640_v33 = vld [vmem:[#allocation7 + $0x248] ss:$16 sps:$4 sm:$0xff]  }
  0xc1   : > { %942 = vmatpush1.bf16.msra.mxu0 %v6548_v34  ;;  %983 = vmatpush1.bf16.msra.mxu1 %v6567_v40  ;;  %v6645_v34 = vld [vmem:[#allocation7 + $0x224] ss:$16 sps:$4 sm:$0xff]   ;;  %v6643_v36 = vld [vmem:[#allocation7 + $0x220] ss:$16 sps:$4 sm:$0xff]   ;;  %v6646_v37 = vld [vmem:[#allocation7 + $0x228] ss:$16 sps:$4 sm:$0xff]  }
  0xc2   : > { %943 = vmatprep.subr.bf16.mxu0 %v6550_v35  ;;  %984 = vmatprep.subr.bf16.mxu1 %v6570_v41  ;;  %v6648_v35 = vld [vmem:[#allocation7 + $0x22c] ss:$16 sps:$4 sm:$0xff]   ;;  %v6649_v40 = vld [vmem:[#allocation7 + $0x200] ss:$16 sps:$4 sm:$0xff]   ;;  %v6652_v41 = vld [vmem:[#allocation7 + $0x208] ss:$16 sps:$4 sm:$0xff]  }
  0xc3   : > { %v6663_v46 = vld [vmem:[#allocation7 + $0x3c4] ss:$16 sps:$4 sm:$0xff]   ;;  %v6661_v48 = vld [vmem:[#allocation7 + $0x3c0] ss:$16 sps:$4 sm:$0xff]   ;;  %s5453_s12 = sshll.u32 %s7902_s23, 4  ;;  %p8398_p6 = scmp.eq.s32.totalorder %s7988_s21, 7  ;;  %s5454_s12 = int_to_ptr.vmem [resolvable:$true] %s5453_s12 }
  0xc4   : > { %v510_v5 = vld [vmem:[#allocation17 + $0x8] sm:$0xff]  ;;  %s7752_s26 = scalar_lea.vmem %s5454_s12, 384  ;;  %p7759_p7 = scmp.lt.s32.totalorder %s5454_s12, %s5454_s12 }
  0xc5   : > { %944 = vmatpush2.bf16.msra.mxu0 %v6554_v38  ;;  %985 = vmatpush2.bf16.msra.mxu1 %v6573_v44  ;;  %v6651_v38 = vld [vmem:[#allocation7 + $0x204] ss:$16 sps:$4 sm:$0xff]   ;;  %v6655_v44 = vld [vmem:[#allocation7 + $0x3e0] ss:$16 sps:$4 sm:$0xff]   ;;  %p7753_p5 = scmp.ne.s32.totalorder %s5454_s12, %s7752_s26  ;;  %p7760_p4 = scmp.lt.s32.totalorder %s7752_s26, %s7752_s26 }
  0xc6   : > { %945 = vmatprep.subr.bf16.mxu0 %v6556_v39  ;;  %986 = vmatprep.subr.bf16.mxu1 %v6576_v45  ;;  %v6654_v39 = vld [vmem:[#allocation7 + $0x20c] ss:$16 sps:$4 sm:$0xff]   ;;  %v6658_v45 = vld [vmem:[#allocation7 + $0x3e8] ss:$16 sps:$4 sm:$0xff]  }
  0xc7   : > { %p7754_p11 = pnand %p7753_p5, %p8398_p6  ;;  %p7761_p2 = por %p7760_p4, %p7759_p7 }
  0xc9   : > { %946 = vmatpush2.bf16.msra.mxu0 %v6560_v42  ;;  %987 = vmatpush2.bf16.msra.mxu1 %v6579_v50  ;;  %v6657_v42 = vld [vmem:[#allocation7 + $0x3e4] ss:$16 sps:$4 sm:$0xff]   ;;  %p7755_p0 = pneg %p7754_p11 }
  0xca   : > { %947 = vmatprep.subr.bf16.mxu0 %v6562_v43  ;;  %988 = vmatprep.subr.bf16.mxu1 %v6582_v51  ;;  %v6660_v43 = vld [vmem:[#allocation7 + $0x3ec] ss:$16 sps:$4 sm:$0xff]   ;;  %v6669_v50 = vld [vmem:[#allocation7 + $0x3a4] ss:$16 sps:$4 sm:$0xff]  }
  0xcb   : > { %v6672_v51 = vld [vmem:[#allocation7 + $0x3ac] ss:$16 sps:$4 sm:$0xff]   ;;  %p7762_p13 = pnand %p7761_p2, %p7755_p0 }
  0xcd   : > { %948 = vmatpush2.bf16.msra.mxu0 %v6566_v47  ;;  %989 = vmatpush2.bf16.msra.mxu1 %v6585_v54  ;;  %v6666_v47 = vld [vmem:[#allocation7 + $0x3cc] ss:$16 sps:$4 sm:$0xff]   ;;  %v6675_v54 = vld [vmem:[#allocation7 + $0x384] ss:$16 sps:$4 sm:$0xff]  }
  0xce   : > { %949 = vmatprep.subr.bf16.mxu0 %v6568_v49  ;;  %990 = vmatprep.subr.bf16.mxu1 %v6588_v55  ;;  %v6664_v49 = vld [vmem:[#allocation7 + $0x3c8] ss:$16 sps:$4 sm:$0xff]   ;;  %v6678_v55 = vld [vmem:[#allocation7 + $0x38c] ss:$16 sps:$4 sm:$0xff]  }
  0xd1   : > { %950 = vmatpush2.bf16.msra.mxu0 %v6572_v52  ;;  %991 = vmatpush2.bf16.msra.mxu1 %v6591_v58  ;;  %v6667_v52 = vld [vmem:[#allocation7 + $0x3a0] ss:$16 sps:$4 sm:$0xff]  }
  0xd2   : > { %951 = vmatprep.subr.bf16.mxu0 %v6574_v53  ;;  %992 = vmatprep.subr.bf16.mxu1 %v6594_v59  ;;  %v6670_v53 = vld [vmem:[#allocation7 + $0x3a8] ss:$16 sps:$4 sm:$0xff]   ;;  %v6679_v58 = vld [vmem:[#allocation7 + $0x360] ss:$16 sps:$4 sm:$0xff]   ;;  %v6681_v59 = vld [vmem:[#allocation7 + $0x364] ss:$16 sps:$4 sm:$0xff]  }
  0xd5   : > { %952 = vmatpush2.bf16.msra.mxu0 %v6578_v56  ;;  %993 = vmatpush2.bf16.msra.mxu1 %v6597_v62  ;;  %v6673_v56 = vld [vmem:[#allocation7 + $0x380] ss:$16 sps:$4 sm:$0xff]   ;;  %v6687_v62 = vld [vmem:[#allocation7 + $0x344] ss:$16 sps:$4 sm:$0xff]  }
  0xd6   : > { %953 = vmatprep.subr.bf16.mxu0 %v6580_v57  ;;  %994 = vmatprep.subr.bf16.mxu1 %v6598_v63  ;;  %v6676_v57 = vld [vmem:[#allocation7 + $0x388] ss:$16 sps:$4 sm:$0xff]   ;;  %v6690_v63 = vld [vmem:[#allocation7 + $0x34c] ss:$16 sps:$4 sm:$0xff]  }
  0xd9   : > { %954 = vmatpush2.bf16.msra.mxu0 %v6584_v60  ;;  %995 = vmatpush2.bf16.msra.mxu1 %v6600_v2  ;;  %v6682_v60 = vld [vmem:[#allocation7 + $0x368] ss:$16 sps:$4 sm:$0xff]   ;;  %v6693_v2 = vld [vmem:[#allocation7 + $0x324] ss:$16 sps:$4 sm:$0xff]  }
  0xda   : > { %955 = vmatprep.subr.bf16.mxu0 %v6586_v61  ;;  %996 = vmatprep.subr.bf16.mxu1 %v6601_v3  ;;  %v6684_v61 = vld [vmem:[#allocation7 + $0x36c] ss:$16 sps:$4 sm:$0xff]   ;;  %v6691_v3 = vld [vmem:[#allocation7 + $0x320] ss:$16 sps:$4 sm:$0xff]  }
  0xdd   : > { %956 = vmatpush2.bf16.msra.mxu0 %v6590_v0  ;;  %997 = vmatpush2.bf16.msra.mxu1 %v6603_v6  ;;  %v6685_v0 = vld [vmem:[#allocation7 + $0x340] ss:$16 sps:$4 sm:$0xff]   ;;  %v6694_v6 = vld [vmem:[#allocation7 + $0x328] ss:$16 sps:$4 sm:$0xff]  }
  0xde   : > { %957 = vmatprep.subr.bf16.mxu0 %v6592_v1  ;;  %998 = vmatprep.subr.bf16.mxu1 %v6604_v8  ;;  %v6688_v1 = vld [vmem:[#allocation7 + $0x348] ss:$16 sps:$4 sm:$0xff]   ;;  %v1034_v8 = vpack.c.bf16 %v510_v5, %v510_v5  ;;  %v6721_v5 = vld [vmem:[#allocation7 + $0x480] ss:$16 sps:$4 sm:$0xff]  }
  0xe1   : > { %958 = vmatpush2.bf16.msra.mxu0 %v6596_v4  ;;  %999 = vmatpush2.bf16.msra.mxu1 %v6606_v11  ;;  %v6696_v4 = vld [vmem:[#allocation7 + $0x32c] ss:$16 sps:$4 sm:$0xff]   ;;  %v6700_v11 = vld [vmem:[#allocation7 + $0x308] ss:$16 sps:$4 sm:$0xff]  }
  0xe2   : > { %1443 = vmatprep.subr.bf16.mxu0 %v6609_v7  ;;  %1484 = vmatprep.subr.bf16.mxu1 %v6612_v13  ;;  %v6699_v7 = vld [vmem:[#allocation7 + $0x304] ss:$16 sps:$4 sm:$0xff]   ;;  %v6708_v13 = vld [vmem:[#allocation7 + $0x4ec] ss:$16 sps:$4 sm:$0xff]  }
  0xe4   : > { %960 = vmatmul.mubr.bf16.vlgmr.msra.gmra.mxu0 %v519_v10  ;;  %1001 = vmatmul.mubr.bf16.vlgmr.msra.gmra.mxu1 %v519_v10  ;;  %v6697_v10 = vld [vmem:[#allocation7 + $0x300] ss:$16 sps:$4 sm:$0xff]  }
  0xe5   : > { %1444 = vmatpush1.bf16.msra.mxu0 %v6607_v9  ;;  %1485 = vmatpush1.bf16.msra.mxu1 %v6610_v15  ;;  %v6702_v9 = vld [vmem:[#allocation7 + $0x30c] ss:$16 sps:$4 sm:$0xff]  }
  0xe6   : > { %1445 = vmatprep.subr.bf16.mxu0 %v6615_v12  ;;  %1486 = vmatprep.subr.bf16.mxu1 %v6618_v16  ;;  %v6705_v12 = vld [vmem:[#allocation7 + $0x4e4] ss:$16 sps:$4 sm:$0xff]  }
  0xe7   : > { %1475 = vmatprep.mubr.bf16.mxu0 %v1034_v8  ;;  %1516 = vmatprep.mubr.bf16.mxu1 %v1034_v8  ;;  %v6732_v8 = vld [vmem:[#allocation7 + $0x46c] ss:$16 sps:$4 sm:$0xff]  }
  0xe9   : > { %1446 = vmatpush1.bf16.msra.mxu0 %v6613_v14  ;;  %1487 = vmatpush1.bf16.msra.mxu1 %v6616_v17  ;;  %v587_v14 = vlaneseq  ;;  %v585_v17 = vld [vmem:[#allocation8] sm:$0xf] }
  0xea   : > { %1447 = vmatprep.subr.bf16.mxu0 %v6621_v18  ;;  %1488 = vmatprep.subr.bf16.mxu1 %v6624_v19 }
  0xeb   : > { %v588_v15 = vshrl.u32 %v587_v14, 7  ;;  %v6736_v14 = vld [vmem:[#allocation7 + $0x448] ss:$16 sps:$4 sm:$0xff]  }
  0xed   : > { %1448 = vmatpush1.bf16.msra.mxu0 %v6619_v20  ;;  %1489 = vmatpush1.bf16.msra.mxu1 %v6622_v21  ;;  %v8146_v16 = vsub.s32 0, %v588_v15  ;;  %v8148_v18 = vsub.s32 1, %v588_v15 }
  0xee   : > { %1449 = vmatprep.subr.bf16.mxu0 %v6627_v22  ;;  %1490 = vmatprep.subr.bf16.mxu1 %v6630_v23 }
  0xef   : > { %v590_v19 = vrot.slane %v585_v17, %v8146_v16  ;;  %v594_v20 = vrot.slane %v585_v17, %v8148_v18 }
  0xf1   : > { %1450 = vmatpush1.bf16.msra.mxu0 %v6625_v24  ;;  %1491 = vmatpush1.bf16.msra.mxu1 %v6628_v25 }
  0xf2   : > { %1451 = vmatprep.subr.bf16.mxu0 %v6633_v26  ;;  %1492 = vmatprep.subr.bf16.mxu1 %v6636_v27  ;;  %v8152_v26 = vsub.s32 2, %v588_v15 }
  0xf5   : > { %1452 = vmatpush1.bf16.msra.mxu0 %v6631_v28  ;;  %1493 = vmatpush1.bf16.msra.mxu1 %v6634_v29 }
  0xf6   : > { %1453 = vmatprep.subr.bf16.mxu0 %v6639_v30  ;;  %1494 = vmatprep.subr.bf16.mxu1 %v6642_v31  ;;  %v598_v31 = vrot.slane %v585_v17, %v8152_v26 }
  0xf9   : > { %1454 = vmatpush1.bf16.msra.mxu0 %v6637_v32  ;;  %1495 = vmatpush1.bf16.msra.mxu1 %v6640_v33  ;;  %v8155_v33 = vsub.s32 3, %v588_v15  ;;  %v6741_v15 = vld [vmem:[#allocation7 + $0x424] ss:$16 sps:$4 sm:$0xff]  }
  0xfa   : > { %1455 = vmatprep.subr.bf16.mxu0 %v6645_v34  ;;  %1496 = vmatprep.subr.bf16.mxu1 %v6648_v35 }
  0xfd   : > { %1456 = vmatpush1.bf16.msra.mxu0 %v6643_v36  ;;  %1497 = vmatpush1.bf16.msra.mxu1 %v6646_v37  ;;  %v602_v37 = vrot.slane %v585_v17, %v8155_v33  ;;  %v6744_v17 = vld [vmem:[#allocation7 + $0x42c] ss:$16 sps:$4 sm:$0xff]  }
  0xfe   : > { %1457 = vmatprep.subr.bf16.mxu0 %v6651_v38  ;;  %1498 = vmatprep.subr.bf16.mxu1 %v6654_v39 }
 0x101   : > { %1458 = vmatpush1.bf16.msra.mxu0 %v6649_v40  ;;  %1499 = vmatpush1.bf16.msra.mxu1 %v6652_v41 }
 0x102   : > { %1459 = vmatprep.subr.bf16.mxu0 %v6657_v42  ;;  %1500 = vmatprep.subr.bf16.mxu1 %v6660_v43 }
 0x105   : > { %1460 = vmatpush2.bf16.msra.mxu0 %v6655_v44  ;;  %1501 = vmatpush2.bf16.msra.mxu1 %v6658_v45 }
 0x106   : > { %1461 = vmatprep.subr.bf16.mxu0 %v6663_v46  ;;  %1502 = vmatprep.subr.bf16.mxu1 %v6666_v47  ;;  %v513_v47 = vld [vmem:[#allocation19] sm:$0xff] }
 0x109   : > { %1462 = vmatpush2.bf16.msra.mxu0 %v6661_v48  ;;  %1503 = vmatpush2.bf16.msra.mxu1 %v6664_v49 }
 0x10a   : > { %1463 = vmatprep.subr.bf16.mxu0 %v6669_v50  ;;  %1504 = vmatprep.subr.bf16.mxu1 %v6672_v51 }
 0x10d   : > { %1464 = vmatpush2.bf16.msra.mxu0 %v6667_v52  ;;  %1505 = vmatpush2.bf16.msra.mxu1 %v6670_v53 }
 0x10e   : > { %1465 = vmatprep.subr.bf16.mxu0 %v6675_v54  ;;  %1506 = vmatprep.subr.bf16.mxu1 %v6678_v55 }
 0x111   : > { %1466 = vmatpush2.bf16.msra.mxu0 %v6673_v56  ;;  %1507 = vmatpush2.bf16.msra.mxu1 %v6676_v57  ;;  %v6703_v56 = vld [vmem:[#allocation7 + $0x4e0] ss:$16 sps:$4 sm:$0xff]   ;;  %v6706_v57 = vld [vmem:[#allocation7 + $0x4e8] ss:$16 sps:$4 sm:$0xff]  }
 0x112   : > { %1467 = vmatprep.subr.bf16.mxu0 %v6681_v59  ;;  %1508 = vmatprep.subr.bf16.mxu1 %v6684_v61  ;;  %v6711_v59 = vld [vmem:[#allocation7 + $0x4c4] ss:$16 sps:$4 sm:$0xff]   ;;  %v6709_v61 = vld [vmem:[#allocation7 + $0x4c0] ss:$16 sps:$4 sm:$0xff]  }
 0x115   : > { %1468 = vmatpush2.bf16.msra.mxu0 %v6679_v58  ;;  %1509 = vmatpush2.bf16.msra.mxu1 %v6682_v60  ;;  %v6714_v60 = vld [vmem:[#allocation7 + $0x4cc] ss:$16 sps:$4 sm:$0xff]  }
 0x116   : > { %1469 = vmatprep.subr.bf16.mxu0 %v6687_v62  ;;  %1510 = vmatprep.subr.bf16.mxu1 %v6690_v63  ;;  %v6712_v62 = vld [vmem:[#allocation7 + $0x4c8] ss:$16 sps:$4 sm:$0xff]   ;;  %v6717_v63 = vld [vmem:[#allocation7 + $0x4a4] ss:$16 sps:$4 sm:$0xff]  }
 0x119   : > { %1470 = vmatpush2.bf16.msra.mxu0 %v6685_v0  ;;  %1511 = vmatpush2.bf16.msra.mxu1 %v6688_v1  ;;  %v6720_v0 = vld [vmem:[#allocation7 + $0x4ac] ss:$16 sps:$4 sm:$0xff]   ;;  %v6715_v1 = vld [vmem:[#allocation7 + $0x4a0] ss:$16 sps:$4 sm:$0xff]  }
 0x11a   : > { %1471 = vmatprep.subr.bf16.mxu0 %v6693_v2  ;;  %1512 = vmatprep.subr.bf16.mxu1 %v6696_v4  ;;  %v6718_v2 = vld [vmem:[#allocation7 + $0x4a8] ss:$16 sps:$4 sm:$0xff]   ;;  %v6726_v4 = vld [vmem:[#allocation7 + $0x48c] ss:$16 sps:$4 sm:$0xff]  }
 0x11d   : > { %1472 = vmatpush2.bf16.msra.mxu0 %v6691_v3  ;;  %1513 = vmatpush2.bf16.msra.mxu1 %v6694_v6  ;;  %v6723_v3 = vld [vmem:[#allocation7 + $0x484] ss:$16 sps:$4 sm:$0xff]   ;;  %v6724_v6 = vld [vmem:[#allocation7 + $0x488] ss:$16 sps:$4 sm:$0xff]  }
 0x11e   : > { %1473 = vmatprep.subr.bf16.mxu0 %v6699_v7  ;;  %1514 = vmatprep.subr.bf16.mxu1 %v6702_v9  ;;  %v6729_v7 = vld [vmem:[#allocation7 + $0x464] ss:$16 sps:$4 sm:$0xff]   ;;  %v6727_v9 = vld [vmem:[#allocation7 + $0x460] ss:$16 sps:$4 sm:$0xff]  }
 0x121   : > { %1474 = vmatpush2.bf16.msra.mxu0 %v6697_v10  ;;  %1515 = vmatpush2.bf16.msra.mxu1 %v6700_v11  ;;  %v6730_v10 = vld [vmem:[#allocation7 + $0x468] ss:$16 sps:$4 sm:$0xff]   ;;  %v6735_v11 = vld [vmem:[#allocation7 + $0x444] ss:$16 sps:$4 sm:$0xff]  }
 0x122   : > { %1959 = vmatprep.subr.bf16.mxu0 %v6705_v12  ;;  %2000 = vmatprep.subr.bf16.mxu1 %v6708_v13  ;;  %v6738_v12 = vld [vmem:[#allocation7 + $0x44c] ss:$16 sps:$4 sm:$0xff]   ;;  %v6733_v13 = vld [vmem:[#allocation7 + $0x440] ss:$16 sps:$4 sm:$0xff]  }
 0x1a4   : > { %v961_v21 = vpop.f32.mrf.mxu0  ;;  %v1002_v29 = vpop.f32.mrf.mxu1 }
 0x1a5   : > { %v962_v22 = vadd.f32 %v961_v21, %v590_v19  ;;  %v1003_v35 = vadd.f32 %v1002_v29, %v598_v31  ;;  %v6739_v19 = vld [vmem:[#allocation7 + $0x420] ss:$16 sps:$4 sm:$0xff]   ;;  %v6747_v21 = vld [vmem:[#allocation7 + $0x404] ss:$16 sps:$4 sm:$0xff]   ;;  %v6754_v29 = vld [vmem:[#allocation7 + $0x5e8] ss:$16 sps:$4 sm:$0xff]  }
 0x1a6   : > { %v963_v23 = vpop.f32.mrf.mxu0  ;;  %v1004_v32 = vpop.f32.mrf.mxu1  ;;  %v6762_v31 = vld [vmem:[#allocation7 + $0x5cc] ss:$16 sps:$4 sm:$0xff]  }
 0x1a7   : > { %v5715_v24 = vmul.f32 -1.442695, %v962_v22  ;;  %v964_v25 = vadd.f32 %v963_v23, %v594_v20  ;;  %v5717_v38 = vmul.f32 -1.442695, %v1003_v35  ;;  %v1005_v39 = vadd.f32 %v1004_v32, %v602_v37  ;;  %v6742_v20 = vld [vmem:[#allocation7 + $0x428] ss:$16 sps:$4 sm:$0xff]  }
 0x1a8   : > { %v965_v27 = vpop.f32.mrf.mxu0  ;;  %v1006_v34 = vpop.f32.mrf.mxu1  ;;  %v6750_v22 = vld [vmem:[#allocation7 + $0x40c] ss:$16 sps:$4 sm:$0xff]   ;;  %v6745_v23 = vld [vmem:[#allocation7 + $0x400] ss:$16 sps:$4 sm:$0xff]   ;;  %v6765_v35 = vld [vmem:[#allocation7 + $0x5a4] ss:$16 sps:$4 sm:$0xff]  }
 0x1a9   : > { %7391 = vpow2.f32 %v5715_v24  ;;  %v5716_v28 = vmul.f32 -1.442695, %v964_v25  ;;  %v6748_v24 = vld [vmem:[#allocation7 + $0x408] ss:$16 sps:$4 sm:$0xff]   ;;  %v6753_v25 = vld [vmem:[#allocation7 + $0x5e4] ss:$16 sps:$4 sm:$0xff]  }
 0x1aa   : > { %v966_v30 = vpop.f32.mrf.mxu0  ;;  %v1007_v36 = vpop.f32.mrf.mxu1  ;;  %v6756_v27 = vld [vmem:[#allocation7 + $0x5ec] ss:$16 sps:$4 sm:$0xff]   ;;  %v6757_v32 = vld [vmem:[#allocation7 + $0x5c0] ss:$16 sps:$4 sm:$0xff]   ;;  %v6760_v34 = vld [vmem:[#allocation7 + $0x5c8] ss:$16 sps:$4 sm:$0xff]  }
 0x1ab   : > { %7393 = vpow2.f32 %v5716_v28  ;;  %v6751_v28 = vld [vmem:[#allocation7 + $0x5e0] ss:$16 sps:$4 sm:$0xff]   ;;  %v6759_v30 = vld [vmem:[#allocation7 + $0x5c4] ss:$16 sps:$4 sm:$0xff]   ;;  %v6768_v36 = vld [vmem:[#allocation7 + $0x5ac] ss:$16 sps:$4 sm:$0xff]  }
 0x1ac   : > { %7395 = vpow2.f32 %v5717_v38  ;;  %v6763_v37 = vld [vmem:[#allocation7 + $0x5a0] ss:$16 sps:$4 sm:$0xff]   ;;  %v6766_v38 = vld [vmem:[#allocation7 + $0x5a8] ss:$16 sps:$4 sm:$0xff]  }
 0x1ad   : > { %7397 = vtanh.f32 %v1005_v39  ;;  %v6771_v39 = vld [vmem:[#allocation7 + $0x584] ss:$16 sps:$4 sm:$0xff]  }
 0x1b6   : > { %v7392_v40 = vpop.eup %7391 }
 0x1b7   : > { %v1018_v41 = vadd.f32 1.0, %v7392_v40  ;;  %v6774_v40 = vld [vmem:[#allocation7 + $0x58c] ss:$16 sps:$4 sm:$0xff]  }
 0x1b8   : > { %v7394_v42 = vpop.eup %7393 }
 0x1b9   : > { %7399 = vrcp.f32 %v1018_v41  ;;  %v1019_v43 = vadd.f32 1.0, %v7394_v42  ;;  %v7396_v44 = vpop.eup %7395  ;;  %v6769_v41 = vld [vmem:[#allocation7 + $0x580] ss:$16 sps:$4 sm:$0xff]   ;;  %v6772_v42 = vld [vmem:[#allocation7 + $0x588] ss:$16 sps:$4 sm:$0xff]  }
 0x1ba   : > { %v7398_v45 = vpop.eup %7397  ;;  %v1020_v49 = vadd.f32 1.0, %v7396_v44  ;;  %v6780_v44 = vld [vmem:[#allocation7 + $0x56c] ss:$16 sps:$4 sm:$0xff]  }
 0x1bb   : > { %7401 = vrcp.f32 %v1019_v43  ;;  %v6777_v43 = vld [vmem:[#allocation7 + $0x564] ss:$16 sps:$4 sm:$0xff]  }
 0x1bc   : > { %7403 = vrcp.f32 %v1020_v49  ;;  %v6781_v49 = vld [vmem:[#allocation7 + $0x540] ss:$16 sps:$4 sm:$0xff]  }
 0x1c6   : > { %v7400_v46 = vpop.eup %7399 }
 0x1c7   : > { %v1029_v51 = vmul.f32 %v7400_v46, %v7398_v45  ;;  %v6775_v45 = vld [vmem:[#allocation7 + $0x560] ss:$16 sps:$4 sm:$0xff]   ;;  %v6778_v46 = vld [vmem:[#allocation7 + $0x568] ss:$16 sps:$4 sm:$0xff]  }
 0x1c8   : > { %v7402_v48 = vpop.eup %7401 }
 0x1c9   : > { %v1028_v50 = vmul.f32 %v7402_v48, %v513_v47  ;;  %v7404_v53 = vpop.eup %7403  ;;  %v6783_v47 = vld [vmem:[#allocation7 + $0x544] ss:$16 sps:$4 sm:$0xff]   ;;  %v6786_v48 = vld [vmem:[#allocation7 + $0x54c] ss:$16 sps:$4 sm:$0xff]  }
 0x1cb   : > { %v8158_v52 = vadd.f32 %v1029_v51, %v1028_v50  ;;  %v6784_v50 = vld [vmem:[#allocation7 + $0x548] ss:$16 sps:$4 sm:$0xff]  }
 0x1cc   : > { %v512_v51 = vld [vmem:[#allocation17 + $0x10] sm:$0xff] }
 0x1cd   : > { %7405 = vtanh.f32 %v8158_v52 }
 0x1da   : > { %v7406_v54 = vpop.eup %7405 }
 0x1db   : > { %v1032_v55 = vmul.f32 %v7406_v54, %v7404_v53  ;;  %v6789_v53 = vld [vmem:[#allocation7 + $0x524] ss:$16 sps:$4 sm:$0xff]   ;;  %v6792_v54 = vld [vmem:[#allocation7 + $0x52c] ss:$16 sps:$4 sm:$0xff]  }
 0x1dd   : > { %v8161_v58 = vpack.c.bf16 %v1032_v55, %v1032_v55  ;;  %v1550_v55 = vpack.c.bf16 %v512_v51, %v512_v51  ;;  %v6812_v51 = vld [vmem:[#allocation7 + $0x6ec] ss:$16 sps:$4 sm:$0xff]  }
 0x1df   : > { %1476 = vmatmul.mubr.bf16.vlgmr.msra.gmra.mxu0 %v8161_v58  ;;  %1517 = vmatmul.mubr.bf16.vlgmr.msra.gmra.mxu1 %v8161_v58 }
 0x1e0   : > { %1960 = vmatpush1.bf16.msra.mxu0 %v6703_v56  ;;  %2001 = vmatpush1.bf16.msra.mxu1 %v6706_v57  ;;  %v6787_v56 = vld [vmem:[#allocation7 + $0x520] ss:$16 sps:$4 sm:$0xff]   ;;  %v6790_v57 = vld [vmem:[#allocation7 + $0x528] ss:$16 sps:$4 sm:$0xff]  }
 0x1e1   : > { %1961 = vmatprep.subr.bf16.mxu0 %v6711_v59  ;;  %2002 = vmatprep.subr.bf16.mxu1 %v6714_v60  ;;  %v6795_v59 = vld [vmem:[#allocation7 + $0x504] ss:$16 sps:$4 sm:$0xff]   ;;  %v6798_v60 = vld [vmem:[#allocation7 + $0x50c] ss:$16 sps:$4 sm:$0xff]  }
 0x1e2   : > { %1991 = vmatprep.mubr.bf16.mxu0 %v1550_v55  ;;  %2032 = vmatprep.mubr.bf16.mxu1 %v1550_v55  ;;  %v6821_v55 = vld [vmem:[#allocation7 + $0x6a4] ss:$16 sps:$4 sm:$0xff]  }
 0x1e4   : > { %1962 = vmatpush1.bf16.msra.mxu0 %v6709_v61  ;;  %2003 = vmatpush1.bf16.msra.mxu1 %v6712_v62  ;;  %v6793_v61 = vld [vmem:[#allocation7 + $0x500] ss:$16 sps:$4 sm:$0xff]   ;;  %v6796_v62 = vld [vmem:[#allocation7 + $0x508] ss:$16 sps:$4 sm:$0xff]  }
 0x1e5   : > { %1963 = vmatprep.subr.bf16.mxu0 %v6717_v63  ;;  %2004 = vmatprep.subr.bf16.mxu1 %v6720_v0  ;;  %v1101_v63 = vld [vmem:[#allocation8 + $0x4] sm:$0xf] }
 0x1e6   : > { %v1106_v0 = vrot.slane %v1101_v63, %v8146_v16 }
 0x1e8   : > { %1964 = vmatpush1.bf16.msra.mxu0 %v6715_v1  ;;  %2005 = vmatpush1.bf16.msra.mxu1 %v6718_v2  ;;  %v1110_v1 = vrot.slane %v1101_v63, %v8148_v18 }
 0x1e9   : > { %1965 = vmatprep.subr.bf16.mxu0 %v6723_v3  ;;  %2006 = vmatprep.subr.bf16.mxu1 %v6726_v4 }
 0x1ec   : > { %1966 = vmatpush1.bf16.msra.mxu0 %v6721_v5  ;;  %2007 = vmatpush1.bf16.msra.mxu1 %v6724_v6 }
 0x1ed   : > { %1967 = vmatprep.subr.bf16.mxu0 %v6729_v7  ;;  %2008 = vmatprep.subr.bf16.mxu1 %v6732_v8 }
 0x1f0   : > { %1968 = vmatpush1.bf16.msra.mxu0 %v6727_v9  ;;  %2009 = vmatpush1.bf16.msra.mxu1 %v6730_v10 }
 0x1f1   : > { %1969 = vmatprep.subr.bf16.mxu0 %v6735_v11  ;;  %2010 = vmatprep.subr.bf16.mxu1 %v6738_v12 }
 0x1f4   : > { %1970 = vmatpush1.bf16.msra.mxu0 %v6733_v13  ;;  %2011 = vmatpush1.bf16.msra.mxu1 %v6736_v14  ;;  %v1114_v14 = vrot.slane %v1101_v63, %v8152_v26 }
 0x1f5   : > { %1971 = vmatprep.subr.bf16.mxu0 %v6741_v15  ;;  %2012 = vmatprep.subr.bf16.mxu1 %v6744_v17  ;;  %v1118_v17 = vrot.slane %v1101_v63, %v8155_v33  ;;  %v6837_v63 = vld [vmem:[#allocation7 + $0x640] ss:$16 sps:$4 sm:$0xff]  }
 0x1f8   : > { %1972 = vmatpush1.bf16.msra.mxu0 %v6739_v19  ;;  %2013 = vmatpush1.bf16.msra.mxu1 %v6742_v20 }
 0x1f9   : > { %1973 = vmatprep.subr.bf16.mxu0 %v6747_v21  ;;  %2014 = vmatprep.subr.bf16.mxu1 %v6750_v22 }
 0x1fc   : > { %1974 = vmatpush1.bf16.msra.mxu0 %v6745_v23  ;;  %2015 = vmatpush1.bf16.msra.mxu1 %v6748_v24 }
 0x1fd   : > { %1975 = vmatprep.subr.bf16.mxu0 %v6753_v25  ;;  %2016 = vmatprep.subr.bf16.mxu1 %v6756_v27 }
 0x200   : > { %1976 = vmatpush2.bf16.msra.mxu0 %v6751_v28  ;;  %2017 = vmatpush2.bf16.msra.mxu1 %v6754_v29  ;;  %v515_v28 = vld [vmem:[#allocation19 + $0x8] sm:$0xff] }
 0x201   : > { %1977 = vmatprep.subr.bf16.mxu0 %v6759_v30  ;;  %2018 = vmatprep.subr.bf16.mxu1 %v6762_v31 }
 0x204   : > { %1978 = vmatpush2.bf16.msra.mxu0 %v6757_v32  ;;  %2019 = vmatpush2.bf16.msra.mxu1 %v6760_v34 }
 0x205   : > { %1979 = vmatprep.subr.bf16.mxu0 %v6765_v35  ;;  %2020 = vmatprep.subr.bf16.mxu1 %v6768_v36 }
 0x208   : > { %1980 = vmatpush2.bf16.msra.mxu0 %v6763_v37  ;;  %2021 = vmatpush2.bf16.msra.mxu1 %v6766_v38 }
 0x209   : > { %1981 = vmatprep.subr.bf16.mxu0 %v6771_v39  ;;  %2022 = vmatprep.subr.bf16.mxu1 %v6774_v40  ;;  %v6799_v40 = vld [vmem:[#allocation10 + $0x38] sm:$0xff]  }
 0x20c   : > { %1982 = vmatpush2.bf16.msra.mxu0 %v6769_v41  ;;  %2023 = vmatpush2.bf16.msra.mxu1 %v6772_v42  ;;  %v7900_v41 = vmov 0.0   ;;  %v6800_v42 = vld [vmem:[#allocation10 + $0x30] sm:$0xff]  }
 0x20d   : > { %1983 = vmatprep.subr.bf16.mxu0 %v6777_v43  ;;  %2024 = vmatprep.subr.bf16.mxu1 %v6780_v44  ;;  %v6801_v43 = vld [vmem:[#allocation10 + $0x28] sm:$0xff]   ;;  %v6802_v44 = vld [vmem:[#allocation10 + $0x20] sm:$0xff]  }
 0x210   : > { %1984 = vmatpush2.bf16.msra.mxu0 %v6775_v45  ;;  %2025 = vmatpush2.bf16.msra.mxu1 %v6778_v46  ;;  %v6803_v45 = vld [vmem:[#allocation10 + $0x18] sm:$0xff]   ;;  %v6804_v46 = vld [vmem:[#allocation10 + $0x10] sm:$0xff]  }
 0x211   : > { %1985 = vmatprep.subr.bf16.mxu0 %v6783_v47  ;;  %2026 = vmatprep.subr.bf16.mxu1 %v6786_v48  ;;  %v6805_v47 = vld [vmem:[#allocation10 + $0x8] sm:$0xff]   ;;  %v6806_v48 = vld [vmem:[#allocation10] sm:$0xff]  }
 0x214   : > { %1986 = vmatpush2.bf16.msra.mxu0 %v6781_v49  ;;  %2027 = vmatpush2.bf16.msra.mxu1 %v6784_v50  ;;  %v6807_v49 = vld [vmem:[#allocation7 + $0x6e0] ss:$16 sps:$4 sm:$0xff]   ;;  %v6809_v50 = vld [vmem:[#allocation7 + $0x6e4] ss:$16 sps:$4 sm:$0xff]  }
 0x215   : > { %1987 = vmatprep.subr.bf16.mxu0 %v6789_v53  ;;  %2028 = vmatprep.subr.bf16.mxu1 %v6792_v54  ;;  %v6815_v53 = vld [vmem:[#allocation7 + $0x6c4] ss:$16 sps:$4 sm:$0xff]   ;;  %v6813_v54 = vld [vmem:[#allocation7 + $0x6c0] ss:$16 sps:$4 sm:$0xff]  }
 0x218   : > { %1988 = vmatpush2.bf16.msra.mxu0 %v6787_v56  ;;  %2029 = vmatpush2.bf16.msra.mxu1 %v6790_v57  ;;  %v6819_v56 = vld [vmem:[#allocation7 + $0x6a0] ss:$16 sps:$4 sm:$0xff]   ;;  %v6827_v57 = vld [vmem:[#allocation7 + $0x684] ss:$16 sps:$4 sm:$0xff]  }
 0x219   : > { %1989 = vmatprep.subr.bf16.mxu0 %v6795_v59  ;;  %2030 = vmatprep.subr.bf16.mxu1 %v6798_v60  ;;  %v6825_v59 = vld [vmem:[#allocation7 + $0x680] ss:$16 sps:$4 sm:$0xff]   ;;  %v6833_v60 = vld [vmem:[#allocation7 + $0x664] ss:$16 sps:$4 sm:$0xff]  }
 0x21c   : > { %1990 = vmatpush2.bf16.msra.mxu0 %v6793_v61  ;;  %2031 = vmatpush2.bf16.msra.mxu1 %v6796_v62  ;;  %v6831_v61 = vld [vmem:[#allocation7 + $0x660] ss:$16 sps:$4 sm:$0xff]   ;;  %v6839_v62 = vld [vmem:[#allocation7 + $0x644] ss:$16 sps:$4 sm:$0xff]  }
 0x21d   : > { %6307 = vmatprep.subr.bf16.mxu0 %v7900_v41  ;;  %2586 = vmatprep.subr.bf16.mxu1 %v6809_v50 }
 0x29f   : > { %v1477_v2 = vpop.f32.mrf.mxu0  ;;  %v1518_v3 = vpop.f32.mrf.mxu1 }
 0x2a0   : > { %v1478_v4 = vadd.f32 %v1477_v2, %v1106_v0  ;;  %v1519_v15 = vadd.f32 %v1518_v3, %v1114_v14  ;;  %v6845_v0 = vld [vmem:[#allocation7 + $0x624] ss:$16 sps:$4 sm:$0xff]   ;;  %v6849_v3 = vld [vmem:[#allocation7 + $0x600] ss:$16 sps:$4 sm:$0xff]  }
 0x2a1   : > { %v1479_v5 = vpop.f32.mrf.mxu0  ;;  %v1520_v6 = vpop.f32.mrf.mxu1  ;;  %v6851_v2 = vld [vmem:[#allocation7 + $0x604] ss:$16 sps:$4 sm:$0xff]  }
 0x2a2   : > { %v5782_v7 = vmul.f32 -1.442695, %v1478_v4  ;;  %v1480_v8 = vadd.f32 %v1479_v5, %v1110_v1  ;;  %v5784_v19 = vmul.f32 -1.442695, %v1519_v15  ;;  %v1521_v21 = vadd.f32 %v1520_v6, %v1118_v17  ;;  %v6843_v1 = vld [vmem:[#allocation7 + $0x620] ss:$16 sps:$4 sm:$0xff]  }
 0x2a3   : > { %v1481_v9 = vpop.f32.mrf.mxu0  ;;  %v1522_v10 = vpop.f32.mrf.mxu1  ;;  %v6857_v4 = vld [vmem:[#allocation7 + $0x7e4] ss:$16 sps:$4 sm:$0xff]   ;;  %v6855_v5 = vld [vmem:[#allocation7 + $0x7e0] ss:$16 sps:$4 sm:$0xff]  }
 0x2a4   : > { %7407 = vpow2.f32 %v5782_v7  ;;  %v5783_v11 = vmul.f32 -1.442695, %v1480_v8  ;;  %v6863_v6 = vld [vmem:[#allocation7 + $0x7c4] ss:$16 sps:$4 sm:$0xff]   ;;  %v6861_v7 = vld [vmem:[#allocation7 + $0x7c0] ss:$16 sps:$4 sm:$0xff]  }
 0x2a5   : > { %v1482_v12 = vpop.f32.mrf.mxu0  ;;  %v1523_v13 = vpop.f32.mrf.mxu1  ;;  %v6869_v8 = vld [vmem:[#allocation7 + $0x7a4] ss:$16 sps:$4 sm:$0xff]   ;;  %v6867_v9 = vld [vmem:[#allocation7 + $0x7a0] ss:$16 sps:$4 sm:$0xff]  }
 0x2a6   : > { %7409 = vpow2.f32 %v5783_v11  ;;  %v6875_v10 = vld [vmem:[#allocation7 + $0x784] ss:$16 sps:$4 sm:$0xff]   ;;  %v6873_v11 = vld [vmem:[#allocation7 + $0x780] ss:$16 sps:$4 sm:$0xff]  }
 0x2a7   : > { %7411 = vpow2.f32 %v5784_v19  ;;  %v6881_v12 = vld [vmem:[#allocation7 + $0x764] ss:$16 sps:$4 sm:$0xff]   ;;  %v6879_v13 = vld [vmem:[#allocation7 + $0x760] ss:$16 sps:$4 sm:$0xff]  }
 0x2a8   : > { %v6887_v14 = vld [vmem:[#allocation7 + $0x744] ss:$16 sps:$4 sm:$0xff]   ;;  %v6885_v15 = vld [vmem:[#allocation7 + $0x740] ss:$16 sps:$4 sm:$0xff]  }
 0x2a9   : > { %v6893_v17 = vld [vmem:[#allocation7 + $0x724] ss:$16 sps:$4 sm:$0xff]   ;;  %v6891_v19 = vld [vmem:[#allocation7 + $0x720] ss:$16 sps:$4 sm:$0xff]  }
 0x2b1   : > { %v7408_v20 = vpop.eup %7407 }
 0x2b2   : > { %v1534_v22 = vadd.f32 1.0, %v7408_v20  ;;  %v1617_v20 = vld [vmem:[#allocation8 + $0x8] sm:$0xf] }
 0x2b3   : > { %v7410_v23 = vpop.eup %7409 }
 0x2b4   : > { %7413 = vrcp.f32 %v1534_v22  ;;  %v1535_v24 = vadd.f32 1.0, %v7410_v23  ;;  %v7412_v25 = vpop.eup %7411  ;;  %v1626_v22 = vrot.slane %v1617_v20, %v8148_v18 }
 0x2b5   : > { %7415 = vtanh.f32 %v1521_v21  ;;  %v1536_v31 = vadd.f32 1.0, %v7412_v25  ;;  %v1622_v21 = vrot.slane %v1617_v20, %v8146_v16 }
 0x2b6   : > { %7417 = vrcp.f32 %v1535_v24 }
 0x2b7   : > { %7419 = vrcp.f32 %v1536_v31 }
 0x2c1   : > { %v7414_v27 = vpop.eup %7413 }
 0x2c2   : > { %v7416_v29 = vpop.eup %7415 }
 0x2c3   : > { %v7418_v30 = vpop.eup %7417  ;;  %v1545_v34 = vmul.f32 %v7416_v29, %v7414_v27 }
 0x2c4   : > { %v1544_v32 = vmul.f32 %v7418_v30, %v515_v28  ;;  %v7420_v36 = vpop.eup %7419 }
 0x2c6   : > { %v8169_v35 = vadd.f32 %v1545_v34, %v1544_v32 }
 0x2c8   : > { %7421 = vtanh.f32 %v8169_v35 }
 0x2d5   : > { %v7422_v37 = vpop.eup %7421 }
 0x2d6   : > { %v1548_v38 = vmul.f32 %v7422_v37, %v7420_v36 }
 0x2d8   : > { %v8172_v39 = vpack.c.bf16 %v1548_v38, %v1548_v38  ;;  %v1630_v38 = vrot.slane %v1617_v20, %v8152_v26 }
 0x2da   : > { %1992 = vmatmul.mubr.bf16.vlgmr.msra.gmra.mxu0 %v8172_v39  ;;  %2033 = vmatmul.mubr.bf16.vlgmr.msra.gmra.mxu1 %v8172_v39 }
 0x2db   : > { %2618 = vmatprep.mubr.bf16.mxu1 %v8161_v58  ;;  %6308 = vmatpush3.bf16.msra.mxu0 %v6799_v40 }
 0x2dc   : > { %6309 = vmatprep.subr.bf16.mxu0 %v7900_v41  ;;  %6323 = vmatprep.mubr.msk.bf16.mxu0 %vm7901_vm0, %v7900_v41 }
 0x2dd   : > { %2587 = vmatpush1.bf16.msra.mxu1 %v6807_v49 }
 0x2de   : > { %2588 = vmatprep.subr.bf16.mxu1 %v6815_v53 }
 0x2df   : > { %6310 = vmatpush3.bf16.msra.mxu0 %v6800_v42  ;;  %v1634_v42 = vrot.slane %v1617_v20, %v8155_v33  ;;  %v6872_v20 = vld [vmem:[#allocation7 + $0x7ac] ss:$16 sps:$4 sm:$0xff]  }
 0x2e0   : > { %6311 = vmatprep.subr.bf16.mxu0 %v7900_v41 }
 0x2e1   : > { %2589 = vmatpush1.bf16.msra.mxu1 %v6813_v54 }
 0x2e2   : > { %2590 = vmatprep.subr.bf16.mxu1 %v6821_v55 }
 0x2e3   : > { %6312 = vmatpush3.bf16.msra.mxu0 %v6801_v43 }
 0x2e4   : > { %6313 = vmatprep.subr.bf16.mxu0 %v7900_v41 }
 0x2e5   : > { %2591 = vmatpush1.bf16.msra.mxu1 %v6819_v56 }
 0x2e6   : > { %2592 = vmatprep.subr.bf16.mxu1 %v6827_v57 }
 0x2e7   : > { %6314 = vmatpush3.bf16.msra.mxu0 %v6802_v44 }
 0x2e8   : > { %6315 = vmatprep.subr.bf16.mxu0 %v7900_v41 }
 0x2e9   : > { %2593 = vmatpush1.bf16.msra.mxu1 %v6825_v59 }
 0x2ea   : > { %2594 = vmatprep.subr.bf16.mxu1 %v6833_v60 }
 0x2eb   : > { %6316 = vmatpush3.bf16.msra.mxu0 %v6803_v45 }
 0x2ec   : > { %6317 = vmatprep.subr.bf16.mxu0 %v7900_v41 }
 0x2ed   : > { %2595 = vmatpush1.bf16.msra.mxu1 %v6831_v61 }
 0x2ee   : > { %2596 = vmatprep.subr.bf16.mxu1 %v6839_v62 }
 0x2ef   : > { %6318 = vmatpush3.bf16.msra.mxu0 %v6804_v46 }
 0x2f0   : > { %6319 = vmatprep.subr.bf16.mxu0 %v7900_v41 }
 0x2f1   : > { %2597 = vmatpush1.bf16.msra.mxu1 %v6837_v63  ;;  %v6810_v63 = vld [vmem:[#allocation7 + $0x6e8] ss:$16 sps:$4 sm:$0xff]  }
 0x2f2   : > { %2598 = vmatprep.subr.bf16.mxu1 %v6845_v0 }
 0x2f3   : > { %6320 = vmatpush3.bf16.msra.mxu0 %v6805_v47 }
 0x2f4   : > { %6321 = vmatprep.subr.bf16.mxu0 %v7900_v41 }
 0x2f5   : > { %2599 = vmatpush1.bf16.msra.mxu1 %v6843_v1  ;;  %v6818_v1 = vld [vmem:[#allocation7 + $0x6cc] ss:$16 sps:$4 sm:$0xff]  }
 0x2f6   : > { %2600 = vmatprep.subr.bf16.mxu1 %v6851_v2  ;;  %v6816_v2 = vld [vmem:[#allocation7 + $0x6c8] ss:$16 sps:$4 sm:$0xff]  }
 0x2f7   : > { %6322 = vmatpush3.bf16.msra.mxu0 %v6806_v48 }
 0x2f8   : > { %2627 = vmatprep.subr.bf16.mxu0 %v6812_v51  ;;  %v517_v51 = vld [vmem:[#allocation19 + $0x10] sm:$0xff] }
 0x2f9   : > { %2601 = vmatpush1.bf16.msra.mxu1 %v6849_v3  ;;  %v6824_v3 = vld [vmem:[#allocation7 + $0x6ac] ss:$16 sps:$4 sm:$0xff]  }
 0x2fa   : > { %2602 = vmatprep.subr.bf16.mxu1 %v6857_v4  ;;  %v6822_v4 = vld [vmem:[#allocation7 + $0x6a8] ss:$16 sps:$4 sm:$0xff]  }
 0x2fd   : > { %2603 = vmatpush2.bf16.msra.mxu1 %v6855_v5  ;;  %v6830_v5 = vld [vmem:[#allocation7 + $0x68c] ss:$16 sps:$4 sm:$0xff]  }
 0x2fe   : > { %2604 = vmatprep.subr.bf16.mxu1 %v6863_v6  ;;  %v6828_v6 = vld [vmem:[#allocation7 + $0x688] ss:$16 sps:$4 sm:$0xff]  }
 0x301   : > { %2605 = vmatpush2.bf16.msra.mxu1 %v6861_v7  ;;  %v6836_v7 = vld [vmem:[#allocation7 + $0x66c] ss:$16 sps:$4 sm:$0xff]  }
 0x302   : > { %2606 = vmatprep.subr.bf16.mxu1 %v6869_v8  ;;  %v6834_v8 = vld [vmem:[#allocation7 + $0x668] ss:$16 sps:$4 sm:$0xff]  }
 0x305   : > { %2607 = vmatpush2.bf16.msra.mxu1 %v6867_v9  ;;  %v6842_v9 = vld [vmem:[#allocation7 + $0x64c] ss:$16 sps:$4 sm:$0xff]  }
 0x306   : > { %2608 = vmatprep.subr.bf16.mxu1 %v6875_v10  ;;  %v6840_v10 = vld [vmem:[#allocation7 + $0x648] ss:$16 sps:$4 sm:$0xff]  }
 0x309   : > { %2609 = vmatpush2.bf16.msra.mxu1 %v6873_v11  ;;  %v6846_v11 = vld [vmem:[#allocation7 + $0x628] ss:$16 sps:$4 sm:$0xff]  }
 0x30a   : > { %2610 = vmatprep.subr.bf16.mxu1 %v6881_v12  ;;  %v6854_v12 = vld [vmem:[#allocation7 + $0x60c] ss:$16 sps:$4 sm:$0xff]  }
 0x30d   : > { %2611 = vmatpush2.bf16.msra.mxu1 %v6879_v13  ;;  %v6852_v13 = vld [vmem:[#allocation7 + $0x608] ss:$16 sps:$4 sm:$0xff]  }
 0x30e   : > { %2612 = vmatprep.subr.bf16.mxu1 %v6887_v14  ;;  %v6860_v14 = vld [vmem:[#allocation7 + $0x7ec] ss:$16 sps:$4 sm:$0xff]  }
 0x311   : > { %2613 = vmatpush2.bf16.msra.mxu1 %v6885_v15  ;;  %v6858_v15 = vld [vmem:[#allocation7 + $0x7e8] ss:$16 sps:$4 sm:$0xff]  }
 0x312   : > { %2614 = vmatprep.subr.bf16.mxu1 %v6893_v17  ;;  %v6866_v17 = vld [vmem:[#allocation7 + $0x7cc] ss:$16 sps:$4 sm:$0xff]  }
 0x315   : > { %2615 = vmatpush2.bf16.msra.mxu1 %v6891_v19  ;;  %v6864_v19 = vld [vmem:[#allocation7 + $0x7c8] ss:$16 sps:$4 sm:$0xff]  }
 0x39a   : > { %v1993_v23 = vpop.f32.mrf.mxu0  ;;  %v2034_v24 = vpop.f32.mrf.mxu1 }
 0x39b   : > { %v1994_v25 = vadd.f32 %v1993_v23, %v1622_v21  ;;  %v2035_v40 = vadd.f32 %v2034_v24, %v1630_v38  ;;  %v6870_v21 = vld [vmem:[#allocation7 + $0x7a8] ss:$16 sps:$4 sm:$0xff]   ;;  %v6884_v24 = vld [vmem:[#allocation7 + $0x76c] ss:$16 sps:$4 sm:$0xff]  }
 0x39c   : > { %v1995_v27 = vpop.f32.mrf.mxu0  ;;  %v2036_v28 = vpop.f32.mrf.mxu1  ;;  %v6876_v23 = vld [vmem:[#allocation7 + $0x788] ss:$16 sps:$4 sm:$0xff]   ;;  %v6908_v38 = vld [vmem:[#allocation7 + $0x8ec] ss:$16 sps:$4 sm:$0xff]  }
 0x39d   : > { %v5849_v29 = vmul.f32 -1.442695, %v1994_v25  ;;  %v1996_v30 = vadd.f32 %v1995_v27, %v1626_v22  ;;  %v5851_v43 = vmul.f32 -1.442695, %v2035_v40  ;;  %v2037_v45 = vadd.f32 %v2036_v28, %v1634_v42  ;;  %v6878_v22 = vld [vmem:[#allocation7 + $0x78c] ss:$16 sps:$4 sm:$0xff]  }
 0x39e   : > { %v1997_v31 = vpop.f32.mrf.mxu0  ;;  %v2038_v32 = vpop.f32.mrf.mxu1  ;;  %v6882_v25 = vld [vmem:[#allocation7 + $0x768] ss:$16 sps:$4 sm:$0xff]   ;;  %v6890_v27 = vld [vmem:[#allocation7 + $0x74c] ss:$16 sps:$4 sm:$0xff]   ;;  %v5852_v40 = vld [vmem:[#allocation11] ss:$0 sm:$0xff] }
 0x39f   : > { %7423 = vpow2.f32 %v5849_v29  ;;  %v5850_v34 = vmul.f32 -1.442695, %v1996_v30  ;;  %v6888_v28 = vld [vmem:[#allocation7 + $0x748] ss:$16 sps:$4 sm:$0xff]   ;;  %v6896_v29 = vld [vmem:[#allocation7 + $0x72c] ss:$16 sps:$4 sm:$0xff]  }
 0x3a0   : > { %v1998_v36 = vpop.f32.mrf.mxu0  ;;  %v2039_v37 = vpop.f32.mrf.mxu1  ;;  %v6894_v30 = vld [vmem:[#allocation7 + $0x728] ss:$16 sps:$4 sm:$0xff]   ;;  %v6899_v31 = vld [vmem:[#allocation7 + $0x704] ss:$16 sps:$4 sm:$0xff]   ;;  %v6902_v32 = vld [vmem:[#allocation7 + $0x70c] ss:$16 sps:$4 sm:$0xff]  }
 0x3a1   : > { %7425 = vpow2.f32 %v5850_v34  ;;  %v6897_v34 = vld [vmem:[#allocation7 + $0x700] ss:$16 sps:$4 sm:$0xff]   ;;  %v6900_v36 = vld [vmem:[#allocation7 + $0x708] ss:$16 sps:$4 sm:$0xff]   ;;  %2616 = vmatprep.subr.bf16.mxu1 %v6899_v31  ;;  %v6905_v37 = vld [vmem:[#allocation7 + $0x8e4] ss:$16 sps:$4 sm:$0xff]  }
 0x3a2   : > { %7427 = vpow2.f32 %v5851_v43  ;;  %2617 = vmatpush2.bf16.msra.mxu1 %v6897_v34  ;;  %v6971_v31 = vld [vmem:[#allocation7 + $0x984] ss:$16 sps:$4 sm:$0xff]   ;;  %v6969_v34 = vld [vmem:[#allocation7 + $0x980] ss:$16 sps:$4 sm:$0xff]  }
 0x3a3   : > { %3101 = vmatprep.subr.bf16.mxu1 %v6905_v37  ;;  %v6977_v37 = vld [vmem:[#allocation7 + $0x964] ss:$16 sps:$4 sm:$0xff]  }
 0x3ac   : > { %v7424_v44 = vpop.eup %7423 }
 0x3ad   : > { %v2050_v46 = vadd.f32 1.0, %v7424_v44 }
 0x3ae   : > { %v7426_v47 = vpop.eup %7425 }
 0x3af   : > { %7429 = vrcp.f32 %v2050_v46  ;;  %v2051_v48 = vadd.f32 1.0, %v7426_v47  ;;  %v7428_v49 = vpop.eup %7427  ;;  %v6903_v46 = vld [vmem:[#allocation7 + $0x8e0] ss:$16 sps:$4 sm:$0xff]   ;;  %v6906_v47 = vld [vmem:[#allocation7 + $0x8e8] ss:$16 sps:$4 sm:$0xff]  }
 0x3b0   : > { %7431 = vtanh.f32 %v2037_v45  ;;  %v2052_v55 = vadd.f32 1.0, %v7428_v49  ;;  %v6911_v49 = vld [vmem:[#allocation7 + $0x8c4] ss:$16 sps:$4 sm:$0xff]  }
 0x3b1   : > { %7433 = vrcp.f32 %v2051_v48 }
 0x3b2   : > { %7435 = vrcp.f32 %v2052_v55  ;;  %v6917_v55 = vld [vmem:[#allocation7 + $0x8a4] ss:$16 sps:$4 sm:$0xff]  }
 0x3bc   : > { %v7430_v50 = vpop.eup %7429 }
 0x3bd   : > { %v7432_v53 = vpop.eup %7431 }
 0x3be   : > { %v7434_v54 = vpop.eup %7433  ;;  %v2061_v57 = vmul.f32 %v7432_v53, %v7430_v50  ;;  %v6914_v50 = vld [vmem:[#allocation7 + $0x8cc] ss:$16 sps:$4 sm:$0xff]   ;;  %v6909_v53 = vld [vmem:[#allocation7 + $0x8c0] ss:$16 sps:$4 sm:$0xff]  }
 0x3bf   : > { %v2060_v56 = vmul.f32 %v7434_v54, %v517_v51  ;;  %v7436_v60 = vpop.eup %7435  ;;  %v6912_v54 = vld [vmem:[#allocation7 + $0x8c8] ss:$16 sps:$4 sm:$0xff]  }
 0x3c1   : > { %v8191_v59 = vadd.f32 %v2061_v57, %v2060_v56  ;;  %v6920_v56 = vld [vmem:[#allocation7 + $0x8ac] ss:$16 sps:$4 sm:$0xff]   ;;  %v6915_v57 = vld [vmem:[#allocation7 + $0x8a0] ss:$16 sps:$4 sm:$0xff]  }
 0x3c3   : > { %7437 = vtanh.f32 %v8191_v59 }
 0x3d0   : > { %v7438_v61 = vpop.eup %7437 }
 0x3d1   : > { %v2064_v62 = vmul.f32 %v7438_v61, %v7436_v60  ;;  %v6918_v60 = vld [vmem:[#allocation7 + $0x8a8] ss:$16 sps:$4 sm:$0xff]   ;;  %v6923_v61 = vld [vmem:[#allocation7 + $0x884] ss:$16 sps:$4 sm:$0xff]  }
 0x3d3   : > { %v8194_v0 = vpack.c.bf16 %v2064_v62, %v2064_v62  ;;  %v6926_v62 = vld [vmem:[#allocation7 + $0x88c] ss:$16 sps:$4 sm:$0xff]  }
 0x3d5   : > { %6324 = vmatmul.mubr.bf16.vlgmr.msra.gmra.mxu0 %v8194_v0 }
 0x3d6   : > { %2659 = vmatprep.mubr.bf16.mxu0 %v8161_v58  ;;  %2628 = vmatpush1.bf16.msra.mxu0 %v6810_v63  ;;  %v6848_v58 = vld [vmem:[#allocation7 + $0x62c] ss:$16 sps:$4 sm:$0xff]   ;;  %v6921_v63 = vld [vmem:[#allocation7 + $0x880] ss:$16 sps:$4 sm:$0xff]  }
 0x3d7   : > { %2629 = vmatprep.subr.bf16.mxu0 %v6818_v1  ;;  %v6929_v1 = vld [vmem:[#allocation7 + $0x864] ss:$16 sps:$4 sm:$0xff]  }
 0x3da   : > { %2630 = vmatpush1.bf16.msra.mxu0 %v6816_v2  ;;  %v6932_v2 = vld [vmem:[#allocation7 + $0x86c] ss:$16 sps:$4 sm:$0xff]  }
 0x3db   : > { %2631 = vmatprep.subr.bf16.mxu0 %v6824_v3  ;;  %v6927_v3 = vld [vmem:[#allocation7 + $0x860] ss:$16 sps:$4 sm:$0xff]  }
 0x3de   : > { %2632 = vmatpush1.bf16.msra.mxu0 %v6822_v4  ;;  %v6930_v4 = vld [vmem:[#allocation7 + $0x868] ss:$16 sps:$4 sm:$0xff]  }
 0x3df   : > { %2633 = vmatprep.subr.bf16.mxu0 %v6830_v5  ;;  %v6935_v5 = vld [vmem:[#allocation7 + $0x844] ss:$16 sps:$4 sm:$0xff]  }
 0x3e2   : > { %2634 = vmatpush1.bf16.msra.mxu0 %v6828_v6  ;;  %v6938_v6 = vld [vmem:[#allocation7 + $0x84c] ss:$16 sps:$4 sm:$0xff]  }
 0x3e3   : > { %2635 = vmatprep.subr.bf16.mxu0 %v6836_v7  ;;  %v6933_v7 = vld [vmem:[#allocation7 + $0x840] ss:$16 sps:$4 sm:$0xff]  }
 0x3e6   : > { %2636 = vmatpush1.bf16.msra.mxu0 %v6834_v8  ;;  %v6936_v8 = vld [vmem:[#allocation7 + $0x848] ss:$16 sps:$4 sm:$0xff]  }
 0x3e7   : > { %2637 = vmatprep.subr.bf16.mxu0 %v6842_v9  ;;  %v6941_v9 = vld [vmem:[#allocation7 + $0x824] ss:$16 sps:$4 sm:$0xff]  }
 0x3ea   : > { %2638 = vmatpush1.bf16.msra.mxu0 %v6840_v10  ;;  %v6944_v10 = vld [vmem:[#allocation7 + $0x82c] ss:$16 sps:$4 sm:$0xff]  }
 0x3eb   : > { %2639 = vmatprep.subr.bf16.mxu0 %v6848_v58  ;;  %v6939_v58 = vld [vmem:[#allocation7 + $0x820] ss:$16 sps:$4 sm:$0xff]  }
 0x3ee   : > { %2640 = vmatpush1.bf16.msra.mxu0 %v6846_v11  ;;  %v6942_v11 = vld [vmem:[#allocation7 + $0x828] ss:$16 sps:$4 sm:$0xff]  }
 0x3ef   : > { %2641 = vmatprep.subr.bf16.mxu0 %v6854_v12  ;;  %v6947_v12 = vld [vmem:[#allocation7 + $0x804] ss:$16 sps:$4 sm:$0xff]  }
 0x3f2   : > { %2642 = vmatpush1.bf16.msra.mxu0 %v6852_v13  ;;  %v6950_v13 = vld [vmem:[#allocation7 + $0x80c] ss:$16 sps:$4 sm:$0xff]  }
 0x3f3   : > { %2643 = vmatprep.subr.bf16.mxu0 %v6860_v14  ;;  %v6945_v14 = vld [vmem:[#allocation7 + $0x800] ss:$16 sps:$4 sm:$0xff]  }
 0x3f6   : > { %2644 = vmatpush2.bf16.msra.mxu0 %v6858_v15  ;;  %v6948_v15 = vld [vmem:[#allocation7 + $0x808] ss:$16 sps:$4 sm:$0xff]  }
 0x3f7   : > { %2645 = vmatprep.subr.bf16.mxu0 %v6866_v17  ;;  %v6953_v17 = vld [vmem:[#allocation7 + $0x9e4] ss:$16 sps:$4 sm:$0xff]  }
 0x3fa   : > { %2646 = vmatpush2.bf16.msra.mxu0 %v6864_v19  ;;  %v6956_v19 = vld [vmem:[#allocation7 + $0x9ec] ss:$16 sps:$4 sm:$0xff]  }
 0x3fb   : > { %2647 = vmatprep.subr.bf16.mxu0 %v6872_v20  ;;  %v6951_v20 = vld [vmem:[#allocation7 + $0x9e0] ss:$16 sps:$4 sm:$0xff]  }
 0x3fe   : > { %2648 = vmatpush2.bf16.msra.mxu0 %v6870_v21  ;;  %v6954_v21 = vld [vmem:[#allocation7 + $0x9e8] ss:$16 sps:$4 sm:$0xff]  }
 0x3ff   : > { %2649 = vmatprep.subr.bf16.mxu0 %v6878_v22  ;;  %v6959_v22 = vld [vmem:[#allocation7 + $0x9c4] ss:$16 sps:$4 sm:$0xff]  }
 0x402   : > { %2650 = vmatpush2.bf16.msra.mxu0 %v6876_v23  ;;  %v6962_v23 = vld [vmem:[#allocation7 + $0x9cc] ss:$16 sps:$4 sm:$0xff]  }
 0x403   : > { %2651 = vmatprep.subr.bf16.mxu0 %v6884_v24  ;;  %v6957_v24 = vld [vmem:[#allocation7 + $0x9c0] ss:$16 sps:$4 sm:$0xff]  }
 0x406   : > { %2652 = vmatpush2.bf16.msra.mxu0 %v6882_v25  ;;  %v6960_v25 = vld [vmem:[#allocation7 + $0x9c8] ss:$16 sps:$4 sm:$0xff]  }
 0x407   : > { %2653 = vmatprep.subr.bf16.mxu0 %v6890_v27  ;;  %v6965_v27 = vld [vmem:[#allocation7 + $0x9a4] ss:$16 sps:$4 sm:$0xff]  }
 0x40a   : > { %2654 = vmatpush2.bf16.msra.mxu0 %v6888_v28  ;;  %v6968_v28 = vld [vmem:[#allocation7 + $0x9ac] ss:$16 sps:$4 sm:$0xff]  }
 0x40b   : > { %2655 = vmatprep.subr.bf16.mxu0 %v6896_v29  ;;  %v6963_v29 = vld [vmem:[#allocation7 + $0x9a0] ss:$16 sps:$4 sm:$0xff]  }
 0x40e   : > { %2656 = vmatpush2.bf16.msra.mxu0 %v6894_v30  ;;  %v6966_v30 = vld [vmem:[#allocation7 + $0x9a8] ss:$16 sps:$4 sm:$0xff]  }
 0x40f   : > { %2657 = vmatprep.subr.bf16.mxu0 %v6902_v32  ;;  %v6974_v32 = vld [vmem:[#allocation7 + $0x98c] ss:$16 sps:$4 sm:$0xff]  }
 0x412   : > { %2658 = vmatpush2.bf16.msra.mxu0 %v6900_v36  ;;  %v6972_v36 = vld [vmem:[#allocation7 + $0x988] ss:$16 sps:$4 sm:$0xff]  }
 0x413   : > { %3142 = vmatprep.subr.bf16.mxu0 %v6908_v38  ;;  %v6980_v38 = vld [vmem:[#allocation7 + $0x96c] ss:$16 sps:$4 sm:$0xff]  }
 0x495   : > { %v2171_v42 = vpop.f32.mrf.mxu0 }
 0x496   : > { %v2172_v43 = vadd.f32 %v5852_v40, %v2171_v42  ;;  %v6975_v40 = vld [vmem:[#allocation7 + $0x960] ss:$16 sps:$4 sm:$0xff]   ;;  %v6978_v42 = vld [vmem:[#allocation7 + $0x968] ss:$16 sps:$4 sm:$0xff]  }
 0x497   : > { %v6325_v44 = vpop.f32.mrf.mxu0 }
 0x498   : > { %v2177_v45 = vpack.c.bf16 %v2172_v43, %v2172_v43  ;;  %v6983_v43 = vld [vmem:[#allocation7 + $0x944] ss:$16 sps:$4 sm:$0xff]   ;;  %v6986_v44 = vld [vmem:[#allocation7 + $0x94c] ss:$16 sps:$4 sm:$0xff]  }
 0x499   : > { %v2174_v48 = vpop.f32.mrf.mxu0 }
 0x49a   : > { %2619 = vmatmul.mubr.bf16.vlgmr.msra.gmra.mxu1 %v2177_v45  ;;  %2660 = vmatmul.mubr.bf16.vlgmr.msra.gmra.mxu0 %v2177_v45  ;;  %v6981_v45 = vld [vmem:[#allocation7 + $0x940] ss:$16 sps:$4 sm:$0xff]   ;;  %v6992_v48 = vld [vmem:[#allocation7 + $0x92c] ss:$16 sps:$4 sm:$0xff]  }
 0x49b   : > { %v6326_v51 = vpop.f32.mrf.mxu0  ;;  %3133 = vmatprep.mubr.bf16.mxu1 %v8172_v39  ;;  %3174 = vmatprep.mubr.bf16.mxu0 %v8172_v39  ;;  %v6924_v39 = vld [vmem:[#allocation7 + $0x888] ss:$16 sps:$4 sm:$0xff]  }
 0x49c   : > { %3102 = vmatpush1.bf16.msra.mxu1 %v6903_v46  ;;  %3143 = vmatpush1.bf16.msra.mxu0 %v6906_v47  ;;  %v6984_v46 = vld [vmem:[#allocation7 + $0x948] ss:$16 sps:$4 sm:$0xff]   ;;  %v6989_v47 = vld [vmem:[#allocation7 + $0x924] ss:$16 sps:$4 sm:$0xff]  }
 0x49d   : > { %3103 = vmatprep.subr.bf16.mxu1 %v6911_v49  ;;  %3144 = vmatprep.subr.bf16.mxu0 %v6914_v50  ;;  %v6987_v49 = vld [vmem:[#allocation7 + $0x920] ss:$16 sps:$4 sm:$0xff]   ;;  %v6990_v50 = vld [vmem:[#allocation7 + $0x928] ss:$16 sps:$4 sm:$0xff]   ;;  %v6995_v51 = vld [vmem:[#allocation7 + $0x904] ss:$16 sps:$4 sm:$0xff]  }
 0x4a0   : > { %3104 = vmatpush1.bf16.msra.mxu1 %v6909_v53  ;;  %3145 = vmatpush1.bf16.msra.mxu0 %v6912_v54  ;;  %v6998_v53 = vld [vmem:[#allocation7 + $0x90c] ss:$16 sps:$4 sm:$0xff]   ;;  %v6993_v54 = vld [vmem:[#allocation7 + $0x900] ss:$16 sps:$4 sm:$0xff]  }
 0x4a1   : > { %3105 = vmatprep.subr.bf16.mxu1 %v6917_v55  ;;  %3146 = vmatprep.subr.bf16.mxu0 %v6920_v56  ;;  %v6996_v55 = vld [vmem:[#allocation7 + $0x908] ss:$16 sps:$4 sm:$0xff]   ;;  %v7001_v56 = vld [vmem:[#allocation7 + $0xae4] ss:$16 sps:$4 sm:$0xff]  }
 0x4a4   : > { %3106 = vmatpush1.bf16.msra.mxu1 %v6915_v57  ;;  %3147 = vmatpush1.bf16.msra.mxu0 %v6918_v60  ;;  %v7004_v57 = vld [vmem:[#allocation7 + $0xaec] ss:$16 sps:$4 sm:$0xff]  }
 0x4a5   : > { %3107 = vmatprep.subr.bf16.mxu1 %v6923_v61  ;;  %3148 = vmatprep.subr.bf16.mxu0 %v6926_v62  ;;  %v2244_v60 = vld [vmem:[#allocation8 + $0xc] sm:$0xf] }
 0x4a6   : > { %v2249_v61 = vrot.slane %v2244_v60, %v8146_v16  ;;  %v2253_v62 = vrot.slane %v2244_v60, %v8148_v18 }
 0x4a8   : > { %3108 = vmatpush1.bf16.msra.mxu1 %v6921_v63  ;;  %3149 = vmatpush1.bf16.msra.mxu0 %v6924_v39 }
 0x4a9   : > { %3109 = vmatprep.subr.bf16.mxu1 %v6929_v1  ;;  %3150 = vmatprep.subr.bf16.mxu0 %v6932_v2 }
 0x4ac   : > { %3110 = vmatpush1.bf16.msra.mxu1 %v6927_v3  ;;  %3151 = vmatpush1.bf16.msra.mxu0 %v6930_v4 }
 0x4ad   : > { %3111 = vmatprep.subr.bf16.mxu1 %v6935_v5  ;;  %3152 = vmatprep.subr.bf16.mxu0 %v6938_v6 }
 0x4b0   : > { %3112 = vmatpush1.bf16.msra.mxu1 %v6933_v7  ;;  %3153 = vmatpush1.bf16.msra.mxu0 %v6936_v8 }
 0x4b1   : > { %3113 = vmatprep.subr.bf16.mxu1 %v6941_v9  ;;  %3154 = vmatprep.subr.bf16.mxu0 %v6944_v10 }
 0x4b4   : > { %3114 = vmatpush1.bf16.msra.mxu1 %v6939_v58  ;;  %3155 = vmatpush1.bf16.msra.mxu0 %v6942_v11  ;;  %v2257_v58 = vrot.slane %v2244_v60, %v8152_v26 }
 0x4b5   : > { %3115 = vmatprep.subr.bf16.mxu1 %v6947_v12  ;;  %3156 = vmatprep.subr.bf16.mxu0 %v6950_v13  ;;  %v2261_v12 = vrot.slane %v2244_v60, %v8155_v33  ;;  %v7032_v60 = vld [vmem:[#allocation7 + $0xa48] ss:$16 sps:$4 sm:$0xff]  }
 0x4b8   : > { %3116 = vmatpush1.bf16.msra.mxu1 %v6945_v14  ;;  %3157 = vmatpush1.bf16.msra.mxu0 %v6948_v15 }
 0x4b9   : > { %3117 = vmatprep.subr.bf16.mxu1 %v6953_v17  ;;  %3158 = vmatprep.subr.bf16.mxu0 %v6956_v19 }
 0x4bc   : > { %3118 = vmatpush2.bf16.msra.mxu1 %v6951_v20  ;;  %3159 = vmatpush2.bf16.msra.mxu0 %v6954_v21 }
 0x4bd   : > { %3119 = vmatprep.subr.bf16.mxu1 %v6959_v22  ;;  %3160 = vmatprep.subr.bf16.mxu0 %v6962_v23 }
 0x4c0   : > { %3120 = vmatpush2.bf16.msra.mxu1 %v6957_v24  ;;  %3161 = vmatpush2.bf16.msra.mxu0 %v6960_v25 }
 0x4c1   : > { %3121 = vmatprep.subr.bf16.mxu1 %v6965_v27  ;;  %3162 = vmatprep.subr.bf16.mxu0 %v6968_v28 }
 0x4c4   : > { %3122 = vmatpush2.bf16.msra.mxu1 %v6963_v29  ;;  %3163 = vmatpush2.bf16.msra.mxu0 %v6966_v30 }
 0x4c5   : > { %3123 = vmatprep.subr.bf16.mxu1 %v6971_v31  ;;  %3164 = vmatprep.subr.bf16.mxu0 %v6974_v32 }
 0x4c8   : > { %3124 = vmatpush2.bf16.msra.mxu1 %v6969_v34  ;;  %3165 = vmatpush2.bf16.msra.mxu0 %v6972_v36  ;;  %v6999_v36 = vld [vmem:[#allocation7 + $0xae0] ss:$16 sps:$4 sm:$0xff]  }
 0x4c9   : > { %3125 = vmatprep.subr.bf16.mxu1 %v6977_v37  ;;  %3166 = vmatprep.subr.bf16.mxu0 %v6980_v38  ;;  %v7002_v37 = vld [vmem:[#allocation7 + $0xae8] ss:$16 sps:$4 sm:$0xff]   ;;  %v7007_v38 = vld [vmem:[#allocation7 + $0xac4] ss:$16 sps:$4 sm:$0xff]  }
 0x4cc   : > { %3126 = vmatpush2.bf16.msra.mxu1 %v6975_v40  ;;  %3167 = vmatpush2.bf16.msra.mxu0 %v6978_v42  ;;  %v7010_v40 = vld [vmem:[#allocation7 + $0xacc] ss:$16 sps:$4 sm:$0xff]   ;;  %v7008_v42 = vld [vmem:[#allocation7 + $0xac8] ss:$16 sps:$4 sm:$0xff]  }
 0x4cd   : > { %3127 = vmatprep.subr.bf16.mxu1 %v6983_v43  ;;  %3168 = vmatprep.subr.bf16.mxu0 %v6986_v44  ;;  %v7013_v43 = vld [vmem:[#allocation7 + $0xaa4] ss:$16 sps:$4 sm:$0xff]   ;;  %v7016_v44 = vld [vmem:[#allocation7 + $0xaac] ss:$16 sps:$4 sm:$0xff]  }
 0x4d0   : > { %3128 = vmatpush2.bf16.msra.mxu1 %v6981_v45  ;;  %3169 = vmatpush2.bf16.msra.mxu0 %v6984_v46  ;;  %v7011_v45 = vld [vmem:[#allocation7 + $0xaa0] ss:$16 sps:$4 sm:$0xff]   ;;  %v7014_v46 = vld [vmem:[#allocation7 + $0xaa8] ss:$16 sps:$4 sm:$0xff]  }
 0x4d1   : > { %3129 = vmatprep.subr.bf16.mxu1 %v6989_v47  ;;  %3170 = vmatprep.subr.bf16.mxu0 %v6992_v48  ;;  %v7019_v47 = vld [vmem:[#allocation7 + $0xa84] ss:$16 sps:$4 sm:$0xff]   ;;  %v7022_v48 = vld [vmem:[#allocation7 + $0xa8c] ss:$16 sps:$4 sm:$0xff]  }
 0x4d4   : > { %3130 = vmatpush2.bf16.msra.mxu1 %v6987_v49  ;;  %3171 = vmatpush2.bf16.msra.mxu0 %v6990_v50  ;;  %v7017_v49 = vld [vmem:[#allocation7 + $0xa80] ss:$16 sps:$4 sm:$0xff]   ;;  %v7025_v50 = vld [vmem:[#allocation7 + $0xa64] ss:$16 sps:$4 sm:$0xff]  }
 0x4d5   : > { %3131 = vmatprep.subr.bf16.mxu1 %v6995_v51  ;;  %3172 = vmatprep.subr.bf16.mxu0 %v6998_v53  ;;  %v7028_v51 = vld [vmem:[#allocation7 + $0xa6c] ss:$16 sps:$4 sm:$0xff]   ;;  %v7023_v53 = vld [vmem:[#allocation7 + $0xa60] ss:$16 sps:$4 sm:$0xff]  }
 0x4d8   : > { %3132 = vmatpush2.bf16.msra.mxu1 %v6993_v54  ;;  %3173 = vmatpush2.bf16.msra.mxu0 %v6996_v55  ;;  %v7026_v54 = vld [vmem:[#allocation7 + $0xa68] ss:$16 sps:$4 sm:$0xff]   ;;  %v7031_v55 = vld [vmem:[#allocation7 + $0xa44] ss:$16 sps:$4 sm:$0xff]  }
 0x4d9   : > { %3616 = vmatprep.subr.bf16.mxu1 %v7001_v56  ;;  %3657 = vmatprep.subr.bf16.mxu0 %v7004_v57  ;;  %v7034_v56 = vld [vmem:[#allocation7 + $0xa4c] ss:$16 sps:$4 sm:$0xff]   ;;  %v7029_v57 = vld [vmem:[#allocation7 + $0xa40] ss:$16 sps:$4 sm:$0xff]  }
 0x55a   : > { %v2620_v63 = vpop.f32.mrf.mxu1  ;;  %v2661_v39 = vpop.f32.mrf.mxu0 }
 0x55b   : > { %v2621_v1 = vadd.f32 %v2620_v63, %v2249_v61  ;;  %v2662_v11 = vadd.f32 %v2661_v39, %v2257_v58  ;;  %v7037_v61 = vld [vmem:[#allocation7 + $0xa24] ss:$16 sps:$4 sm:$0xff]   ;;  %v7035_v63 = vld [vmem:[#allocation7 + $0xa20] ss:$16 sps:$4 sm:$0xff]   ;;  %v7038_v39 = vld [vmem:[#allocation7 + $0xa28] ss:$16 sps:$4 sm:$0xff]  }
 0x55c   : > { %v2622_v2 = vpop.f32.mrf.mxu1  ;;  %v2663_v3 = vpop.f32.mrf.mxu0  ;;  %v7053_v58 = vld [vmem:[#allocation7 + $0xbc0] ss:$16 sps:$4 sm:$0xff]  }
 0x55d   : > { %v5925_v4 = vmul.f32 -1.442695, %v2621_v1  ;;  %v2623_v5 = vadd.f32 %v2622_v2, %v2253_v62  ;;  %v5927_v13 = vmul.f32 -1.442695, %v2662_v11  ;;  %v2664_v15 = vadd.f32 %v2663_v3, %v2261_v12  ;;  %v7040_v62 = vld [vmem:[#allocation7 + $0xa2c] ss:$16 sps:$4 sm:$0xff]  }
 0x55e   : > { %v2624_v6 = vpop.f32.mrf.mxu1  ;;  %v2665_v7 = vpop.f32.mrf.mxu0  ;;  %v7043_v1 = vld [vmem:[#allocation7 + $0xa04] ss:$16 sps:$4 sm:$0xff]   ;;  %v7046_v2 = vld [vmem:[#allocation7 + $0xa0c] ss:$16 sps:$4 sm:$0xff]   ;;  %v7041_v3 = vld [vmem:[#allocation7 + $0xa00] ss:$16 sps:$4 sm:$0xff]  }
 0x55f   : > { %7439 = vpow2.f32 %v5925_v4  ;;  %v5926_v8 = vmul.f32 -1.442695, %v2623_v5  ;;  %v7044_v4 = vld [vmem:[#allocation7 + $0xa08] ss:$16 sps:$4 sm:$0xff]   ;;  %v7049_v5 = vld [vmem:[#allocation7 + $0xbe4] ss:$16 sps:$4 sm:$0xff]  }
 0x560   : > { %v2625_v9 = vpop.f32.mrf.mxu1  ;;  %v2666_v10 = vpop.f32.mrf.mxu0  ;;  %v7052_v6 = vld [vmem:[#allocation7 + $0xbec] ss:$16 sps:$4 sm:$0xff]   ;;  %v7047_v7 = vld [vmem:[#allocation7 + $0xbe0] ss:$16 sps:$4 sm:$0xff]   ;;  %v7056_v11 = vld [vmem:[#allocation7 + $0xbc8] ss:$16 sps:$4 sm:$0xff]  }
 0x561   : > { %7441 = vpow2.f32 %v5926_v8  ;;  %v7050_v8 = vld [vmem:[#allocation7 + $0xbe8] ss:$16 sps:$4 sm:$0xff]   ;;  %v7055_v9 = vld [vmem:[#allocation7 + $0xbc4] ss:$16 sps:$4 sm:$0xff]   ;;  %v7058_v10 = vld [vmem:[#allocation7 + $0xbcc] ss:$16 sps:$4 sm:$0xff]  }
 0x562   : > { %7443 = vpow2.f32 %v5927_v13  ;;  %v7061_v12 = vld [vmem:[#allocation7 + $0xba4] ss:$16 sps:$4 sm:$0xff]   ;;  %v7064_v13 = vld [vmem:[#allocation7 + $0xbac] ss:$16 sps:$4 sm:$0xff]  }
 0x56c   : > { %v7440_v14 = vpop.eup %7439 }
 0x56d   : > { %v2677_v17 = vadd.f32 1.0, %v7440_v14  ;;  %v7059_v14 = vld [vmem:[#allocation7 + $0xba0] ss:$16 sps:$4 sm:$0xff]  }
 0x56e   : > { %v7442_v19 = vpop.eup %7441 }
 0x56f   : > { %7445 = vrcp.f32 %v2677_v17  ;;  %v2678_v20 = vadd.f32 1.0, %v7442_v19  ;;  %v7444_v21 = vpop.eup %7443  ;;  %v7067_v17 = vld [vmem:[#allocation7 + $0xb84] ss:$16 sps:$4 sm:$0xff]   ;;  %v7070_v19 = vld [vmem:[#allocation7 + $0xb8c] ss:$16 sps:$4 sm:$0xff]  }
 0x570   : > { %7447 = vtanh.f32 %v2664_v15  ;;  %v2679_v25 = vadd.f32 1.0, %v7444_v21  ;;  %v7062_v15 = vld [vmem:[#allocation7 + $0xba8] ss:$16 sps:$4 sm:$0xff]  }
 0x571   : > { %7449 = vrcp.f32 %v2678_v20  ;;  %v7065_v20 = vld [vmem:[#allocation7 + $0xb80] ss:$16 sps:$4 sm:$0xff]   ;;  %v7068_v21 = vld [vmem:[#allocation7 + $0xb88] ss:$16 sps:$4 sm:$0xff]  }
 0x572   : > { %7451 = vrcp.f32 %v2679_v25  ;;  %v7074_v25 = vld [vmem:[#allocation7 + $0xb68] ss:$16 sps:$4 sm:$0xff]  }
 0x57c   : > { %v7446_v22 = vpop.eup %7445 }
 0x57d   : > { %v7448_v23 = vpop.eup %7447 }
 0x57e   : > { %v7450_v24 = vpop.eup %7449  ;;  %v2688_v28 = vmul.f32 %v7448_v23, %v7446_v22  ;;  %v7073_v22 = vld [vmem:[#allocation7 + $0xb64] ss:$16 sps:$4 sm:$0xff]   ;;  %v7076_v23 = vld [vmem:[#allocation7 + $0xb6c] ss:$16 sps:$4 sm:$0xff]  }
 0x57f   : > { %v2687_v27 = vmul.f32 %v7450_v24, %v8158_v52  ;;  %v7452_v30 = vpop.eup %7451  ;;  %v7005_v52 = vld [vmem:[#allocation7 + $0xac0] ss:$16 sps:$4 sm:$0xff]  }
 0x580   : > { %v7071_v24 = vld [vmem:[#allocation7 + $0xb60] ss:$16 sps:$4 sm:$0xff]  }
 0x581   : > { %v8205_v29 = vadd.f32 %v2688_v28, %v2687_v27  ;;  %v7079_v27 = vld [vmem:[#allocation7 + $0xb44] ss:$16 sps:$4 sm:$0xff]   ;;  %v7082_v28 = vld [vmem:[#allocation7 + $0xb4c] ss:$16 sps:$4 sm:$0xff]  }
 0x583   : > { %7453 = vtanh.f32 %v8205_v29 }
 0x590   : > { %v7454_v31 = vpop.eup %7453 }
 0x591   : > { %v2691_v32 = vmul.f32 %v7454_v31, %v7452_v30  ;;  %v7077_v30 = vld [vmem:[#allocation7 + $0xb40] ss:$16 sps:$4 sm:$0xff]   ;;  %v7080_v31 = vld [vmem:[#allocation7 + $0xb48] ss:$16 sps:$4 sm:$0xff]  }
 0x593   : > { %v8208_v34 = vpack.c.bf16 %v2691_v32, %v2691_v32  ;;  %v7085_v32 = vld [vmem:[#allocation7 + $0xb24] ss:$16 sps:$4 sm:$0xff]  }
 0x595   : > { %3134 = vmatmul.mubr.bf16.vlgmr.msra.gmra.mxu1 %v8208_v34  ;;  %3175 = vmatmul.mubr.bf16.vlgmr.msra.gmra.mxu0 %v8208_v34 }
 0x596   : > { %3648 = vmatprep.mubr.bf16.mxu1 %v8194_v0  ;;  %3689 = vmatprep.mubr.bf16.mxu0 %v8194_v0  ;;  %v7020_v0 = vld [vmem:[#allocation7 + $0xa88] ss:$16 sps:$4 sm:$0xff]  }
 0x597   : > { %3617 = vmatpush1.bf16.msra.mxu1 %v6999_v36  ;;  %3658 = vmatpush1.bf16.msra.mxu0 %v7002_v37  ;;  %v7088_v36 = vld [vmem:[#allocation7 + $0xb2c] ss:$16 sps:$4 sm:$0xff]   ;;  %v7083_v37 = vld [vmem:[#allocation7 + $0xb20] ss:$16 sps:$4 sm:$0xff]  }
 0x598   : > { %3618 = vmatprep.subr.bf16.mxu1 %v7007_v38  ;;  %3659 = vmatprep.subr.bf16.mxu0 %v7010_v40  ;;  %v7086_v38 = vld [vmem:[#allocation7 + $0xb28] ss:$16 sps:$4 sm:$0xff]   ;;  %v7091_v40 = vld [vmem:[#allocation7 + $0xb04] ss:$16 sps:$4 sm:$0xff]  }
 0x59b   : > { %3619 = vmatpush1.bf16.msra.mxu1 %v7005_v52  ;;  %3660 = vmatpush1.bf16.msra.mxu0 %v7008_v42  ;;  %v7094_v52 = vld [vmem:[#allocation7 + $0xb0c] ss:$16 sps:$4 sm:$0xff]   ;;  %v7089_v42 = vld [vmem:[#allocation7 + $0xb00] ss:$16 sps:$4 sm:$0xff]  }
 0x59c   : > { %3620 = vmatprep.subr.bf16.mxu1 %v7013_v43  ;;  %3661 = vmatprep.subr.bf16.mxu0 %v7016_v44  ;;  %v7092_v43 = vld [vmem:[#allocation7 + $0xb08] ss:$16 sps:$4 sm:$0xff]   ;;  %v2759_v44 = vld [vmem:[#allocation8 + $0x10] sm:$0xf] }
 0x59f   : > { %3621 = vmatpush1.bf16.msra.mxu1 %v7011_v45  ;;  %3662 = vmatpush1.bf16.msra.mxu0 %v7014_v46  ;;  %v2764_v45 = vrot.slane %v2759_v44, %v8146_v16  ;;  %v2768_v46 = vrot.slane %v2759_v44, %v8148_v18 }
 0x5a0   : > { %3622 = vmatprep.subr.bf16.mxu1 %v7019_v47  ;;  %3663 = vmatprep.subr.bf16.mxu0 %v7022_v48 }
 0x5a3   : > { %3623 = vmatpush1.bf16.msra.mxu1 %v7017_v49  ;;  %3664 = vmatpush1.bf16.msra.mxu0 %v7020_v0 }
 0x5a4   : > { %3624 = vmatprep.subr.bf16.mxu1 %v7025_v50  ;;  %3665 = vmatprep.subr.bf16.mxu0 %v7028_v51 }
 0x5a7   : > { %3625 = vmatpush1.bf16.msra.mxu1 %v7023_v53  ;;  %3666 = vmatpush1.bf16.msra.mxu0 %v7026_v54 }
 0x5a8   : > { %3626 = vmatprep.subr.bf16.mxu1 %v7031_v55  ;;  %3667 = vmatprep.subr.bf16.mxu0 %v7034_v56 }
 0x5ab   : > { %3627 = vmatpush1.bf16.msra.mxu1 %v7029_v57  ;;  %3668 = vmatpush1.bf16.msra.mxu0 %v7032_v60 }
 0x5ac   : > { %3628 = vmatprep.subr.bf16.mxu1 %v7037_v61  ;;  %3669 = vmatprep.subr.bf16.mxu0 %v7040_v62  ;;  %v2772_v61 = vrot.slane %v2759_v44, %v8152_v26 }
 0x5af   : > { %3629 = vmatpush1.bf16.msra.mxu1 %v7035_v63  ;;  %3670 = vmatpush1.bf16.msra.mxu0 %v7038_v39  ;;  %v2776_v63 = vrot.slane %v2759_v44, %v8155_v33  ;;  %v7125_v44 = vld [vmem:[#allocation7 + $0xc40] ss:$16 sps:$4 sm:$0xff]  }
 0x5b0   : > { %3630 = vmatprep.subr.bf16.mxu1 %v7043_v1  ;;  %3671 = vmatprep.subr.bf16.mxu0 %v7046_v2 }
 0x5b3   : > { %3631 = vmatpush1.bf16.msra.mxu1 %v7041_v3  ;;  %3672 = vmatpush1.bf16.msra.mxu0 %v7044_v4 }
 0x5b4   : > { %3632 = vmatprep.subr.bf16.mxu1 %v7049_v5  ;;  %3673 = vmatprep.subr.bf16.mxu0 %v7052_v6 }
 0x5b7   : > { %3633 = vmatpush2.bf16.msra.mxu1 %v7047_v7  ;;  %3674 = vmatpush2.bf16.msra.mxu0 %v7050_v8 }
 0x5b8   : > { %3634 = vmatprep.subr.bf16.mxu1 %v7055_v9  ;;  %3675 = vmatprep.subr.bf16.mxu0 %v7058_v10 }
 0x5bb   : > { %3635 = vmatpush2.bf16.msra.mxu1 %v7053_v58  ;;  %3676 = vmatpush2.bf16.msra.mxu0 %v7056_v11 }
 0x5bc   : > { %3636 = vmatprep.subr.bf16.mxu1 %v7061_v12  ;;  %3677 = vmatprep.subr.bf16.mxu0 %v7064_v13 }
 0x5bf   : > { %3637 = vmatpush2.bf16.msra.mxu1 %v7059_v14  ;;  %3678 = vmatpush2.bf16.msra.mxu0 %v7062_v15 }
 0x5c0   : > { %3638 = vmatprep.subr.bf16.mxu1 %v7067_v17  ;;  %3679 = vmatprep.subr.bf16.mxu0 %v7070_v19  ;;  %v7535_v19 = vld [vmem:[#allocation10 + $0x38] sm:$0xff]  }
 0x5c3   : > { %3639 = vmatpush2.bf16.msra.mxu1 %v7065_v20  ;;  %3680 = vmatpush2.bf16.msra.mxu0 %v7068_v21  ;;  %v7537_v20 = vld [vmem:[#allocation10 + $0x28] sm:$0xff]   ;;  %v7538_v21 = vld [vmem:[#allocation10 + $0x20] sm:$0xff]  }
 0x5c4   : > { %3640 = vmatprep.subr.bf16.mxu1 %v7073_v22  ;;  %3681 = vmatprep.subr.bf16.mxu0 %v7076_v23  ;;  %v7539_v22 = vld [vmem:[#allocation10 + $0x18] sm:$0xff]   ;;  %v7540_v23 = vld [vmem:[#allocation10 + $0x10] sm:$0xff]  }
 0x5c7   : > { %3641 = vmatpush2.bf16.msra.mxu1 %v7071_v24  ;;  %3682 = vmatpush2.bf16.msra.mxu0 %v7074_v25  ;;  %v7541_v24 = vld [vmem:[#allocation10 + $0x8] sm:$0xff]   ;;  %v7542_v25 = vld [vmem:[#allocation10] sm:$0xff]  }
 0x5c8   : > { %3642 = vmatprep.subr.bf16.mxu1 %v7079_v27  ;;  %3683 = vmatprep.subr.bf16.mxu0 %v7082_v28  ;;  %v7095_v27 = vld [vmem:[#allocation7 + $0xce0] ss:$16 sps:$4 sm:$0xff]   ;;  %v7097_v28 = vld [vmem:[#allocation7 + $0xce4] ss:$16 sps:$4 sm:$0xff]  }
 0x5cb   : > { %3643 = vmatpush2.bf16.msra.mxu1 %v7077_v30  ;;  %3684 = vmatpush2.bf16.msra.mxu0 %v7080_v31  ;;  %v7100_v30 = vld [vmem:[#allocation7 + $0xcec] ss:$16 sps:$4 sm:$0xff]   ;;  %v7103_v31 = vld [vmem:[#allocation7 + $0xcc4] ss:$16 sps:$4 sm:$0xff]  }
 0x5cc   : > { %3644 = vmatprep.subr.bf16.mxu1 %v7085_v32  ;;  %3685 = vmatprep.subr.bf16.mxu0 %v7088_v36  ;;  %v7101_v32 = vld [vmem:[#allocation7 + $0xcc0] ss:$16 sps:$4 sm:$0xff]   ;;  %v7109_v36 = vld [vmem:[#allocation7 + $0xca4] ss:$16 sps:$4 sm:$0xff]  }
 0x5cf   : > { %3645 = vmatpush2.bf16.msra.mxu1 %v7083_v37  ;;  %3686 = vmatpush2.bf16.msra.mxu0 %v7086_v38  ;;  %v7107_v37 = vld [vmem:[#allocation7 + $0xca0] ss:$16 sps:$4 sm:$0xff]   ;;  %v7115_v38 = vld [vmem:[#allocation7 + $0xc84] ss:$16 sps:$4 sm:$0xff]  }
 0x5d0   : > { %3646 = vmatprep.subr.bf16.mxu1 %v7091_v40  ;;  %3687 = vmatprep.subr.bf16.mxu0 %v7094_v52  ;;  %v7113_v40 = vld [vmem:[#allocation7 + $0xc80] ss:$16 sps:$4 sm:$0xff]   ;;  %v7121_v52 = vld [vmem:[#allocation7 + $0xc64] ss:$16 sps:$4 sm:$0xff]  }
 0x5d3   : > { %3647 = vmatpush2.bf16.msra.mxu1 %v7089_v42  ;;  %3688 = vmatpush2.bf16.msra.mxu0 %v7092_v43  ;;  %v7119_v42 = vld [vmem:[#allocation7 + $0xc60] ss:$16 sps:$4 sm:$0xff]   ;;  %v7127_v43 = vld [vmem:[#allocation7 + $0xc44] ss:$16 sps:$4 sm:$0xff]  }
 0x5d4   : > { %6327 = vmatprep.subr.bf16.mxu1 %v7900_v41  ;;  %4173 = vmatprep.subr.bf16.mxu0 %v7097_v28 }
 0x655   : > { %v3135_v47 = vpop.f32.mrf.mxu1  ;;  %v3176_v48 = vpop.f32.mrf.mxu0 }
 0x656   : > { %v3136_v49 = vadd.f32 %v3135_v47, %v2764_v45  ;;  %v3177_v62 = vadd.f32 %v3176_v48, %v2772_v61  ;;  %v7133_v45 = vld [vmem:[#allocation7 + $0xc24] ss:$16 sps:$4 sm:$0xff]   ;;  %v7137_v48 = vld [vmem:[#allocation7 + $0xc00] ss:$16 sps:$4 sm:$0xff]  }
 0x657   : > { %v3137_v0 = vpop.f32.mrf.mxu1  ;;  %v3178_v50 = vpop.f32.mrf.mxu0  ;;  %v7139_v47 = vld [vmem:[#allocation7 + $0xc04] ss:$16 sps:$4 sm:$0xff]  }
 0x658   : > { %v5992_v51 = vmul.f32 -1.442695, %v3136_v49  ;;  %v3138_v53 = vadd.f32 %v3137_v0, %v2768_v46  ;;  %v5994_v39 = vmul.f32 -1.442695, %v3177_v62  ;;  %v3179_v2 = vadd.f32 %v3178_v50, %v2776_v63  ;;  %v7131_v46 = vld [vmem:[#allocation7 + $0xc20] ss:$16 sps:$4 sm:$0xff]  }
 0x659   : > { %v3139_v54 = vpop.f32.mrf.mxu1  ;;  %v3180_v55 = vpop.f32.mrf.mxu0  ;;  %v7145_v49 = vld [vmem:[#allocation7 + $0xde4] ss:$16 sps:$4 sm:$0xff]   ;;  %v7143_v0 = vld [vmem:[#allocation7 + $0xde0] ss:$16 sps:$4 sm:$0xff]  }
 0x65a   : > { %7455 = vpow2.f32 %v5992_v51  ;;  %v5993_v56 = vmul.f32 -1.442695, %v3138_v53  ;;  %v7151_v50 = vld [vmem:[#allocation7 + $0xdc4] ss:$16 sps:$4 sm:$0xff]   ;;  %v7149_v51 = vld [vmem:[#allocation7 + $0xdc0] ss:$16 sps:$4 sm:$0xff]  }
 0x65b   : > { %v3140_v57 = vpop.f32.mrf.mxu1  ;;  %v3181_v60 = vpop.f32.mrf.mxu0  ;;  %v7157_v53 = vld [vmem:[#allocation7 + $0xda4] ss:$16 sps:$4 sm:$0xff]   ;;  %v7155_v54 = vld [vmem:[#allocation7 + $0xda0] ss:$16 sps:$4 sm:$0xff]  }
 0x65c   : > { %7457 = vpow2.f32 %v5993_v56  ;;  %v7163_v55 = vld [vmem:[#allocation7 + $0xd84] ss:$16 sps:$4 sm:$0xff]   ;;  %v7161_v56 = vld [vmem:[#allocation7 + $0xd80] ss:$16 sps:$4 sm:$0xff]  }
 0x65d   : > { %7459 = vpow2.f32 %v5994_v39  ;;  %v7169_v57 = vld [vmem:[#allocation7 + $0xd64] ss:$16 sps:$4 sm:$0xff]   ;;  %v7167_v60 = vld [vmem:[#allocation7 + $0xd60] ss:$16 sps:$4 sm:$0xff]  }
 0x65e   : > { %v7175_v61 = vld [vmem:[#allocation7 + $0xd44] ss:$16 sps:$4 sm:$0xff]   ;;  %v7173_v62 = vld [vmem:[#allocation7 + $0xd40] ss:$16 sps:$4 sm:$0xff]  }
 0x65f   : > { %v7181_v63 = vld [vmem:[#allocation7 + $0xd24] ss:$16 sps:$4 sm:$0xff]   ;;  %v7179_v39 = vld [vmem:[#allocation7 + $0xd20] ss:$16 sps:$4 sm:$0xff]  }
 0x667   : > { %v7456_v1 = vpop.eup %7455 }
 0x668   : > { %v3192_v3 = vadd.f32 1.0, %v7456_v1  ;;  %v3274_v1 = vld [vmem:[#allocation8 + $0x14] sm:$0xf] }
 0x669   : > { %v7458_v4 = vpop.eup %7457 }
 0x66a   : > { %7461 = vrcp.f32 %v3192_v3  ;;  %v3193_v5 = vadd.f32 1.0, %v7458_v4  ;;  %v7460_v6 = vpop.eup %7459  ;;  %v3283_v3 = vrot.slane %v3274_v1, %v8148_v18 }
 0x66b   : > { %7463 = vtanh.f32 %v3179_v2  ;;  %v3194_v10 = vadd.f32 1.0, %v7460_v6  ;;  %v3279_v2 = vrot.slane %v3274_v1, %v8146_v16 }
 0x66c   : > { %7465 = vrcp.f32 %v3193_v5 }
 0x66d   : > { %7467 = vrcp.f32 %v3194_v10 }
 0x677   : > { %v7462_v7 = vpop.eup %7461 }
 0x678   : > { %v7464_v8 = vpop.eup %7463 }
 0x679   : > { %v7466_v9 = vpop.eup %7465  ;;  %v3203_v11 = vmul.f32 %v7464_v8, %v7462_v7 }
 0x67a   : > { %v3202_v58 = vmul.f32 %v7466_v9, %v8169_v35  ;;  %v7468_v13 = vpop.eup %7467  ;;  %v7536_v35 = vld [vmem:[#allocation10 + $0x30] sm:$0xff]  }
 0x67c   : > { %v8220_v12 = vadd.f32 %v3203_v11, %v3202_v58 }
 0x67e   : > { %7469 = vtanh.f32 %v8220_v12 }
 0x68b   : > { %v7470_v14 = vpop.eup %7469 }
 0x68c   : > { %v3206_v15 = vmul.f32 %v7470_v14, %v7468_v13 }
 0x68e   : > { %v8223_v17 = vpack.c.bf16 %v3206_v15, %v3206_v15 }
 0x690   : > { %3649 = vmatmul.mubr.bf16.vlgmr.msra.gmra.mxu1 %v8223_v17  ;;  %3690 = vmatmul.mubr.bf16.vlgmr.msra.gmra.mxu0 %v8223_v17 }
 0x691   : > { %4205 = vmatprep.mubr.bf16.mxu0 %v8208_v34  ;;  %6328 = vmatpush3.bf16.msra.mxu1 %v7535_v19  ;;  %v3287_v19 = vrot.slane %v3274_v1, %v8152_v26 }
 0x692   : > { %6329 = vmatprep.subr.bf16.mxu1 %v7900_v41  ;;  %6343 = vmatprep.mubr.msk.bf16.mxu1 %vm7901_vm0, %v7900_v41 }
 0x693   : > { %4174 = vmatpush1.bf16.msra.mxu0 %v7095_v27 }
 0x694   : > { %4175 = vmatprep.subr.bf16.mxu0 %v7103_v31 }
 0x695   : > { %6330 = vmatpush3.bf16.msra.mxu1 %v7536_v35 }
 0x696   : > { %6331 = vmatprep.subr.bf16.mxu1 %v7900_v41 }
 0x697   : > { %4176 = vmatpush1.bf16.msra.mxu0 %v7101_v32 }
 0x698   : > { %4177 = vmatprep.subr.bf16.mxu0 %v7109_v36 }
 0x699   : > { %6332 = vmatpush3.bf16.msra.mxu1 %v7537_v20  ;;  %v3291_v20 = vrot.slane %v3274_v1, %v8155_v33  ;;  %v7160_v1 = vld [vmem:[#allocation7 + $0xdac] ss:$16 sps:$4 sm:$0xff]  }
 0x69a   : > { %6333 = vmatprep.subr.bf16.mxu1 %v7900_v41 }
 0x69b   : > { %4178 = vmatpush1.bf16.msra.mxu0 %v7107_v37 }
 0x69c   : > { %4179 = vmatprep.subr.bf16.mxu0 %v7115_v38 }
 0x69d   : > { %6334 = vmatpush3.bf16.msra.mxu1 %v7538_v21 }
 0x69e   : > { %6335 = vmatprep.subr.bf16.mxu1 %v7900_v41 }
 0x69f   : > { %4180 = vmatpush1.bf16.msra.mxu0 %v7113_v40 }
 0x6a0   : > { %4181 = vmatprep.subr.bf16.mxu0 %v7121_v52 }
 0x6a1   : > { %6336 = vmatpush3.bf16.msra.mxu1 %v7539_v22 }
 0x6a2   : > { %6337 = vmatprep.subr.bf16.mxu1 %v7900_v41 }
 0x6a3   : > { %4182 = vmatpush1.bf16.msra.mxu0 %v7119_v42 }
 0x6a4   : > { %4183 = vmatprep.subr.bf16.mxu0 %v7127_v43 }
 0x6a5   : > { %6338 = vmatpush3.bf16.msra.mxu1 %v7540_v23 }
 0x6a6   : > { %6339 = vmatprep.subr.bf16.mxu1 %v7900_v41 }
 0x6a7   : > { %4184 = vmatpush1.bf16.msra.mxu0 %v7125_v44 }
 0x6a8   : > { %4185 = vmatprep.subr.bf16.mxu0 %v7133_v45  ;;  %v7098_v45 = vld [vmem:[#allocation7 + $0xce8] ss:$16 sps:$4 sm:$0xff]  }
 0x6a9   : > { %6340 = vmatpush3.bf16.msra.mxu1 %v7541_v24 }
 0x6aa   : > { %6341 = vmatprep.subr.bf16.mxu1 %v7900_v41 }
 0x6ab   : > { %4186 = vmatpush1.bf16.msra.mxu0 %v7131_v46 }
 0x6ac   : > { %4187 = vmatprep.subr.bf16.mxu0 %v7139_v47  ;;  %v7106_v47 = vld [vmem:[#allocation7 + $0xccc] ss:$16 sps:$4 sm:$0xff]  }
 0x6ad   : > { %6342 = vmatpush3.bf16.msra.mxu1 %v7542_v25 }
 0x6ae   : > { %4214 = vmatprep.subr.bf16.mxu1 %v7100_v30 }
 0x6af   : > { %4188 = vmatpush1.bf16.msra.mxu0 %v7137_v48  ;;  %v7112_v48 = vld [vmem:[#allocation7 + $0xcac] ss:$16 sps:$4 sm:$0xff]  }
 0x6b0   : > { %4189 = vmatprep.subr.bf16.mxu0 %v7145_v49  ;;  %v7110_v49 = vld [vmem:[#allocation7 + $0xca8] ss:$16 sps:$4 sm:$0xff]  }
 0x6b3   : > { %4190 = vmatpush2.bf16.msra.mxu0 %v7143_v0  ;;  %v7118_v0 = vld [vmem:[#allocation7 + $0xc8c] ss:$16 sps:$4 sm:$0xff]  }
 0x6b4   : > { %4191 = vmatprep.subr.bf16.mxu0 %v7151_v50  ;;  %v7116_v50 = vld [vmem:[#allocation7 + $0xc88] ss:$16 sps:$4 sm:$0xff]  }
 0x6b7   : > { %4192 = vmatpush2.bf16.msra.mxu0 %v7149_v51  ;;  %v7124_v51 = vld [vmem:[#allocation7 + $0xc6c] ss:$16 sps:$4 sm:$0xff]  }
 0x6b8   : > { %4193 = vmatprep.subr.bf16.mxu0 %v7157_v53  ;;  %v7122_v53 = vld [vmem:[#allocation7 + $0xc68] ss:$16 sps:$4 sm:$0xff]  }
 0x6bb   : > { %4194 = vmatpush2.bf16.msra.mxu0 %v7155_v54  ;;  %v7130_v54 = vld [vmem:[#allocation7 + $0xc4c] ss:$16 sps:$4 sm:$0xff]  }
 0x6bc   : > { %4195 = vmatprep.subr.bf16.mxu0 %v7163_v55  ;;  %v7128_v55 = vld [vmem:[#allocation7 + $0xc48] ss:$16 sps:$4 sm:$0xff]  }
 0x6bf   : > { %4196 = vmatpush2.bf16.msra.mxu0 %v7161_v56  ;;  %v7134_v56 = vld [vmem:[#allocation7 + $0xc28] ss:$16 sps:$4 sm:$0xff]  }
 0x6c0   : > { %4197 = vmatprep.subr.bf16.mxu0 %v7169_v57  ;;  %v7142_v57 = vld [vmem:[#allocation7 + $0xc0c] ss:$16 sps:$4 sm:$0xff]  }
 0x6c3   : > { %4198 = vmatpush2.bf16.msra.mxu0 %v7167_v60  ;;  %v7140_v60 = vld [vmem:[#allocation7 + $0xc08] ss:$16 sps:$4 sm:$0xff]  }
 0x6c4   : > { %4199 = vmatprep.subr.bf16.mxu0 %v7175_v61  ;;  %v7148_v61 = vld [vmem:[#allocation7 + $0xdec] ss:$16 sps:$4 sm:$0xff]  }
 0x6c7   : > { %4200 = vmatpush2.bf16.msra.mxu0 %v7173_v62  ;;  %v7146_v62 = vld [vmem:[#allocation7 + $0xde8] ss:$16 sps:$4 sm:$0xff]  }
 0x6c8   : > { %4201 = vmatprep.subr.bf16.mxu0 %v7181_v63  ;;  %v7154_v63 = vld [vmem:[#allocation7 + $0xdcc] ss:$16 sps:$4 sm:$0xff]  }
 0x6cb   : > { %4202 = vmatpush2.bf16.msra.mxu0 %v7179_v39  ;;  %v7152_v39 = vld [vmem:[#allocation7 + $0xdc8] ss:$16 sps:$4 sm:$0xff]  }
 0x750   : > { %v3650_v4 = vpop.f32.mrf.mxu1  ;;  %v3691_v5 = vpop.f32.mrf.mxu0 }
 0x751   : > { %v3651_v6 = vadd.f32 %v3650_v4, %v3279_v2  ;;  %v3692_v35 = vadd.f32 %v3691_v5, %v3287_v19  ;;  %v7158_v2 = vld [vmem:[#allocation7 + $0xda8] ss:$16 sps:$4 sm:$0xff]   ;;  %v7172_v5 = vld [vmem:[#allocation7 + $0xd6c] ss:$16 sps:$4 sm:$0xff]  }
 0x752   : > { %v3652_v7 = vpop.f32.mrf.mxu1  ;;  %v3693_v8 = vpop.f32.mrf.mxu0  ;;  %v7164_v4 = vld [vmem:[#allocation7 + $0xd88] ss:$16 sps:$4 sm:$0xff]   ;;  %v7196_v19 = vld [vmem:[#allocation7 + $0xeec] ss:$16 sps:$4 sm:$0xff]  }
 0x753   : > { %v6059_v9 = vmul.f32 -1.442695, %v3651_v6  ;;  %v3653_v10 = vadd.f32 %v3652_v7, %v3283_v3  ;;  %v6061_v21 = vmul.f32 -1.442695, %v3692_v35  ;;  %v3694_v23 = vadd.f32 %v3693_v8, %v3291_v20  ;;  %v7166_v3 = vld [vmem:[#allocation7 + $0xd8c] ss:$16 sps:$4 sm:$0xff]  }
 0x754   : > { %v3654_v58 = vpop.f32.mrf.mxu1  ;;  %v3695_v11 = vpop.f32.mrf.mxu0  ;;  %v7170_v6 = vld [vmem:[#allocation7 + $0xd68] ss:$16 sps:$4 sm:$0xff]   ;;  %v7178_v7 = vld [vmem:[#allocation7 + $0xd4c] ss:$16 sps:$4 sm:$0xff]   ;;  %v7543_v20 = vld [vmem:[#allocation11] ss:$0 sm:$0xff] }
 0x755   : > { %7471 = vpow2.f32 %v6059_v9  ;;  %v6060_v13 = vmul.f32 -1.442695, %v3653_v10  ;;  %v7176_v8 = vld [vmem:[#allocation7 + $0xd48] ss:$16 sps:$4 sm:$0xff]   ;;  %v7184_v9 = vld [vmem:[#allocation7 + $0xd2c] ss:$16 sps:$4 sm:$0xff]  }
 0x756   : > { %v3655_v14 = vpop.f32.mrf.mxu1  ;;  %v3696_v15 = vpop.f32.mrf.mxu0  ;;  %v7182_v10 = vld [vmem:[#allocation7 + $0xd28] ss:$16 sps:$4 sm:$0xff]   ;;  %v7187_v58 = vld [vmem:[#allocation7 + $0xd04] ss:$16 sps:$4 sm:$0xff]   ;;  %v7190_v11 = vld [vmem:[#allocation7 + $0xd0c] ss:$16 sps:$4 sm:$0xff]  }
 0x757   : > { %7473 = vpow2.f32 %v6060_v13  ;;  %v7185_v13 = vld [vmem:[#allocation7 + $0xd00] ss:$16 sps:$4 sm:$0xff]   ;;  %v7188_v14 = vld [vmem:[#allocation7 + $0xd08] ss:$16 sps:$4 sm:$0xff]   ;;  %4203 = vmatprep.subr.bf16.mxu0 %v7187_v58  ;;  %v7193_v15 = vld [vmem:[#allocation7 + $0xee4] ss:$16 sps:$4 sm:$0xff]  }
 0x758   : > { %7475 = vpow2.f32 %v6061_v21  ;;  %4204 = vmatpush2.bf16.msra.mxu0 %v7185_v13  ;;  %v7259_v58 = vld [vmem:[#allocation7 + $0xf84] ss:$16 sps:$4 sm:$0xff]   ;;  %v7257_v13 = vld [vmem:[#allocation7 + $0xf80] ss:$16 sps:$4 sm:$0xff]  }
 0x759   : > { %4688 = vmatprep.subr.bf16.mxu0 %v7193_v15  ;;  %v7265_v15 = vld [vmem:[#allocation7 + $0xf64] ss:$16 sps:$4 sm:$0xff]  }
 0x762   : > { %v7472_v22 = vpop.eup %7471 }
 0x763   : > { %v3707_v24 = vadd.f32 1.0, %v7472_v22 }
 0x764   : > { %v7474_v25 = vpop.eup %7473 }
 0x765   : > { %7477 = vrcp.f32 %v3707_v24  ;;  %v3708_v27 = vadd.f32 1.0, %v7474_v25  ;;  %v7476_v28 = vpop.eup %7475  ;;  %v7191_v24 = vld [vmem:[#allocation7 + $0xee0] ss:$16 sps:$4 sm:$0xff]   ;;  %v7194_v25 = vld [vmem:[#allocation7 + $0xee8] ss:$16 sps:$4 sm:$0xff]  }
 0x766   : > { %7479 = vtanh.f32 %v3694_v23  ;;  %v3709_v36 = vadd.f32 1.0, %v7476_v28  ;;  %v7199_v28 = vld [vmem:[#allocation7 + $0xec4] ss:$16 sps:$4 sm:$0xff]  }
 0x767   : > { %7481 = vrcp.f32 %v3708_v27 }
 0x768   : > { %7483 = vrcp.f32 %v3709_v36  ;;  %v7200_v36 = vld [vmem:[#allocation7 + $0xec8] ss:$16 sps:$4 sm:$0xff]  }
 0x772   : > { %v7478_v30 = vpop.eup %7477 }
 0x773   : > { %v7480_v31 = vpop.eup %7479 }
 0x774   : > { %v7482_v32 = vpop.eup %7481  ;;  %v3718_v38 = vmul.f32 %v7480_v31, %v7478_v30  ;;  %v7202_v30 = vld [vmem:[#allocation7 + $0xecc] ss:$16 sps:$4 sm:$0xff]  }
 0x775   : > { %v3717_v37 = vmul.f32 %v7482_v32, %v8191_v59  ;;  %v7484_v52 = vpop.eup %7483  ;;  %v7104_v59 = vld [vmem:[#allocation7 + $0xcc8] ss:$16 sps:$4 sm:$0xff]   ;;  %v7197_v32 = vld [vmem:[#allocation7 + $0xec0] ss:$16 sps:$4 sm:$0xff]  }
 0x777   : > { %v8242_v40 = vadd.f32 %v3718_v38, %v3717_v37  ;;  %v7205_v37 = vld [vmem:[#allocation7 + $0xea4] ss:$16 sps:$4 sm:$0xff]   ;;  %v7208_v38 = vld [vmem:[#allocation7 + $0xeac] ss:$16 sps:$4 sm:$0xff]  }
 0x779   : > { %7485 = vtanh.f32 %v8242_v40 }
 0x786   : > { %v7486_v42 = vpop.eup %7485 }
 0x787   : > { %v8245_v43 = vmul.f32 %v7486_v42, %v7484_v52  ;;  %v7203_v52 = vld [vmem:[#allocation7 + $0xea0] ss:$16 sps:$4 sm:$0xff]   ;;  %v7206_v42 = vld [vmem:[#allocation7 + $0xea8] ss:$16 sps:$4 sm:$0xff]  }
 0x789   : > { %v3722_v44 = vmax.f32 %v8245_v43, 0.0 }
 0x78b   : > { %v3723_v46 = vpack.c.bf16 %v3722_v44, %v3722_v44  ;;  %v7211_v44 = vld [vmem:[#allocation7 + $0xe84] ss:$16 sps:$4 sm:$0xff]  }
 0x78d   : > { %6344 = vmatmul.mubr.bf16.vlgmr.msra.gmra.mxu1 %v3723_v46  ;;  %v7209_v46 = vld [vmem:[#allocation7 + $0xe80] ss:$16 sps:$4 sm:$0xff]  }
 0x78e   : > { %4246 = vmatprep.mubr.bf16.mxu1 %v8208_v34  ;;  %4215 = vmatpush1.bf16.msra.mxu1 %v7098_v45  ;;  %v7136_v34 = vld [vmem:[#allocation7 + $0xc2c] ss:$16 sps:$4 sm:$0xff]  }
 0x78f   : > { %4216 = vmatprep.subr.bf16.mxu1 %v7106_v47  ;;  %v7214_v45 = vld [vmem:[#allocation7 + $0xe8c] ss:$16 sps:$4 sm:$0xff]   ;;  %v7217_v47 = vld [vmem:[#allocation7 + $0xe64] ss:$16 sps:$4 sm:$0xff]  }
 0x792   : > { %4217 = vmatpush1.bf16.msra.mxu1 %v7104_v59  ;;  %v7220_v59 = vld [vmem:[#allocation7 + $0xe6c] ss:$16 sps:$4 sm:$0xff]  }
 0x793   : > { %4218 = vmatprep.subr.bf16.mxu1 %v7112_v48  ;;  %v7215_v48 = vld [vmem:[#allocation7 + $0xe60] ss:$16 sps:$4 sm:$0xff]  }
 0x796   : > { %4219 = vmatpush1.bf16.msra.mxu1 %v7110_v49  ;;  %v7218_v49 = vld [vmem:[#allocation7 + $0xe68] ss:$16 sps:$4 sm:$0xff]  }
 0x797   : > { %4220 = vmatprep.subr.bf16.mxu1 %v7118_v0  ;;  %v7223_v0 = vld [vmem:[#allocation7 + $0xe44] ss:$16 sps:$4 sm:$0xff]  }
 0x79a   : > { %4221 = vmatpush1.bf16.msra.mxu1 %v7116_v50  ;;  %v7226_v50 = vld [vmem:[#allocation7 + $0xe4c] ss:$16 sps:$4 sm:$0xff]  }
 0x79b   : > { %4222 = vmatprep.subr.bf16.mxu1 %v7124_v51  ;;  %v7221_v51 = vld [vmem:[#allocation7 + $0xe40] ss:$16 sps:$4 sm:$0xff]  }
 0x79e   : > { %4223 = vmatpush1.bf16.msra.mxu1 %v7122_v53  ;;  %v7224_v53 = vld [vmem:[#allocation7 + $0xe48] ss:$16 sps:$4 sm:$0xff]  }
 0x79f   : > { %4224 = vmatprep.subr.bf16.mxu1 %v7130_v54  ;;  %v7229_v54 = vld [vmem:[#allocation7 + $0xe24] ss:$16 sps:$4 sm:$0xff]  }
 0x7a2   : > { %4225 = vmatpush1.bf16.msra.mxu1 %v7128_v55  ;;  %v7232_v55 = vld [vmem:[#allocation7 + $0xe2c] ss:$16 sps:$4 sm:$0xff]  }
 0x7a3   : > { %4226 = vmatprep.subr.bf16.mxu1 %v7136_v34  ;;  %v7227_v34 = vld [vmem:[#allocation7 + $0xe20] ss:$16 sps:$4 sm:$0xff]  }
 0x7a6   : > { %4227 = vmatpush1.bf16.msra.mxu1 %v7134_v56  ;;  %v7230_v56 = vld [vmem:[#allocation7 + $0xe28] ss:$16 sps:$4 sm:$0xff]  }
 0x7a7   : > { %4228 = vmatprep.subr.bf16.mxu1 %v7142_v57  ;;  %v7235_v57 = vld [vmem:[#allocation7 + $0xe04] ss:$16 sps:$4 sm:$0xff]  }
 0x7aa   : > { %4229 = vmatpush1.bf16.msra.mxu1 %v7140_v60  ;;  %v7238_v60 = vld [vmem:[#allocation7 + $0xe0c] ss:$16 sps:$4 sm:$0xff]  }
 0x7ab   : > { %4230 = vmatprep.subr.bf16.mxu1 %v7148_v61  ;;  %v7233_v61 = vld [vmem:[#allocation7 + $0xe00] ss:$16 sps:$4 sm:$0xff]  }
 0x7ae   : > { %4231 = vmatpush2.bf16.msra.mxu1 %v7146_v62  ;;  %v7236_v62 = vld [vmem:[#allocation7 + $0xe08] ss:$16 sps:$4 sm:$0xff]  }
 0x7af   : > { %4232 = vmatprep.subr.bf16.mxu1 %v7154_v63  ;;  %v7241_v63 = vld [vmem:[#allocation7 + $0xfe4] ss:$16 sps:$4 sm:$0xff]  }
 0x7b2   : > { %4233 = vmatpush2.bf16.msra.mxu1 %v7152_v39  ;;  %v7244_v39 = vld [vmem:[#allocation7 + $0xfec] ss:$16 sps:$4 sm:$0xff]  }
 0x7b3   : > { %4234 = vmatprep.subr.bf16.mxu1 %v7160_v1  ;;  %v7239_v1 = vld [vmem:[#allocation7 + $0xfe0] ss:$16 sps:$4 sm:$0xff]  }
 0x7b6   : > { %4235 = vmatpush2.bf16.msra.mxu1 %v7158_v2  ;;  %v7242_v2 = vld [vmem:[#allocation7 + $0xfe8] ss:$16 sps:$4 sm:$0xff]  }
 0x7b7   : > { %4236 = vmatprep.subr.bf16.mxu1 %v7166_v3  ;;  %v7247_v3 = vld [vmem:[#allocation7 + $0xfc4] ss:$16 sps:$4 sm:$0xff]  }
 0x7ba   : > { %4237 = vmatpush2.bf16.msra.mxu1 %v7164_v4  ;;  %v7250_v4 = vld [vmem:[#allocation7 + $0xfcc] ss:$16 sps:$4 sm:$0xff]  }
 0x7bb   : > { %4238 = vmatprep.subr.bf16.mxu1 %v7172_v5  ;;  %v7245_v5 = vld [vmem:[#allocation7 + $0xfc0] ss:$16 sps:$4 sm:$0xff]  }
 0x7be   : > { %4239 = vmatpush2.bf16.msra.mxu1 %v7170_v6  ;;  %v7248_v6 = vld [vmem:[#allocation7 + $0xfc8] ss:$16 sps:$4 sm:$0xff]  }
 0x7bf   : > { %4240 = vmatprep.subr.bf16.mxu1 %v7178_v7  ;;  %v7253_v7 = vld [vmem:[#allocation7 + $0xfa4] ss:$16 sps:$4 sm:$0xff]  }
 0x7c2   : > { %4241 = vmatpush2.bf16.msra.mxu1 %v7176_v8  ;;  %v7256_v8 = vld [vmem:[#allocation7 + $0xfac] ss:$16 sps:$4 sm:$0xff]  }
 0x7c3   : > { %4242 = vmatprep.subr.bf16.mxu1 %v7184_v9  ;;  %v7251_v9 = vld [vmem:[#allocation7 + $0xfa0] ss:$16 sps:$4 sm:$0xff]  }
 0x7c6   : > { %4243 = vmatpush2.bf16.msra.mxu1 %v7182_v10  ;;  %v7254_v10 = vld [vmem:[#allocation7 + $0xfa8] ss:$16 sps:$4 sm:$0xff]  }
 0x7c7   : > { %4244 = vmatprep.subr.bf16.mxu1 %v7190_v11  ;;  %v7262_v11 = vld [vmem:[#allocation7 + $0xf8c] ss:$16 sps:$4 sm:$0xff]  }
 0x7ca   : > { %4245 = vmatpush2.bf16.msra.mxu1 %v7188_v14  ;;  %v7260_v14 = vld [vmem:[#allocation7 + $0xf88] ss:$16 sps:$4 sm:$0xff]  }
 0x7cb   : > { %4729 = vmatprep.subr.bf16.mxu1 %v7196_v19  ;;  %v7268_v19 = vld [vmem:[#allocation7 + $0xf6c] ss:$16 sps:$4 sm:$0xff]  }
 0x84d   : > { %v3758_v35 = vpop.f32.mrf.mxu1 }
 0x84e   : > { %v3759_v21 = vadd.f32 %v7543_v20, %v3758_v35  ;;  %v7263_v35 = vld [vmem:[#allocation7 + $0xf60] ss:$16 sps:$4 sm:$0xff]   ;;  %v7266_v20 = vld [vmem:[#allocation7 + $0xf68] ss:$16 sps:$4 sm:$0xff]  }
 0x84f   : > { %v6345_v22 = vpop.f32.mrf.mxu1 }
 0x850   : > { %v3764_v23 = vpack.c.bf16 %v3759_v21, %v3759_v21  ;;  %v7271_v21 = vld [vmem:[#allocation7 + $0xf44] ss:$16 sps:$4 sm:$0xff]   ;;  %v7274_v22 = vld [vmem:[#allocation7 + $0xf4c] ss:$16 sps:$4 sm:$0xff]  }
 0x851   : > { %v3761_v27 = vpop.f32.mrf.mxu1 }
 0x852   : > { %4206 = vmatmul.mubr.bf16.vlgmr.msra.gmra.mxu0 %v3764_v23  ;;  %4247 = vmatmul.mubr.bf16.vlgmr.msra.gmra.mxu1 %v3764_v23  ;;  %v7269_v23 = vld [vmem:[#allocation7 + $0xf40] ss:$16 sps:$4 sm:$0xff]   ;;  %v7280_v27 = vld [vmem:[#allocation7 + $0xf2c] ss:$16 sps:$4 sm:$0xff]  }
 0x853   : > { %v6346_v31 = vpop.f32.mrf.mxu1  ;;  %4720 = vmatprep.mubr.bf16.mxu0 %v8223_v17  ;;  %4761 = vmatprep.mubr.bf16.mxu1 %v8223_v17  ;;  %v7212_v17 = vld [vmem:[#allocation7 + $0xe88] ss:$16 sps:$4 sm:$0xff]  }
 0x854   : > { %4689 = vmatpush1.bf16.msra.mxu0 %v7191_v24  ;;  %4730 = vmatpush1.bf16.msra.mxu1 %v7194_v25  ;;  %v7272_v24 = vld [vmem:[#allocation7 + $0xf48] ss:$16 sps:$4 sm:$0xff]   ;;  %v7277_v25 = vld [vmem:[#allocation7 + $0xf24] ss:$16 sps:$4 sm:$0xff]  }
 0x855   : > { %4690 = vmatprep.subr.bf16.mxu0 %v7199_v28  ;;  %4731 = vmatprep.subr.bf16.mxu1 %v7202_v30  ;;  %v7275_v28 = vld [vmem:[#allocation7 + $0xf20] ss:$16 sps:$4 sm:$0xff]   ;;  %v7278_v30 = vld [vmem:[#allocation7 + $0xf28] ss:$16 sps:$4 sm:$0xff]   ;;  %v7283_v31 = vld [vmem:[#allocation7 + $0xf04] ss:$16 sps:$4 sm:$0xff]  }
 0x858   : > { %4691 = vmatpush1.bf16.msra.mxu0 %v7197_v32  ;;  %4732 = vmatpush1.bf16.msra.mxu1 %v7200_v36  ;;  %v7286_v32 = vld [vmem:[#allocation7 + $0xf0c] ss:$16 sps:$4 sm:$0xff]   ;;  %v7281_v36 = vld [vmem:[#allocation7 + $0xf00] ss:$16 sps:$4 sm:$0xff]  }
 0x859   : > { %4692 = vmatprep.subr.bf16.mxu0 %v7205_v37  ;;  %4733 = vmatprep.subr.bf16.mxu1 %v7208_v38  ;;  %v7284_v37 = vld [vmem:[#allocation7 + $0xf08] ss:$16 sps:$4 sm:$0xff]   ;;  %v7289_v38 = vld [vmem:[#allocation7 + $0x10e4] ss:$16 sps:$4 sm:$0xff]  }
 0x85c   : > { %4693 = vmatpush1.bf16.msra.mxu0 %v7203_v52  ;;  %4734 = vmatpush1.bf16.msra.mxu1 %v7206_v42  ;;  %v7292_v52 = vld [vmem:[#allocation7 + $0x10ec] ss:$16 sps:$4 sm:$0xff]   ;;  %v3831_v42 = vld [vmem:[#allocation8 + $0x18] sm:$0xf] }
 0x85d   : > { %4694 = vmatprep.subr.bf16.mxu0 %v7211_v44  ;;  %4735 = vmatprep.subr.bf16.mxu1 %v7214_v45  ;;  %v3836_v44 = vrot.slane %v3831_v42, %v8146_v16  ;;  %v3840_v45 = vrot.slane %v3831_v42, %v8148_v18 }
 0x860   : > { %4695 = vmatpush1.bf16.msra.mxu0 %v7209_v46  ;;  %4736 = vmatpush1.bf16.msra.mxu1 %v7212_v17 }
 0x861   : > { %4696 = vmatprep.subr.bf16.mxu0 %v7217_v47  ;;  %4737 = vmatprep.subr.bf16.mxu1 %v7220_v59 }
 0x864   : > { %4697 = vmatpush1.bf16.msra.mxu0 %v7215_v48  ;;  %4738 = vmatpush1.bf16.msra.mxu1 %v7218_v49 }
 0x865   : > { %4698 = vmatprep.subr.bf16.mxu0 %v7223_v0  ;;  %4739 = vmatprep.subr.bf16.mxu1 %v7226_v50 }
 0x868   : > { %4699 = vmatpush1.bf16.msra.mxu0 %v7221_v51  ;;  %4740 = vmatpush1.bf16.msra.mxu1 %v7224_v53 }
 0x869   : > { %4700 = vmatprep.subr.bf16.mxu0 %v7229_v54  ;;  %4741 = vmatprep.subr.bf16.mxu1 %v7232_v55 }
 0x86c   : > { %4701 = vmatpush1.bf16.msra.mxu0 %v7227_v34  ;;  %4742 = vmatpush1.bf16.msra.mxu1 %v7230_v56  ;;  %v3844_v34 = vrot.slane %v3831_v42, %v8152_v26 }
 0x86d   : > { %4702 = vmatprep.subr.bf16.mxu0 %v7235_v57  ;;  %4743 = vmatprep.subr.bf16.mxu1 %v7238_v60  ;;  %v3848_v57 = vrot.slane %v3831_v42, %v8155_v33  ;;  %v7317_v42 = vld [vmem:[#allocation7 + $0x1040] ss:$16 sps:$4 sm:$0xff]  }
 0x870   : > { %4703 = vmatpush1.bf16.msra.mxu0 %v7233_v61  ;;  %4744 = vmatpush1.bf16.msra.mxu1 %v7236_v62 }
 0x871   : > { %4704 = vmatprep.subr.bf16.mxu0 %v7241_v63  ;;  %4745 = vmatprep.subr.bf16.mxu1 %v7244_v39 }
 0x874   : > { %4705 = vmatpush2.bf16.msra.mxu0 %v7239_v1  ;;  %4746 = vmatpush2.bf16.msra.mxu1 %v7242_v2 }
 0x875   : > { %4706 = vmatprep.subr.bf16.mxu0 %v7247_v3  ;;  %4747 = vmatprep.subr.bf16.mxu1 %v7250_v4 }
 0x878   : > { %4707 = vmatpush2.bf16.msra.mxu0 %v7245_v5  ;;  %4748 = vmatpush2.bf16.msra.mxu1 %v7248_v6 }
 0x879   : > { %4708 = vmatprep.subr.bf16.mxu0 %v7253_v7  ;;  %4749 = vmatprep.subr.bf16.mxu1 %v7256_v8 }
 0x87c   : > { %4709 = vmatpush2.bf16.msra.mxu0 %v7251_v9  ;;  %4750 = vmatpush2.bf16.msra.mxu1 %v7254_v10 }
 0x87d   : > { %4710 = vmatprep.subr.bf16.mxu0 %v7259_v58  ;;  %4751 = vmatprep.subr.bf16.mxu1 %v7262_v11 }
 0x880   : > { %4711 = vmatpush2.bf16.msra.mxu0 %v7257_v13  ;;  %4752 = vmatpush2.bf16.msra.mxu1 %v7260_v14  ;;  %v7287_v14 = vld [vmem:[#allocation7 + $0x10e0] ss:$16 sps:$4 sm:$0xff]  }
 0x881   : > { %4712 = vmatprep.subr.bf16.mxu0 %v7265_v15  ;;  %4753 = vmatprep.subr.bf16.mxu1 %v7268_v19  ;;  %v7290_v15 = vld [vmem:[#allocation7 + $0x10e8] ss:$16 sps:$4 sm:$0xff]   ;;  %v4795_v19 = vpack.c.bf16 %v8245_v43, %v8245_v43  ;;  %v7307_v43 = vld [vmem:[#allocation7 + $0x1084] ss:$16 sps:$4 sm:$0xff]  }
 0x884   : > { %4713 = vmatpush2.bf16.msra.mxu0 %v7263_v35  ;;  %4754 = vmatpush2.bf16.msra.mxu1 %v7266_v20  ;;  %v7295_v35 = vld [vmem:[#allocation7 + $0x10c4] ss:$16 sps:$4 sm:$0xff]   ;;  %v7298_v20 = vld [vmem:[#allocation7 + $0x10cc] ss:$16 sps:$4 sm:$0xff]  }
 0x885   : > { %4714 = vmatprep.subr.bf16.mxu0 %v7271_v21  ;;  %4755 = vmatprep.subr.bf16.mxu1 %v7274_v22  ;;  %v7296_v21 = vld [vmem:[#allocation7 + $0x10c8] ss:$16 sps:$4 sm:$0xff]   ;;  %v7301_v22 = vld [vmem:[#allocation7 + $0x10a4] ss:$16 sps:$4 sm:$0xff]  }
 0x888   : > { %4715 = vmatpush2.bf16.msra.mxu0 %v7269_v23  ;;  %4756 = vmatpush2.bf16.msra.mxu1 %v7272_v24  ;;  %v7304_v23 = vld [vmem:[#allocation7 + $0x10ac] ss:$16 sps:$4 sm:$0xff]   ;;  %v7299_v24 = vld [vmem:[#allocation7 + $0x10a0] ss:$16 sps:$4 sm:$0xff]  }
 0x889   : > { %4716 = vmatprep.subr.bf16.mxu0 %v7277_v25  ;;  %4757 = vmatprep.subr.bf16.mxu1 %v7280_v27  ;;  %v7302_v25 = vld [vmem:[#allocation7 + $0x10a8] ss:$16 sps:$4 sm:$0xff]   ;;  %v7310_v27 = vld [vmem:[#allocation7 + $0x108c] ss:$16 sps:$4 sm:$0xff]  }
 0x88c   : > { %4717 = vmatpush2.bf16.msra.mxu0 %v7275_v28  ;;  %4758 = vmatpush2.bf16.msra.mxu1 %v7278_v30  ;;  %v7305_v28 = vld [vmem:[#allocation7 + $0x1080] ss:$16 sps:$4 sm:$0xff]   ;;  %v7308_v30 = vld [vmem:[#allocation7 + $0x1088] ss:$16 sps:$4 sm:$0xff]  }
 0x88d   : > { %4718 = vmatprep.subr.bf16.mxu0 %v7283_v31  ;;  %4759 = vmatprep.subr.bf16.mxu1 %v7286_v32  ;;  %v7313_v31 = vld [vmem:[#allocation7 + $0x1064] ss:$16 sps:$4 sm:$0xff]   ;;  %v7316_v32 = vld [vmem:[#allocation7 + $0x106c] ss:$16 sps:$4 sm:$0xff]  }
 0x890   : > { %4719 = vmatpush2.bf16.msra.mxu0 %v7281_v36  ;;  %4760 = vmatpush2.bf16.msra.mxu1 %v7284_v37  ;;  %v7311_v36 = vld [vmem:[#allocation7 + $0x1060] ss:$16 sps:$4 sm:$0xff]   ;;  %v7314_v37 = vld [vmem:[#allocation7 + $0x1068] ss:$16 sps:$4 sm:$0xff]  }
 0x891   : > { %5204 = vmatprep.subr.bf16.mxu0 %v7289_v38  ;;  %5245 = vmatprep.subr.bf16.mxu1 %v7292_v52  ;;  %v7319_v38 = vld [vmem:[#allocation7 + $0x1044] ss:$16 sps:$4 sm:$0xff]   ;;  %v7322_v52 = vld [vmem:[#allocation7 + $0x104c] ss:$16 sps:$4 sm:$0xff]  }
 0x912   : > { %v4207_v46 = vpop.f32.mrf.mxu0  ;;  %v4248_v17 = vpop.f32.mrf.mxu1 }
 0x913   : > { %v4208_v47 = vadd.f32 %v4207_v46, %v3836_v44  ;;  %v4249_v56 = vadd.f32 %v4248_v17, %v3844_v34  ;;  %v7320_v44 = vld [vmem:[#allocation7 + $0x1048] ss:$16 sps:$4 sm:$0xff]   ;;  %v7328_v46 = vld [vmem:[#allocation7 + $0x102c] ss:$16 sps:$4 sm:$0xff]   ;;  %v7323_v17 = vld [vmem:[#allocation7 + $0x1020] ss:$16 sps:$4 sm:$0xff]  }
 0x914   : > { %v4209_v59 = vpop.f32.mrf.mxu0  ;;  %v4250_v48 = vpop.f32.mrf.mxu1  ;;  %v7346_v34 = vld [vmem:[#allocation7 + $0x11cc] ss:$16 sps:$4 sm:$0xff]  }
 0x915   : > { %v6126_v49 = vmul.f32 -1.442695, %v4208_v47  ;;  %v4210_v0 = vadd.f32 %v4209_v59, %v3840_v45  ;;  %v6128_v60 = vmul.f32 -1.442695, %v4249_v56  ;;  %v4251_v62 = vadd.f32 %v4250_v48, %v3848_v57  ;;  %v7325_v45 = vld [vmem:[#allocation7 + $0x1024] ss:$16 sps:$4 sm:$0xff]  }
 0x916   : > { %v4211_v50 = vpop.f32.mrf.mxu0  ;;  %v4252_v51 = vpop.f32.mrf.mxu1  ;;  %v7326_v47 = vld [vmem:[#allocation7 + $0x1028] ss:$16 sps:$4 sm:$0xff]   ;;  %v7331_v59 = vld [vmem:[#allocation7 + $0x1004] ss:$16 sps:$4 sm:$0xff]   ;;  %v7334_v48 = vld [vmem:[#allocation7 + $0x100c] ss:$16 sps:$4 sm:$0xff]  }
 0x917   : > { %7487 = vpow2.f32 %v6126_v49  ;;  %v6127_v53 = vmul.f32 -1.442695, %v4210_v0  ;;  %v7329_v49 = vld [vmem:[#allocation7 + $0x1000] ss:$16 sps:$4 sm:$0xff]   ;;  %v7332_v0 = vld [vmem:[#allocation7 + $0x1008] ss:$16 sps:$4 sm:$0xff]  }
 0x918   : > { %v4212_v54 = vpop.f32.mrf.mxu0  ;;  %v4253_v55 = vpop.f32.mrf.mxu1  ;;  %v7337_v50 = vld [vmem:[#allocation7 + $0x11e4] ss:$16 sps:$4 sm:$0xff]   ;;  %v7340_v51 = vld [vmem:[#allocation7 + $0x11ec] ss:$16 sps:$4 sm:$0xff]   ;;  %v7341_v56 = vld [vmem:[#allocation7 + $0x11c0] ss:$16 sps:$4 sm:$0xff]  }
 0x919   : > { %7489 = vpow2.f32 %v6127_v53  ;;  %v7335_v53 = vld [vmem:[#allocation7 + $0x11e0] ss:$16 sps:$4 sm:$0xff]   ;;  %v7338_v54 = vld [vmem:[#allocation7 + $0x11e8] ss:$16 sps:$4 sm:$0xff]   ;;  %v7343_v55 = vld [vmem:[#allocation7 + $0x11c4] ss:$16 sps:$4 sm:$0xff]  }
 0x91a   : > { %7491 = vpow2.f32 %v6128_v60  ;;  %v7344_v57 = vld [vmem:[#allocation7 + $0x11c8] ss:$16 sps:$4 sm:$0xff]   ;;  %v7349_v60 = vld [vmem:[#allocation7 + $0x11a4] ss:$16 sps:$4 sm:$0xff]  }
 0x924   : > { %v7488_v61 = vpop.eup %7487 }
 0x925   : > { %v4264_v63 = vadd.f32 1.0, %v7488_v61  ;;  %v7352_v61 = vld [vmem:[#allocation7 + $0x11ac] ss:$16 sps:$4 sm:$0xff]  }
 0x926   : > { %v7490_v39 = vpop.eup %7489 }
 0x927   : > { %7493 = vrcp.f32 %v4264_v63  ;;  %v4265_v1 = vadd.f32 1.0, %v7490_v39  ;;  %v7492_v2 = vpop.eup %7491  ;;  %v7350_v63 = vld [vmem:[#allocation7 + $0x11a8] ss:$16 sps:$4 sm:$0xff]   ;;  %v7355_v39 = vld [vmem:[#allocation7 + $0x1184] ss:$16 sps:$4 sm:$0xff]  }
 0x928   : > { %7495 = vtanh.f32 %v4251_v62  ;;  %v4266_v6 = vadd.f32 1.0, %v7492_v2  ;;  %v7347_v62 = vld [vmem:[#allocation7 + $0x11a0] ss:$16 sps:$4 sm:$0xff]  }
 0x929   : > { %7497 = vrcp.f32 %v4265_v1  ;;  %v7358_v1 = vld [vmem:[#allocation7 + $0x118c] ss:$16 sps:$4 sm:$0xff]   ;;  %v7353_v2 = vld [vmem:[#allocation7 + $0x1180] ss:$16 sps:$4 sm:$0xff]  }
 0x92a   : > { %7499 = vrcp.f32 %v4266_v6  ;;  %v7359_v6 = vld [vmem:[#allocation7 + $0x1160] ss:$16 sps:$4 sm:$0xff]  }
 0x934   : > { %v7494_v3 = vpop.eup %7493 }
 0x935   : > { %v7496_v4 = vpop.eup %7495 }
 0x936   : > { %v7498_v5 = vpop.eup %7497  ;;  %v4275_v8 = vmul.f32 %v7496_v4, %v7494_v3  ;;  %v7356_v3 = vld [vmem:[#allocation7 + $0x1188] ss:$16 sps:$4 sm:$0xff]   ;;  %v7361_v4 = vld [vmem:[#allocation7 + $0x1164] ss:$16 sps:$4 sm:$0xff]  }
 0x937   : > { %v4274_v7 = vmul.f32 %v7498_v5, %v8205_v29  ;;  %v7500_v10 = vpop.eup %7499  ;;  %v7293_v29 = vld [vmem:[#allocation7 + $0x10c0] ss:$16 sps:$4 sm:$0xff]   ;;  %v7364_v5 = vld [vmem:[#allocation7 + $0x116c] ss:$16 sps:$4 sm:$0xff]  }
 0x939   : > { %v4276_v9 = vadd.f32 %v4275_v8, %v4274_v7  ;;  %v7362_v7 = vld [vmem:[#allocation7 + $0x1168] ss:$16 sps:$4 sm:$0xff]   ;;  %v7367_v8 = vld [vmem:[#allocation7 + $0x1144] ss:$16 sps:$4 sm:$0xff]  }
 0x93b   : > { %7501 = vtanh.f32 %v4276_v9  ;;  %5424 = vst [vmem:[#allocation19] sm:$0xff] %v4276_v9  ;;  %v7370_v9 = vld [vmem:[#allocation7 + $0x114c] ss:$16 sps:$4 sm:$0xff]  }
 0x948   : > { %v7502_v58 = vpop.eup %7501 }
 0x949   : > { %v4278_v11 = vmul.f32 %v7502_v58, %v7500_v10  ;;  %v7365_v10 = vld [vmem:[#allocation7 + $0x1140] ss:$16 sps:$4 sm:$0xff]   ;;  %v7368_v58 = vld [vmem:[#allocation7 + $0x1148] ss:$16 sps:$4 sm:$0xff]  }
 0x94b   : > { %v4279_v13 = vpack.c.bf16 %v4278_v11, %v4278_v11  ;;  %5423 = vst [vmem:[#allocation17] sm:$0xff] %v4278_v11  ;;  %v7373_v11 = vld [vmem:[#allocation7 + $0x1124] ss:$16 sps:$4 sm:$0xff]  }
 0x94d   : > { %4721 = vmatmul.mubr.bf16.vlgmr.msra.gmra.mxu0 %v4279_v13  ;;  %4762 = vmatmul.mubr.bf16.vlgmr.msra.gmra.mxu1 %v4279_v13  ;;  %v7376_v13 = vld [vmem:[#allocation7 + $0x112c] ss:$16 sps:$4 sm:$0xff]  }
 0x94e   : > { %5236 = vmatprep.mubr.bf16.mxu0 %v4795_v19  ;;  %5277 = vmatprep.mubr.bf16.mxu1 %v4795_v19  ;;  %v7379_v19 = vld [vmem:[#allocation7 + $0x1104] ss:$16 sps:$4 sm:$0xff]  }
 0x94f   : > { %5205 = vmatpush1.bf16.msra.mxu0 %v7287_v14  ;;  %5246 = vmatpush1.bf16.msra.mxu1 %v7290_v15  ;;  %v7371_v14 = vld [vmem:[#allocation7 + $0x1120] ss:$16 sps:$4 sm:$0xff]   ;;  %v7374_v15 = vld [vmem:[#allocation7 + $0x1128] ss:$16 sps:$4 sm:$0xff]  }
 0x950   : > { %5206 = vmatprep.subr.bf16.mxu0 %v7295_v35  ;;  %5247 = vmatprep.subr.bf16.mxu1 %v7298_v20  ;;  %v7382_v35 = vld [vmem:[#allocation7 + $0x110c] ss:$16 sps:$4 sm:$0xff]   ;;  %v7377_v20 = vld [vmem:[#allocation7 + $0x1100] ss:$16 sps:$4 sm:$0xff]  }
 0x953   : > { %5207 = vmatpush1.bf16.msra.mxu0 %v7293_v29  ;;  %5248 = vmatpush1.bf16.msra.mxu1 %v7296_v21  ;;  %v7380_v29 = vld [vmem:[#allocation7 + $0x1108] ss:$16 sps:$4 sm:$0xff]   ;;  %v4346_v21 = vld [vmem:[#allocation8 + $0x1c] sm:$0xf] }
 0x954   : > { %5208 = vmatprep.subr.bf16.mxu0 %v7301_v22  ;;  %5249 = vmatprep.subr.bf16.mxu1 %v7304_v23  ;;  %v4351_v22 = vrot.slane %v4346_v21, %v8146_v16  ;;  %v4355_v23 = vrot.slane %v4346_v21, %v8148_v18 }
 0x957   : > { %5209 = vmatpush1.bf16.msra.mxu0 %v7299_v24  ;;  %5250 = vmatpush1.bf16.msra.mxu1 %v7302_v25 }
 0x958   : > { %5210 = vmatprep.subr.bf16.mxu0 %v7307_v43  ;;  %5251 = vmatprep.subr.bf16.mxu1 %v7310_v27 }
 0x95b   : > { %5211 = vmatpush1.bf16.msra.mxu0 %v7305_v28  ;;  %5252 = vmatpush1.bf16.msra.mxu1 %v7308_v30 }
 0x95c   : > { %5212 = vmatprep.subr.bf16.mxu0 %v7313_v31  ;;  %5253 = vmatprep.subr.bf16.mxu1 %v7316_v32 }
 0x95f   : > { %5213 = vmatpush1.bf16.msra.mxu0 %v7311_v36  ;;  %5254 = vmatpush1.bf16.msra.mxu1 %v7314_v37 }
 0x960   : > { %5214 = vmatprep.subr.bf16.mxu0 %v7319_v38  ;;  %5255 = vmatprep.subr.bf16.mxu1 %v7322_v52 }
 0x963   : > { %5215 = vmatpush1.bf16.msra.mxu0 %v7317_v42  ;;  %5256 = vmatpush1.bf16.msra.mxu1 %v7320_v44  ;;  %v4359_v42 = vrot.slane %v4346_v21, %v8152_v26 }
 0x964   : > { %5216 = vmatprep.subr.bf16.mxu0 %v7325_v45  ;;  %5257 = vmatprep.subr.bf16.mxu1 %v7328_v46  ;;  %v4363_v45 = vrot.slane %v4346_v21, %v8155_v33 }
 0x967   : > { %5217 = vmatpush1.bf16.msra.mxu0 %v7323_v17  ;;  %5258 = vmatpush1.bf16.msra.mxu1 %v7326_v47 }
 0x968   : > { %5218 = vmatprep.subr.bf16.mxu0 %v7331_v59  ;;  %5259 = vmatprep.subr.bf16.mxu1 %v7334_v48 }
 0x96b   : > { %5219 = vmatpush1.bf16.msra.mxu0 %v7329_v49  ;;  %5260 = vmatpush1.bf16.msra.mxu1 %v7332_v0 }
 0x96c   : > { %5220 = vmatprep.subr.bf16.mxu0 %v7337_v50  ;;  %5261 = vmatprep.subr.bf16.mxu1 %v7340_v51 }
 0x96f   : > { %5221 = vmatpush2.bf16.msra.mxu0 %v7335_v53  ;;  %5262 = vmatpush2.bf16.msra.mxu1 %v7338_v54 }
 0x970   : > { %5222 = vmatprep.subr.bf16.mxu0 %v7343_v55  ;;  %5263 = vmatprep.subr.bf16.mxu1 %v7346_v34 }
 0x973   : > { %5223 = vmatpush2.bf16.msra.mxu0 %v7341_v56  ;;  %5264 = vmatpush2.bf16.msra.mxu1 %v7344_v57 }
 0x974   : > { %5224 = vmatprep.subr.bf16.mxu0 %v7349_v60  ;;  %5265 = vmatprep.subr.bf16.mxu1 %v7352_v61 }
 0x977   : > { %5225 = vmatpush2.bf16.msra.mxu0 %v7347_v62  ;;  %5266 = vmatpush2.bf16.msra.mxu1 %v7350_v63  ;;  %v7383_v63 = vld [vmem:[#allocation13 + $0x38] sm:$0xff]  }
 0x978   : > { %5226 = vmatprep.subr.bf16.mxu0 %v7355_v39  ;;  %5267 = vmatprep.subr.bf16.mxu1 %v7358_v1  ;;  %v7385_v39 = vld [vmem:[#allocation13 + $0x28] sm:$0xff]   ;;  %v7386_v1 = vld [vmem:[#allocation13 + $0x20] sm:$0xff]  }
 0x97b   : > { %5227 = vmatpush2.bf16.msra.mxu0 %v7353_v2  ;;  %5268 = vmatpush2.bf16.msra.mxu1 %v7356_v3  ;;  %v7387_v2 = vld [vmem:[#allocation13 + $0x18] sm:$0xff]   ;;  %v7388_v3 = vld [vmem:[#allocation13 + $0x10] sm:$0xff]  }
 0x97c   : > { %5228 = vmatprep.subr.bf16.mxu0 %v7361_v4  ;;  %5269 = vmatprep.subr.bf16.mxu1 %v7364_v5  ;;  %v7389_v4 = vld [vmem:[#allocation13 + $0x8] sm:$0xff]   ;;  %v7390_v5 = vld [vmem:[#allocation13] sm:$0xff]  }
 0x97f   : > { %5229 = vmatpush2.bf16.msra.mxu0 %v7359_v6  ;;  %5270 = vmatpush2.bf16.msra.mxu1 %v7362_v7  ;;  %v4862_v6 = vld [vmem:[#allocation8 + $0x20] sm:$0xf] }
 0x980   : > { %5230 = vmatprep.subr.bf16.mxu0 %v7367_v8  ;;  %5271 = vmatprep.subr.bf16.mxu1 %v7370_v9  ;;  %v4867_v7 = vrot.slane %v4862_v6, %v8146_v16  ;;  %v4871_v8 = vrot.slane %v4862_v6, %v8148_v18  ;;  %v4879_v16 = vrot.slane %v4862_v6, %v8155_v33 }
 0x983   : > { %5231 = vmatpush2.bf16.msra.mxu0 %v7365_v10  ;;  %5272 = vmatpush2.bf16.msra.mxu1 %v7368_v58 }
 0x984   : > { %5232 = vmatprep.subr.bf16.mxu0 %v7373_v11  ;;  %5273 = vmatprep.subr.bf16.mxu1 %v7376_v13 }
 0x987   : > { %5233 = vmatpush2.bf16.msra.mxu0 %v7371_v14  ;;  %5274 = vmatpush2.bf16.msra.mxu1 %v7374_v15 }
 0x988   : > { %5234 = vmatprep.subr.bf16.mxu0 %v7379_v19  ;;  %5275 = vmatprep.subr.bf16.mxu1 %v7382_v35 }
 0x98b   : > { %5235 = vmatpush2.bf16.msra.mxu0 %v7377_v20  ;;  %5276 = vmatpush2.bf16.msra.mxu1 %v7380_v29 }
 0x98c   : > { %6347 = vmatprep.subr.bf16.mxu0 %v7900_v41 }
 0xa0d   : > { %v4722_v24 = vpop.f32.mrf.mxu0  ;;  %v4763_v25 = vpop.f32.mrf.mxu1 }
 0xa0e   : > { %v4723_v43 = vadd.f32 %v4722_v24, %v4351_v22  ;;  %v4764_v44 = vadd.f32 %v4763_v25, %v4359_v42 }
 0xa0f   : > { %v4724_v27 = vpop.f32.mrf.mxu0  ;;  %v4765_v28 = vpop.f32.mrf.mxu1 }
 0xa10   : > { %v6193_v30 = vmul.f32 -1.442695, %v4723_v43  ;;  %v4725_v31 = vadd.f32 %v4724_v27, %v4355_v23  ;;  %v6195_v46 = vmul.f32 -1.442695, %v4764_v44  ;;  %v4766_v47 = vadd.f32 %v4765_v28, %v4363_v45 }
 0xa11   : > { %v4726_v32 = vpop.f32.mrf.mxu0  ;;  %v4767_v36 = vpop.f32.mrf.mxu1 }
 0xa12   : > { %7503 = vpow2.f32 %v6193_v30  ;;  %v6194_v37 = vmul.f32 -1.442695, %v4725_v31 }
 0xa13   : > { %v4727_v38 = vpop.f32.mrf.mxu0  ;;  %v4768_v52 = vpop.f32.mrf.mxu1 }
 0xa14   : > { %7505 = vpow2.f32 %v6194_v37 }
 0xa15   : > { %7507 = vpow2.f32 %v6195_v46 }
 0xa1f   : > { %v7504_v17 = vpop.eup %7503 }
 0xa20   : > { %v4779_v59 = vadd.f32 1.0, %v7504_v17 }
 0xa21   : > { %v7506_v48 = vpop.eup %7505 }
 0xa22   : > { %7509 = vrcp.f32 %v4779_v59  ;;  %v4780_v49 = vadd.f32 1.0, %v7506_v48  ;;  %v7508_v0 = vpop.eup %7507 }
 0xa23   : > { %7511 = vtanh.f32 %v4766_v47  ;;  %v4781_v54 = vadd.f32 1.0, %v7508_v0 }
 0xa24   : > { %7513 = vrcp.f32 %v4780_v49 }
 0xa25   : > { %7515 = vrcp.f32 %v4781_v54 }
 0xa2f   : > { %v7510_v50 = vpop.eup %7509 }
 0xa30   : > { %v7512_v51 = vpop.eup %7511 }
 0xa31   : > { %v7514_v53 = vpop.eup %7513  ;;  %v4790_v34 = vmul.f32 %v7512_v51, %v7510_v50 }
 0xa32   : > { %v4789_v55 = vmul.f32 %v7514_v53, %v8220_v12  ;;  %v7516_v57 = vpop.eup %7515  ;;  %v7384_v12 = vld [vmem:[#allocation13 + $0x30] sm:$0xff]  }
 0xa34   : > { %v4791_v56 = vadd.f32 %v4790_v34, %v4789_v55 }
 0xa36   : > { %7517 = vtanh.f32 %v4791_v56  ;;  %5426 = vst [vmem:[#allocation19 + $0x8] sm:$0xff] %v4791_v56 }
 0xa43   : > { %v7518_v60 = vpop.eup %7517 }
 0xa44   : > { %v4793_v61 = vmul.f32 %v7518_v60, %v7516_v57 }
 0xa46   : > { %v4794_v62 = vpack.c.bf16 %v4793_v61, %v4793_v61  ;;  %5425 = vst [vmem:[#allocation17 + $0x8] sm:$0xff] %v4793_v61 }
 0xa48   : > { %5237 = vmatmul.mubr.bf16.vlgmr.msra.gmra.mxu0 %v4794_v62  ;;  %5278 = vmatmul.mubr.bf16.vlgmr.msra.gmra.mxu1 %v4794_v62 }
 0xa49   : > { %6363 = vmatprep.mubr.msk.bf16.mxu0 %vm7901_vm0, %v7900_v41  ;;  %6348 = vmatpush3.bf16.msra.mxu0 %v7383_v63 }
 0xa4a   : > { %6349 = vmatprep.subr.bf16.mxu0 %v7900_v41 }
 0xa4d   : > { %6350 = vmatpush3.bf16.msra.mxu0 %v7384_v12 }
 0xa4e   : > { %6351 = vmatprep.subr.bf16.mxu0 %v7900_v41 }
 0xa51   : > { %6352 = vmatpush3.bf16.msra.mxu0 %v7385_v39 }
 0xa52   : > { %6353 = vmatprep.subr.bf16.mxu0 %v7900_v41 }
 0xa55   : > { %6354 = vmatpush3.bf16.msra.mxu0 %v7386_v1 }
 0xa56   : > { %6355 = vmatprep.subr.bf16.mxu0 %v7900_v41 }
 0xa59   : > { %6356 = vmatpush3.bf16.msra.mxu0 %v7387_v2 }
 0xa5a   : > { %6357 = vmatprep.subr.bf16.mxu0 %v7900_v41 }
 0xa5d   : > { %6358 = vmatpush3.bf16.msra.mxu0 %v7388_v3 }
 0xa5e   : > { %6359 = vmatprep.subr.bf16.mxu0 %v7900_v41 }
 0xa61   : > { %6360 = vmatpush3.bf16.msra.mxu0 %v7389_v4 }
 0xa62   : > { %6361 = vmatprep.subr.bf16.mxu0 %v7900_v41  ;;  %v4875_v41 = vrot.slane %v4862_v6, %v8152_v26 }
 0xa65   : > { %6362 = vmatpush3.bf16.msra.mxu0 %v7390_v5 }
 0xb08   : > { %v5238_v9 = vpop.f32.mrf.mxu0  ;;  %v5279_v10 = vpop.f32.mrf.mxu1 }
 0xb09   : > { %v5239_v58 = vadd.f32 %v5238_v9, %v4867_v7  ;;  %v5280_v22 = vadd.f32 %v5279_v10, %v4875_v41 }
 0xb0a   : > { %v5240_v11 = vpop.f32.mrf.mxu0  ;;  %v5281_v13 = vpop.f32.mrf.mxu1 }
 0xb0b   : > { %v6260_v14 = vmul.f32 -1.442695, %v5239_v58  ;;  %v5241_v15 = vadd.f32 %v5240_v11, %v4871_v8  ;;  %v6262_v18 = vmul.f32 -1.442695, %v5280_v22  ;;  %v5282_v24 = vadd.f32 %v5281_v13, %v4879_v16 }
 0xb0c   : > { %v5242_v19 = vpop.f32.mrf.mxu0  ;;  %v5283_v35 = vpop.f32.mrf.mxu1 }
 0xb0d   : > { %7519 = vpow2.f32 %v6260_v14  ;;  %v6261_v20 = vmul.f32 -1.442695, %v5241_v15 }
 0xb0e   : > { %v5243_v29 = vpop.f32.mrf.mxu0  ;;  %v5284_v21 = vpop.f32.mrf.mxu1 }
 0xb0f   : > { %7521 = vpow2.f32 %v6261_v20 }
 0xb10   : > { %7523 = vpow2.f32 %v6262_v18 }
 0xb1a   : > { %v7520_v23 = vpop.eup %7519 }
 0xb1b   : > { %v5295_v25 = vadd.f32 1.0, %v7520_v23 }
 0xb1c   : > { %v7522_v43 = vpop.eup %7521 }
 0xb1d   : > { %7525 = vrcp.f32 %v5295_v25  ;;  %v5296_v27 = vadd.f32 1.0, %v7522_v43  ;;  %v7524_v28 = vpop.eup %7523 }
 0xb1e   : > { %7527 = vtanh.f32 %v5282_v24  ;;  %v5297_v36 = vadd.f32 1.0, %v7524_v28 }
 0xb1f   : > { %7529 = vrcp.f32 %v5296_v27 }
 0xb20   : > { %7531 = vrcp.f32 %v5297_v36 }
 0xb2a   : > { %v7526_v30 = vpop.eup %7525 }
 0xb2b   : > { %v7528_v31 = vpop.eup %7527 }
 0xb2c   : > { %v7530_v32 = vpop.eup %7529  ;;  %v5306_v37 = vmul.f32 %v7528_v31, %v7526_v30 }
 0xb2d   : > { %v5305_v26 = vmul.f32 %v7530_v32, %v8242_v40  ;;  %v7532_v38 = vpop.eup %7531 }
 0xb2f   : > { %v5307_v33 = vadd.f32 %v5306_v37, %v5305_v26 }
 0xb31   : > { %7533 = vtanh.f32 %v5307_v33  ;;  %5428 = vst [vmem:[#allocation19 + $0x10] sm:$0xff] %v5307_v33 }
 0xb3e   : > { %v7534_v52 = vpop.eup %7533 }
 0xb3f   : > { %v5309_v42 = vmul.f32 %v7534_v52, %v7532_v38 }
 0xb41   : > { %v5310_v44 = vpack.c.bf16 %v5309_v42, %v5309_v42  ;;  %5427 = vst [vmem:[#allocation17 + $0x10] sm:$0xff] %v5309_v42 }
 0xb43   : > { %6364 = vmatmul.mubr.bf16.vlgmr.msra.gmra.mxu0 %v5310_v44 }
 0xb44   : > { %7765 = shalt.err (!%p7762_p13)
}
 0xb45   : > { %s7903_s22 = smov 128   ;;  %s7904_s15 = smov 8  }
 0xb46   : > { %p8399_p8 = pmov %p8398_p6  ;;  %s7905_s24 = smov [#allocation19]  }
 0xb47   : > { %s5466_s30 = sshll.u32 %s7905_s24, 4  ;;  %p8400_p12 = pmov %p8398_p6  ;;  %s5467_s30 = int_to_ptr.vmem [resolvable:$true] %s5466_s30 }
 0xb48   : > { %6401 = dma.vmem_to_hbm [thread:$0]  (%p8399_p8), %s5454_s12, 384, %s8357_s10, [#allocation18], %s7903_s22, %s7903_s22, %s7904_s15  }
 0xb49   : > { %s7776_s14 = scalar_lea.vmem %s5467_s30, 384  ;;  %p7783_p3 = scmp.lt.s32.totalorder %s5467_s30, %s5467_s30 }
 0xb4a   : > { %p7777_p9 = scmp.ne.s32.totalorder %s5467_s30, %s7776_s14  ;;  %p7784_p5 = scmp.lt.s32.totalorder %s7776_s14, %s7776_s14 }
 0xb4c   : > { %p7778_p10 = pnand %p7777_p9, %p8400_p12  ;;  %p7785_p6 = por %p7784_p5, %p7783_p3 }
 0xb4e   : > { %p7779_p1 = pneg %p7778_p10 }
 0xb50   : > { %p7786_p11 = pnand %p7785_p6, %p7779_p1 }
 0xb52   : > { %7789 = shalt.err (!%p7786_p11)
}
 0xb53   : > { %p8401_p0 = pmov %p8399_p8  ;;  %v6263_v40 = vld [vmem:[#allocation14] ss:$0 sm:$0xff]  ;;  %s6273_s12 = sshll.u32 %s7988_s21, 7 }
 0xb54   : > { %s5443_s26 = sshll.u32 %s482_s2, 4  ;;  %s8298_s24 = scalar_lea.hbm %s8356_s9, %s6273_s12  ;;  %s8300_s26 = int_to_ptr.vmem [resolvable:$true] %s5443_s26 }
 0xb55   : > { %6403 = dma.vmem_to_hbm [thread:$0]  (%p8401_p0), %s5467_s30, 384, %s8358_s11, [#allocation18], %s7903_s22, %s7903_s22, %s7904_s15  }
 0xb56   : > { %s5430_s22 = scalar_lea.sflag [#allocation4], %s480_s29  ;;  %s7800_s15 = scalar_lea.vmem %s8300_s26, 128 }
 0xb57   : > { %p7801_p7 = scmp.ne.s32.totalorder %s8300_s26, %s7800_s15  ;;  %p8402_p4 = scmp.ne.s32.totalorder %s8376_s27, 0 }
 0xb58   : > { %s7906_s30 = smov [#allocation16]  }
 0xb59   : > { %p7802_p2 = pnand %p7801_p7, %p8402_p4  ;;  %s7804_s14 = sshll.u32 %s7906_s30, 4  ;;  %s7805_s14 = int_to_ptr.vmem [resolvable:$false] %s7804_s14 }
 0xb5a   : > { %s7806_s19 = scalar_lea.vmem %s7805_s14, 256  ;;  %p7807_p8 = scmp.lt.s32.totalorder %s8300_s26, %s7805_s14 }
 0xb5b   : > { %p7803_p13 = pneg %p7802_p2  ;;  %p7808_p9 = scmp.lt.s32.totalorder %s7806_s19, %s7800_s15 }
 0xb5d   : > { %p7809_p12 = por %p7808_p9, %p7807_p8 }
 0xb5f   : > { %p7810_p10 = pnand %p7809_p12, %p7803_p13 }
 0xc03   : > { %v5416_v45 = vpop.f32.mrf.mxu0 }
 0xc04   : > { %v5417_v46 = vadd.f32 %v6263_v40, %v5416_v45 }
 0xc05   : > { %v6365_v17 = vpop.f32.mrf.mxu0 }
 0xc06   : > { %5422 = vst [vmem:[%s482_s2] sm:$0xff] %v5417_v46 }
 0xc07   : > { %v5419_v47 = vpop.f32.mrf.mxu0 }
 0xc08   : > { %7813 = shalt.err (!%p7810_p10)
}
 0xc09   : > { %s7814_s13 = scalar_lea.hbm %s8298_s24, 128  ;;  %s7818_s23 = scalar_lea.hbm %s8356_s9, 1024 }
 0xc0a   : > { %p7815_p1 = scmp.ne.s32.totalorder %s8298_s24, %s7814_s13  ;;  %p7819_p6 = scmp.lt.s32.totalorder %s8298_s24, %s8356_s9 }
 0xc0b   : > { %p7820_p11 = scmp.lt.s32.totalorder %s7818_s23, %s7814_s13 }
 0xc0c   : > { %p7816_p3 = pnand %p7815_p1, %p8402_p4 }
 0xc0d   : > { %p7821_p0 = por %p7820_p11, %p7819_p6 }
 0xc0e   : > { %p7817_p5 = pneg %p7816_p3 }
 0xc10   : > { %p7822_p7 = pnand %p7821_p0, %p7817_p5 }
 0xc12   : > { %7825 = shalt.err (!%p7822_p7)
}
 0xc13   : > { %6399 = dma.vmem_to_hbm [thread:$0]  (%p8402_p4), %s8300_s26, 128, %s8298_s24, %s5430_s22   ;;  %v6366_v59 = vpop.f32.mrf.mxu0 }
 0xc14   : > { %p8403_p2 = scmp.eq.s32.totalorder %s7988_s21, 7 }
 0xc16   : > { %7863 = dma.done.wait (%p8403_p2), [#allocation18], 768   ;;  %p8404_p13 = pmov %p8403_p2 }
 0xc18   : > { %7865 = vsyncadd (%p8404_p13), [#allocation18], 4294966528 }
 0xc19 PF: > { %p6458_p8 = scmp.ge.s32.totalorder %s7884_s20, 2  ;;  %s5489_s16 = sand.u32 1, %s7872_s17  }
 0xc1a   : > { %p8405_p9 = scmp.ne.s32.totalorder %s8377_s28, 0  ;;  %s5490_s27 = scalar_lea.sflag [#allocation4], %s5489_s16 }
 0xc1c   : > { %p6435_p12 = pnand %p6458_p8, %p8405_p9 }
 0xc1e   : > { %p6436_p10 = pneg %p6435_p12 }
 0xc20   : > { %7867 = dma.done.wait (%p6436_p10), %s5490_s27, 128  }
 0xc21   : > { %7869 = vsyncadd (%p6436_p10), %s5490_s27, 4294967168  ;;  %s8406_s20 = sld [smem:[#allocation28_spill]]  ;;  %s8409_s17 = smov %s7876_s18 }
 0xc22   : > { %s8407_s26 = sld [smem:[#allocation27_spill]] }
 0xc23   : > { %s8408_s19 = sld [smem:[#allocation29_spill]] }
 0xc27   : > { %p28_p4 = scmp.ge.s32.totalorder %s8406_s20, 10  }
 0xc28   : > { %s8410_s18 = smov %s8407_s26 }
 0xc29   :  { %30 = sbr.rel (!%p28_p4) target bundleno = 11 (0xb), region = 164 }
 0xc2e   :  { %5495 = vsyncpa [#allocation3], 1 }
 0xc2f   :  { %5497 = vsyncpa [#allocation3 + $0x1], 1 }
 0xc30   :  { %5498 = vsyncpa [#allocation6], 1 }
 0xc31   :  { %5499 = vsyncpa [#allocation9], 1 }
 0xc32   :  { %5500 = vsyncpa [#allocation12], 1 }
 0xc33   :  { %5501 = vsyncpa [#allocation15], 1 }
 0xc34   :  { %5502 = vsyncpa [#allocation4], 1 }
 0xc35   :  { %5504 = vsyncpa [#allocation4 + $0x1], 1 }
 0xc36   :  { %5505 = vsyncpa [#allocation18], 1 }

</bundles_post_ra>
